<compile_context>
chip_gen: v7x
topology: tpu7x:2x2x1
jax: 0.10.0
libtpu: 0.0.40
codegen_flags: <defaults>
</compile_context>

<pallas_src>
import math
import functools

import jax
import jax.numpy as jnp
from jax import lax
from jax.experimental import pallas as pl
from jax.experimental.pallas import tpu as pltpu


# static conv configuration
KERNEL_SIZES = (3, 7, 15, 31)
MAXPAD = max(KERNEL_SIZES) // 2            # 15
NUM_WINDOWS = 2 * MAXPAD + 1               # 31


# ----------------------------- BlockSpec helpers -----------------------------

def _rep_spec(shape):
    """Full-array block, replicated (same block) for every grid step."""
    nd = len(shape)
    return pl.BlockSpec(shape, lambda i, nd=nd: (0,) * nd)


# --------------------------- in-kernel math helpers ---------------------------

def _sigmoid(x):
    return 1.0 / (1.0 + jnp.exp(-x))


def _erf(x):
    # Abramowitz & Stegun 7.1.26 rational approximation (|err| < 1.5e-7), exp-only.
    p = 0.3275911
    a1, a2, a3, a4, a5 = 0.254829592, -0.284496736, 1.421413741, -1.453152027, 1.061405429
    sgn = jnp.where(x >= 0.0, 1.0, -1.0)
    ax = jnp.abs(x)
    t = 1.0 / (1.0 + p * ax)
    poly = ((((a5 * t + a4) * t + a3) * t + a2) * t + a1) * t
    return sgn * (1.0 - poly * jnp.exp(-ax * ax))


def _gelu(x):
    # exact-erf GELU, matching torch.nn.GELU() / F.gelu(approximate='none')
    return 0.5 * x * (1.0 + _erf(x * 0.7071067811865476))


def _layernorm(x, g, b, eps=1e-5):
    m = jnp.mean(x, axis=-1, keepdims=True)
    c = x - m
    v = jnp.mean(c * c, axis=-1, keepdims=True)
    return c * lax.rsqrt(v + eps) * g + b


# ------------------------------ the fused kernel ------------------------------

def _eeg_kernel(xcm_ref, xp_ref,
                win_ref, caw1_ref, cab1_ref, caw2_ref, cab2_ref,
                wconv_ref, bconv_ref,
                rp_ref, ec_ref, wpe_ref, addpat_ref, amask_ref,
                ln1g_ref, ln1b_ref, wqkv_ref, bqkv_ref, wo_ref, bo_ref,
                ln2g_ref, ln2b_ref, wf1_ref, bf1_ref, wf2_ref, bf2_ref,
                selcls_ref, fng_ref, fnb_ref, wpc_ref, wpv_ref, bp_ref,
                cg_ref, cb_ref, hw1_ref, hb1_ref, hw2_ref, hb2_ref,
                o_ref, *, num_heads, inv_T):
    f32 = jnp.float32
    bf16 = jnp.bfloat16
    C, TB, T = xcm_ref.shape                       # channel-major raw signal block
    TBS = xp_ref.shape[0]                          # TB * S flattened token rows
    E = wconv_ref.shape[2]
    L = wqkv_ref.shape[0]
    H = num_heads
    Dh = E // H
    scale = 1.0 / math.sqrt(Dh)

    # ---- channel attention gate: sigmoid(MLP(avg)) + sigmoid(MLP(max))  (matches torch) ----
    # ---- + windowed sums for the fused multi-scale Conv1d->GAP collapse ----
    win = win_ref[...]                                                 # (T, 31) 0/1 mask
    avg_cols, max_cols, wsums = [], [], []
    for c in range(C):                   # TODO(synk): collapse to one (TB*C,T)@(T,31) for large C
        xc = xcm_ref[c]                                                # (TB, T)
        avg_cols.append(jnp.mean(xc, axis=1, keepdims=True))           # AdaptiveAvgPool1d(1)
        max_cols.append(jnp.max(xc, axis=1, keepdims=True))            # AdaptiveMaxPool1d(1)
        wsums.append(jnp.dot(xc, win, preferred_element_type=f32))     # (TB, 31) tap sums
    avg = jnp.concatenate(avg_cols, axis=1)                            # (TB, C)
    mx = jnp.concatenate(max_cols, axis=1)                             # (TB, C)

    def gate_mlp(pooled):                                              # shared fc -> Sigmoid
        h = jnp.maximum(jnp.dot(pooled, caw1_ref[...],
                                preferred_element_type=f32) + cab1_ref[...], 0.0)
        return _sigmoid(jnp.dot(h, caw2_ref[...],
                                preferred_element_type=f32) + cab2_ref[...])

    attn = gate_mlp(avg) + gate_mlp(mx)                                # (TB, C) channel gate

    # mean_t conv(x*g) = b + (1/T) * sum_{c,j} g[c] * w[o,c,j] * S[c, off_k + j]
    cf = jnp.zeros((TB, E), f32)
    for c in range(C):
        cf = cf + jnp.dot(wsums[c] * attn[:, c:c + 1], wconv_ref[c],
                          preferred_element_type=f32)
    cf = cf * inv_T + bconv_ref[...]                                   # (TB, E) conv features

    # ---- gated patch embedding + positional encoding + CLS, as ONE matmul ----
    # column gate (per sample / per channel) built from two tiny 0/1 matmuls:
    gate_cols = jnp.dot(jnp.dot(rp_ref[...], attn, preferred_element_type=f32),
                        ec_ref[...], preferred_element_type=f32)       # (TB*S, C*ps)
    # CLS rows of xp are zeros; addpat injects cls_token there and bias+PE on patch rows.
    tok = jnp.dot((xp_ref[...] * gate_cols).astype(bf16), wpe_ref[...],
                  preferred_element_type=f32) + addpat_ref[...]        # (TB*S, E) tokens

    # ---- L pre-norm transformer encoder layers (tokens stay resident in VMEM) ----
    amask = amask_ref[...]                                             # block-diag additive mask
    for l in range(L):                   # TODO(synk): lax.fori_loop when num_layers > ~4
        xn = _layernorm(tok, ln1g_ref[l], ln1b_ref[l])
        qkv = jnp.dot(xn.astype(bf16), wqkv_ref[l],
                      preferred_element_type=f32) + bqkv_ref[l]        # (TB*S, 3E)
        ctx_heads = []
        for h in range(H):               # TODO(synk): batch heads into one dot at MXU-scale E
            qh = qkv[:, h * Dh:(h + 1) * Dh]
            kh = qkv[:, E + h * Dh:E + (h + 1) * Dh]
            vh = qkv[:, 2 * E + h * Dh:2 * E + (h + 1) * Dh]
            s = lax.dot_general(qh, kh, (((1,), (1,)), ((), ())),
                                preferred_element_type=f32) * scale + amask   # (TB*S, TB*S)
            s = s - jnp.max(s, axis=-1, keepdims=True)
            p = jnp.exp(s)
            p = p * pl.reciprocal(jnp.sum(p, axis=-1, keepdims=True), approx=True)
            ctx_heads.append(jnp.dot(p, vh, preferred_element_type=f32))      # (TB*S, Dh)
        ctx = jnp.concatenate(ctx_heads, axis=1)                              # (TB*S, E)
        tok = tok + jnp.dot(ctx.astype(bf16), wo_ref[l],
                            preferred_element_type=f32) + bo_ref[l]
        xn2 = _layernorm(tok, ln2g_ref[l], ln2b_ref[l])
        hdn = _gelu(jnp.dot(xn2.astype(bf16), wf1_ref[l],
                            preferred_element_type=f32) + bf1_ref[l])         # (TB*S, 4E)
        tok = tok + jnp.dot(hdn.astype(bf16), wf2_ref[l],
                            preferred_element_type=f32) + bf2_ref[l]

    # ---- head: final norm on CLS rows, feature fusion, conv residual, classifier MLP ----
    cls = jnp.dot(selcls_ref[...], tok, preferred_element_type=f32)    # (TB, E) pick CLS rows
    cls = _layernorm(cls, fng_ref[...], fnb_ref[...])
    pre = (jnp.dot(cls, wpc_ref[...], preferred_element_type=f32)
           + jnp.dot(cf, wpv_ref[...], preferred_element_type=f32)
           + bp_ref[...] + cf)                     # pre_classifier([cls|conv]) + residual(conv)
    hh = _layernorm(pre, cg_ref[...], cb_ref[...])
    hh = _gelu(jnp.dot(hh, hw1_ref[...], preferred_element_type=f32) + hb1_ref[...])
    logits = jnp.dot(hh, hw2_ref[...], preferred_element_type=f32) + hb2_ref[...]
    o_ref[...] = logits.astype(o_ref.dtype)


# ------------------------------ pallas_call wrapper ------------------------------

def eeg_transformer_forward(x, params, *, patch_size, num_patches, num_heads):
    # TODO(synk): dropout layers are identity here (eval/inference semantics).
    B, C, T = x.shape
    P, ps = num_patches, patch_size
    S = P + 1

    # batch blocking: TB samples per grid step (pad B up to a multiple of TB if needed)
    TB = B if B <= 8 else 8
    nb = -(-B // TB)
    Bp = nb * TB
    if Bp != B:
        x = jnp.concatenate([x, jnp.zeros((Bp - B, C, T), x.dtype)], axis=0)

    # channel-major view (kernel indexes the leading channel dim -> cheap (TB,T) slices)
    xcm = jnp.transpose(x, (1, 0, 2))                                     # (C, Bp, T)
    # torch-unfold patch layout (feature index = c*ps + s) plus a zero "CLS row" per sample
    xp = x[:, :, :P * ps].reshape(Bp, C, P, ps).transpose(0, 2, 1, 3).reshape(Bp, P, C * ps)
    xp = jnp.pad(xp, ((0, 0), (1, 0), (0, 0))).reshape(Bp * S, C * ps)

    f32 = jnp.float32
    # small 0/1 helper matrices (replicated inputs) that replace in-kernel gathers/reshapes
    rp = jnp.kron(jnp.eye(TB, dtype=f32), jnp.ones((S, 1), f32))          # row b*S+r -> sample b
    ec = jnp.kron(jnp.eye(C, dtype=f32), jnp.ones((1, ps), f32))          # channel -> its ps cols
    selcls = jnp.kron(jnp.eye(TB, dtype=f32),
                      jnp.concatenate([jnp.ones((1, 1), f32),
                                       jnp.zeros((1, S - 1), f32)], axis=1))  # picks CLS rows
    amask = (1.0 - jnp.kron(jnp.eye(TB, dtype=f32), jnp.ones((S, S), f32))) * (-1e30)
    # additive pattern: cls_token on CLS rows, patch bias + sinusoidal PE on patch rows
    addpat = jnp.tile(jnp.concatenate([params['cls'],
                                       params['pe'] + params['patch']['b']], axis=0), (TB, 1))

    ca, conv, lp, hp = params['ca'], params['conv'], params['layers'], params['head']
    rep = (conv['win'], ca['w1'], ca['b1'], ca['w2'], ca['b2'],
           conv['wpack'], conv['b'],
           rp, ec, params['patch']['w'], addpat, amask,
           lp['ln1_g'], lp['ln1_b'], lp['wqkv'], lp['bqkv'], lp['wo'], lp['bo'],
           lp['ln2_g'], lp['ln2_b'], lp['w1'], lp['b1'], lp['w2'], lp['b2'],
           selcls, hp['fn_g'], hp['fn_b'], hp['wp_cls'], hp['wp_conv'], hp['bp'],
           hp['cg'], hp['cb'], hp['w1'], hp['b1'], hp['w2'], hp['b2'])

    kern = functools.partial(_eeg_kernel, num_heads=num_heads, inv_T=1.0 / T)
    out = pl.pallas_call(
        kern,
        out_shape=jax.ShapeDtypeStruct((Bp, 2), f32),
        grid=(nb,),
        in_specs=[pl.BlockSpec((C, TB, T), lambda i: (0, i, 0)),
                  pl.BlockSpec((TB * S, C * ps), lambda i: (i, 0))]
                 + [_rep_spec(a.shape) for a in rep],
        out_specs=pl.BlockSpec((TB, 2), lambda i: (i, 0)),
        compiler_params=pltpu.CompilerParams(dimension_semantics=("parallel",)),
    )(xcm, xp, *rep)
    return out[:B]                                                        # (B, 2)


# ------------------------------ parameters ------------------------------

def init_params(key, *, C, patch_size, num_patches, emb_dim, num_heads, num_layers, T,
                reduction=4):
    keys = iter(jax.random.split(key, 256))

    def nrm(shape, std=0.02):
        return (std * jax.random.normal(next(keys), shape)).astype(jnp.float32)

    E = emb_dim
    Cr = max(C // reduction, 1)
    P, ps = num_patches, patch_size
    L = num_layers
    bf16 = jnp.bfloat16
    params = {}

    # MultiHeadChannelAttention.fc : Linear(C, C//r) -> ReLU -> Linear(C//r, C) -> Sigmoid
    params['ca'] = {'w1': nrm((C, Cr)), 'b1': jnp.zeros((1, Cr), jnp.float32),
                    'w2': nrm((Cr, C)), 'b2': jnp.zeros((1, C), jnp.float32)}

    # conv1d_features: Conv1d(C, E//4, k, padding=k//2) for k in KERNEL_SIZES, packed into a
    # single (C, 31, E) slab aligned to the shared max padding; plus the 0/1 window-sum mask.
    O = E // 4
    wpack = jnp.zeros((C, NUM_WINDOWS, E), jnp.float32)
    for q, k in enumerate(KERNEL_SIZES):
        std = math.sqrt(2.0 / (O * k))                     # kaiming_normal_, fan_out
        w = nrm((O, C, k), std=std)                        # torch Conv1d layout (O, C, k)
        off = MAXPAD - k // 2
        wpack = wpack.at[:, off:off + k, q * O:(q + 1) * O].set(jnp.transpose(w, (1, 2, 0)))
    t_idx = jnp.arange(T)[:, None]
    m_idx = jnp.arange(NUM_WINDOWS)[None, :]
    win = ((t_idx >= m_idx - MAXPAD) & (t_idx <= m_idx + (T - 1) - MAXPAD)).astype(jnp.float32)
    params['conv'] = {'wpack': wpack, 'b': jnp.zeros((1, E), jnp.float32), 'win': win}

    # patch_embed Linear(C*ps, E): weight stored pre-transposed (C*ps, E), bf16 for the MXU
    params['patch'] = {'w': nrm((C * ps, E)).astype(bf16),
                       'b': jnp.zeros((1, E), jnp.float32)}

    # sinusoidal positional encoding + CLS token
    pos = jnp.arange(P, dtype=jnp.float32)[:, None]
    div = jnp.exp(jnp.arange(0, E, 2, dtype=jnp.float32) * (-math.log(10000.0) / E))
    pe = jnp.zeros((P, E), jnp.float32)
    pe = pe.at[:, 0::2].set(jnp.sin(pos * div))
    pe = pe.at[:, 1::2].set(jnp.cos(pos * div))
    params['pe'] = pe
    params['cls'] = nrm((1, E))

    # TransformerEncoderLayer stack (pre-norm, gelu); weights pre-transposed to (in, out),
    # stacked over layers, and stored bf16 (biases / LN params stay f32).
    def stack(shape):
        return jnp.stack([nrm(shape) for _ in range(L)], axis=0).astype(bf16)

    params['layers'] = {
        'ln1_g': jnp.ones((L, 1, E), jnp.float32), 'ln1_b': jnp.zeros((L, 1, E), jnp.float32),
        'wqkv': stack((E, 3 * E)), 'bqkv': jnp.zeros((L, 1, 3 * E), jnp.float32),
        'wo': stack((E, E)), 'bo': jnp.zeros((L, 1, E), jnp.float32),
        'ln2_g': jnp.ones((L, 1, E), jnp.float32), 'ln2_b': jnp.zeros((L, 1, E), jnp.float32),
        'w1': stack((E, 4 * E)), 'b1': jnp.zeros((L, 1, 4 * E), jnp.float32),
        'w2': stack((4 * E, E)), 'b2': jnp.zeros((L, 1, E), jnp.float32),
    }

    # final_norm + pre_classifier (split into cls/conv halves) + classifier head (f32)
    params['head'] = {
        'fn_g': jnp.ones((1, E), jnp.float32), 'fn_b': jnp.zeros((1, E), jnp.float32),
        'wp_cls': nrm((E, E)), 'wp_conv': nrm((E, E)), 'bp': jnp.zeros((1, E), jnp.float32),
        'cg': jnp.ones((1, E), jnp.float32), 'cb': jnp.zeros((1, E), jnp.float32),
        'w1': nrm((E, E // 2)), 'b1': jnp.zeros((1, E // 2), jnp.float32),
        'w2': nrm((E // 2, 2)), 'b2': jnp.zeros((1, 2), jnp.float32),
    }
    return params


if __name__ == "__main__":
    # Small shapes consistent with the module (emb_dim divisible by 4 and num_heads,
    # T = num_patches * patch_size so the unfold/reshape matches exactly).
    B, C = 2, 4
    patch_size = 16
    num_patches = 8                     # small stand-in for win_samp // patch_size
    T = num_patches * patch_size        # 128
    emb_dim, num_heads, num_layers = 32, 4, 2

    key = jax.random.PRNGKey(0)
    k_param, k_x = jax.random.split(key)
    params = init_params(k_param, C=C, patch_size=patch_size, num_patches=num_patches,
                         emb_dim=emb_dim, num_heads=num_heads, num_layers=num_layers, T=T)
    x = jax.random.normal(k_x, (B, C, T), dtype=jnp.float32)

    fwd = jax.jit(functools.partial(eeg_transformer_forward, patch_size=patch_size,
                                    num_patches=num_patches, num_heads=num_heads))
    logits = fwd(x, params)
    jax.block_until_ready(logits)
    assert logits.shape == (B, 2) and logits.dtype == jnp.float32
    print("KERNEL_OK")
</pallas_src>

<mosaic_0001>
module attributes {stable_mosaic.version = 11 : i64} {
  func.func @_eeg_kernel(%arg0: i32, %arg1: memref<4x2x128xf32, #tpu.memory_space<vmem>>, %arg2: memref<18x64xf32, #tpu.memory_space<vmem>>, %arg3: memref<128x31xf32, #tpu.memory_space<vmem>>, %arg4: memref<4x1xf32, #tpu.memory_space<vmem>>, %arg5: memref<1x1xf32, #tpu.memory_space<vmem>>, %arg6: memref<1x4xf32, #tpu.memory_space<vmem>>, %arg7: memref<1x4xf32, #tpu.memory_space<vmem>>, %arg8: memref<4x31x32xf32, #tpu.memory_space<vmem>>, %arg9: memref<1x32xf32, #tpu.memory_space<vmem>>, %arg10: memref<18x2xf32, #tpu.memory_space<vmem>>, %arg11: memref<4x64xf32, #tpu.memory_space<vmem>>, %arg12: memref<64x32xbf16, #tpu.memory_space<vmem>>, %arg13: memref<18x32xf32, #tpu.memory_space<vmem>>, %arg14: memref<18x18xf32, #tpu.memory_space<vmem>>, %arg15: memref<2x1x32xf32, #tpu.memory_space<vmem>>, %arg16: memref<2x1x32xf32, #tpu.memory_space<vmem>>, %arg17: memref<2x32x96xbf16, #tpu.memory_space<vmem>>, %arg18: memref<2x1x96xf32, #tpu.memory_space<vmem>>, %arg19: memref<2x32x32xbf16, #tpu.memory_space<vmem>>, %arg20: memref<2x1x32xf32, #tpu.memory_space<vmem>>, %arg21: memref<2x1x32xf32, #tpu.memory_space<vmem>>, %arg22: memref<2x1x32xf32, #tpu.memory_space<vmem>>, %arg23: memref<2x32x128xbf16, #tpu.memory_space<vmem>>, %arg24: memref<2x1x128xf32, #tpu.memory_space<vmem>>, %arg25: memref<2x128x32xbf16, #tpu.memory_space<vmem>>, %arg26: memref<2x1x32xf32, #tpu.memory_space<vmem>>, %arg27: memref<2x18xf32, #tpu.memory_space<vmem>>, %arg28: memref<1x32xf32, #tpu.memory_space<vmem>>, %arg29: memref<1x32xf32, #tpu.memory_space<vmem>>, %arg30: memref<32x32xf32, #tpu.memory_space<vmem>>, %arg31: memref<32x32xf32, #tpu.memory_space<vmem>>, %arg32: memref<1x32xf32, #tpu.memory_space<vmem>>, %arg33: memref<1x32xf32, #tpu.memory_space<vmem>>, %arg34: memref<1x32xf32, #tpu.memory_space<vmem>>, %arg35: memref<32x16xf32, #tpu.memory_space<vmem>>, %arg36: memref<1x16xf32, #tpu.memory_space<vmem>>, %arg37: memref<16x2xf32, #tpu.memory_space<vmem>>, %arg38: memref<1x2xf32, #tpu.memory_space<vmem>>, %arg39: memref<2x2xf32, #tpu.memory_space<vmem>>) attributes {dimension_semantics = [#tpu.dimension_semantics<parallel>], iteration_bounds = array<i64: 1>, scalar_prefetch = 0 : i64, scratch_operands = 0 : i64, tpu.core_type = #tpu.core_type<tc>, window_params = [{transform_indices = @transform_0, window_bounds = array<i64: 4, 2, 128>}, {transform_indices = @transform_1, window_bounds = array<i64: 18, 64>}, {pipeline_mode = #tpu.pipeline_mode<synchronous>, transform_indices = @transform_2, window_bounds = array<i64: 128, 31>}, {pipeline_mode = #tpu.pipeline_mode<synchronous>, transform_indices = @transform_3, window_bounds = array<i64: 4, 1>}, {pipeline_mode = #tpu.pipeline_mode<synchronous>, transform_indices = @transform_4, window_bounds = array<i64: 1, 1>}, {pipeline_mode = #tpu.pipeline_mode<synchronous>, transform_indices = @transform_5, window_bounds = array<i64: 1, 4>}, {pipeline_mode = #tpu.pipeline_mode<synchronous>, transform_indices = @transform_6, window_bounds = array<i64: 1, 4>}, {pipeline_mode = #tpu.pipeline_mode<synchronous>, transform_indices = @transform_7, window_bounds = array<i64: 4, 31, 32>}, {pipeline_mode = #tpu.pipeline_mode<synchronous>, transform_indices = @transform_8, window_bounds = array<i64: 1, 32>}, {pipeline_mode = #tpu.pipeline_mode<synchronous>, transform_indices = @transform_9, window_bounds = array<i64: 18, 2>}, {pipeline_mode = #tpu.pipeline_mode<synchronous>, transform_indices = @transform_10, window_bounds = array<i64: 4, 64>}, {pipeline_mode = #tpu.pipeline_mode<synchronous>, transform_indices = @transform_11, window_bounds = array<i64: 64, 32>}, {pipeline_mode = #tpu.pipeline_mode<synchronous>, transform_indices = @transform_12, window_bounds = array<i64: 18, 32>}, {pipeline_mode = #tpu.pipeline_mode<synchronous>, transform_indices = @transform_13, window_bounds = array<i64: 18, 18>}, {pipeline_mode = #tpu.pipeline_mode<synchronous>, transform_indices = @transform_14, window_bounds = array<i64: 2, 1, 32>}, {pipeline_mode = #tpu.pipeline_mode<synchronous>, transform_indices = @transform_15, window_bounds = array<i64: 2, 1, 32>}, {pipeline_mode = #tpu.pipeline_mode<synchronous>, transform_indices = @transform_16, window_bounds = array<i64: 2, 32, 96>}, {pipeline_mode = #tpu.pipeline_mode<synchronous>, transform_indices = @transform_17, window_bounds = array<i64: 2, 1, 96>}, {pipeline_mode = #tpu.pipeline_mode<synchronous>, transform_indices = @transform_18, window_bounds = array<i64: 2, 32, 32>}, {pipeline_mode = #tpu.pipeline_mode<synchronous>, transform_indices = @transform_19, window_bounds = array<i64: 2, 1, 32>}, {pipeline_mode = #tpu.pipeline_mode<synchronous>, transform_indices = @transform_20, window_bounds = array<i64: 2, 1, 32>}, {pipeline_mode = #tpu.pipeline_mode<synchronous>, transform_indices = @transform_21, window_bounds = array<i64: 2, 1, 32>}, {pipeline_mode = #tpu.pipeline_mode<synchronous>, transform_indices = @transform_22, window_bounds = array<i64: 2, 32, 128>}, {pipeline_mode = #tpu.pipeline_mode<synchronous>, transform_indices = @transform_23, window_bounds = array<i64: 2, 1, 128>}, {pipeline_mode = #tpu.pipeline_mode<synchronous>, transform_indices = @transform_24, window_bounds = array<i64: 2, 128, 32>}, {pipeline_mode = #tpu.pipeline_mode<synchronous>, transform_indices = @transform_25, window_bounds = array<i64: 2, 1, 32>}, {pipeline_mode = #tpu.pipeline_mode<synchronous>, transform_indices = @transform_26, window_bounds = array<i64: 2, 18>}, {pipeline_mode = #tpu.pipeline_mode<synchronous>, transform_indices = @transform_27, window_bounds = array<i64: 1, 32>}, {pipeline_mode = #tpu.pipeline_mode<synchronous>, transform_indices = @transform_28, window_bounds = array<i64: 1, 32>}, {pipeline_mode = #tpu.pipeline_mode<synchronous>, transform_indices = @transform_29, window_bounds = array<i64: 32, 32>}, {pipeline_mode = #tpu.pipeline_mode<synchronous>, transform_indices = @transform_30, window_bounds = array<i64: 32, 32>}, {pipeline_mode = #tpu.pipeline_mode<synchronous>, transform_indices = @transform_31, window_bounds = array<i64: 1, 32>}, {pipeline_mode = #tpu.pipeline_mode<synchronous>, transform_indices = @transform_32, window_bounds = array<i64: 1, 32>}, {pipeline_mode = #tpu.pipeline_mode<synchronous>, transform_indices = @transform_33, window_bounds = array<i64: 1, 32>}, {pipeline_mode = #tpu.pipeline_mode<synchronous>, transform_indices = @transform_34, window_bounds = array<i64: 32, 16>}, {pipeline_mode = #tpu.pipeline_mode<synchronous>, transform_indices = @transform_35, window_bounds = array<i64: 1, 16>}, {pipeline_mode = #tpu.pipeline_mode<synchronous>, transform_indices = @transform_36, window_bounds = array<i64: 16, 2>}, {pipeline_mode = #tpu.pipeline_mode<synchronous>, transform_indices = @transform_37, window_bounds = array<i64: 1, 2>}, {transform_indices = @transform_38, window_bounds = array<i64: 2, 2>}]} {
    %c0 = arith.constant 0 : index
    %c0_0 = arith.constant 0 : index
    %0 = vector.load %arg3[%c0, %c0_0] : memref<128x31xf32, #tpu.memory_space<vmem>>, vector<128x31xf32>
    %c0_1 = arith.constant 0 : index
    %c0_2 = arith.constant 0 : index
    %c0_3 = arith.constant 0 : index
    %1 = vector.load %arg1[%c0_1, %c0_2, %c0_3] : memref<4x2x128xf32, #tpu.memory_space<vmem>>, vector<1x2x128xf32>
    %2 = vector.shape_cast %1 : vector<1x2x128xf32> to vector<2x128xf32>
    %cst = arith.constant dense<0.000000e+00> : vector<2xf32>
    %3 = vector.multi_reduction <add>, %2, %cst [1] : vector<2x128xf32> to vector<2xf32>
    %4 = vector.shape_cast %3 : vector<2xf32> to vector<2x1xf32>
    %cst_4 = arith.constant 1.280000e+02 : f32
    %5 = vector.broadcast %cst_4 : f32 to vector<2x1xf32>
    %6 = arith.divf %4, %5 : vector<2x1xf32>
    %cst_5 = arith.constant dense<0xFF800000> : vector<2xf32>
    %7 = vector.multi_reduction <maximumf>, %2, %cst_5 [1] : vector<2x128xf32> to vector<2xf32>
    %8 = vector.shape_cast %7 : vector<2xf32> to vector<2x1xf32>
    %cst_6 = arith.constant dense<0.000000e+00> : vector<2x31xf32>
    %9 = tpu.matmul %2, %0, %cst_6 {dimension_numbers = #tpu.dot_dimension_numbers<[1], [0], [0], [1], [0, 0, 1, 1], [], []>} : vector<2x128xf32>, vector<128x31xf32>, vector<2x31xf32> -> vector<2x31xf32>
    %c1 = arith.constant 1 : index
    %c0_7 = arith.constant 0 : index
    %c0_8 = arith.constant 0 : index
    %10 = vector.load %arg1[%c1, %c0_7, %c0_8] : memref<4x2x128xf32, #tpu.memory_space<vmem>>, vector<1x2x128xf32>
    %11 = vector.shape_cast %10 : vector<1x2x128xf32> to vector<2x128xf32>
    %cst_9 = arith.constant dense<0.000000e+00> : vector<2xf32>
    %12 = vector.multi_reduction <add>, %11, %cst_9 [1] : vector<2x128xf32> to vector<2xf32>
    %13 = vector.shape_cast %12 : vector<2xf32> to vector<2x1xf32>
    %cst_10 = arith.constant 1.280000e+02 : f32
    %14 = vector.broadcast %cst_10 : f32 to vector<2x1xf32>
    %15 = arith.divf %13, %14 : vector<2x1xf32>
    %cst_11 = arith.constant dense<0xFF800000> : vector<2xf32>
    %16 = vector.multi_reduction <maximumf>, %11, %cst_11 [1] : vector<2x128xf32> to vector<2xf32>
    %17 = vector.shape_cast %16 : vector<2xf32> to vector<2x1xf32>
    %cst_12 = arith.constant dense<0.000000e+00> : vector<2x31xf32>
    %18 = tpu.matmul %11, %0, %cst_12 {dimension_numbers = #tpu.dot_dimension_numbers<[1], [0], [0], [1], [0, 0, 1, 1], [], []>} : vector<2x128xf32>, vector<128x31xf32>, vector<2x31xf32> -> vector<2x31xf32>
    %c2 = arith.constant 2 : index
    %c0_13 = arith.constant 0 : index
    %c0_14 = arith.constant 0 : index
    %19 = vector.load %arg1[%c2, %c0_13, %c0_14] : memref<4x2x128xf32, #tpu.memory_space<vmem>>, vector<1x2x128xf32>
    %20 = vector.shape_cast %19 : vector<1x2x128xf32> to vector<2x128xf32>
    %cst_15 = arith.constant dense<0.000000e+00> : vector<2xf32>
    %21 = vector.multi_reduction <add>, %20, %cst_15 [1] : vector<2x128xf32> to vector<2xf32>
    %22 = vector.shape_cast %21 : vector<2xf32> to vector<2x1xf32>
    %cst_16 = arith.constant 1.280000e+02 : f32
    %23 = vector.broadcast %cst_16 : f32 to vector<2x1xf32>
    %24 = arith.divf %22, %23 : vector<2x1xf32>
    %cst_17 = arith.constant dense<0xFF800000> : vector<2xf32>
    %25 = vector.multi_reduction <maximumf>, %20, %cst_17 [1] : vector<2x128xf32> to vector<2xf32>
    %26 = vector.shape_cast %25 : vector<2xf32> to vector<2x1xf32>
    %cst_18 = arith.constant dense<0.000000e+00> : vector<2x31xf32>
    %27 = tpu.matmul %20, %0, %cst_18 {dimension_numbers = #tpu.dot_dimension_numbers<[1], [0], [0], [1], [0, 0, 1, 1], [], []>} : vector<2x128xf32>, vector<128x31xf32>, vector<2x31xf32> -> vector<2x31xf32>
    %c3 = arith.constant 3 : index
    %c0_19 = arith.constant 0 : index
    %c0_20 = arith.constant 0 : index
    %28 = vector.load %arg1[%c3, %c0_19, %c0_20] : memref<4x2x128xf32, #tpu.memory_space<vmem>>, vector<1x2x128xf32>
    %29 = vector.shape_cast %28 : vector<1x2x128xf32> to vector<2x128xf32>
    %cst_21 = arith.constant dense<0.000000e+00> : vector<2xf32>
    %30 = vector.multi_reduction <add>, %29, %cst_21 [1] : vector<2x128xf32> to vector<2xf32>
    %31 = vector.shape_cast %30 : vector<2xf32> to vector<2x1xf32>
    %cst_22 = arith.constant 1.280000e+02 : f32
    %32 = vector.broadcast %cst_22 : f32 to vector<2x1xf32>
    %33 = arith.divf %31, %32 : vector<2x1xf32>
    %cst_23 = arith.constant dense<0xFF800000> : vector<2xf32>
    %34 = vector.multi_reduction <maximumf>, %29, %cst_23 [1] : vector<2x128xf32> to vector<2xf32>
    %35 = vector.shape_cast %34 : vector<2xf32> to vector<2x1xf32>
    %cst_24 = arith.constant dense<0.000000e+00> : vector<2x31xf32>
    %36 = tpu.matmul %29, %0, %cst_24 {dimension_numbers = #tpu.dot_dimension_numbers<[1], [0], [0], [1], [0, 0, 1, 1], [], []>} : vector<2x128xf32>, vector<128x31xf32>, vector<2x31xf32> -> vector<2x31xf32>
    %37 = tpu.concatenate %6, %15, %24, %33 in 1 : vector<2x1xf32>, vector<2x1xf32>, vector<2x1xf32>, vector<2x1xf32> -> vector<2x4xf32>
    %38 = tpu.concatenate %8, %17, %26, %35 in 1 : vector<2x1xf32>, vector<2x1xf32>, vector<2x1xf32>, vector<2x1xf32> -> vector<2x4xf32>
    %c0_25 = arith.constant 0 : index
    %c0_26 = arith.constant 0 : index
    %39 = vector.load %arg4[%c0_25, %c0_26] : memref<4x1xf32, #tpu.memory_space<vmem>>, vector<4x1xf32>
    %cst_27 = arith.constant dense<0.000000e+00> : vector<2x1xf32>
    %40 = tpu.matmul %37, %39, %cst_27 {dimension_numbers = #tpu.dot_dimension_numbers<[1], [0], [0], [1], [0, 0, 1, 1], [], []>} : vector<2x4xf32>, vector<4x1xf32>, vector<2x1xf32> -> vector<2x1xf32>
    %c0_28 = arith.constant 0 : index
    %c0_29 = arith.constant 0 : index
    %41 = vector.load %arg5[%c0_28, %c0_29] : memref<1x1xf32, #tpu.memory_space<vmem>>, vector<1x1xf32>
    %42 = vector.broadcast %41 : vector<1x1xf32> to vector<2x1xf32>
    %43 = arith.addf %40, %42 : vector<2x1xf32>
    %cst_30 = arith.constant 0.000000e+00 : f32
    %44 = vector.broadcast %cst_30 : f32 to vector<2x1xf32>
    %45 = arith.maximumf %43, %44 : vector<2x1xf32>
    %c0_31 = arith.constant 0 : index
    %c0_32 = arith.constant 0 : index
    %46 = vector.load %arg6[%c0_31, %c0_32] : memref<1x4xf32, #tpu.memory_space<vmem>>, vector<1x4xf32>
    %cst_33 = arith.constant dense<0.000000e+00> : vector<2x4xf32>
    %47 = tpu.matmul %45, %46, %cst_33 {dimension_numbers = #tpu.dot_dimension_numbers<[1], [0], [0], [1], [0, 0, 1, 1], [], []>} : vector<2x1xf32>, vector<1x4xf32>, vector<2x4xf32> -> vector<2x4xf32>
    %c0_34 = arith.constant 0 : index
    %c0_35 = arith.constant 0 : index
    %48 = vector.load %arg7[%c0_34, %c0_35] : memref<1x4xf32, #tpu.memory_space<vmem>>, vector<1x4xf32>
    %49 = vector.broadcast %48 : vector<1x4xf32> to vector<2x4xf32>
    %50 = arith.addf %47, %49 : vector<2x4xf32>
    %cst_36 = arith.constant 0.000000e+00 : f32
    %51 = vector.broadcast %cst_36 : f32 to vector<2x4xf32>
    %52 = arith.subf %51, %50 : vector<2x4xf32>
    %53 = math.exp %52 : vector<2x4xf32>
    %cst_37 = arith.constant 1.000000e+00 : f32
    %54 = vector.broadcast %cst_37 : f32 to vector<2x4xf32>
    %55 = arith.addf %54, %53 : vector<2x4xf32>
    %cst_38 = arith.constant 1.000000e+00 : f32
    %56 = vector.broadcast %cst_38 : f32 to vector<2x4xf32>
    %57 = arith.divf %56, %55 : vector<2x4xf32>
    %c0_39 = arith.constant 0 : index
    %c0_40 = arith.constant 0 : index
    %58 = vector.load %arg4[%c0_39, %c0_40] : memref<4x1xf32, #tpu.memory_space<vmem>>, vector<4x1xf32>
    %cst_41 = arith.constant dense<0.000000e+00> : vector<2x1xf32>
    %59 = tpu.matmul %38, %58, %cst_41 {dimension_numbers = #tpu.dot_dimension_numbers<[1], [0], [0], [1], [0, 0, 1, 1], [], []>} : vector<2x4xf32>, vector<4x1xf32>, vector<2x1xf32> -> vector<2x1xf32>
    %c0_42 = arith.constant 0 : index
    %c0_43 = arith.constant 0 : index
    %60 = vector.load %arg5[%c0_42, %c0_43] : memref<1x1xf32, #tpu.memory_space<vmem>>, vector<1x1xf32>
    %61 = vector.broadcast %60 : vector<1x1xf32> to vector<2x1xf32>
    %62 = arith.addf %59, %61 : vector<2x1xf32>
    %cst_44 = arith.constant 0.000000e+00 : f32
    %63 = vector.broadcast %cst_44 : f32 to vector<2x1xf32>
    %64 = arith.maximumf %62, %63 : vector<2x1xf32>
    %c0_45 = arith.constant 0 : index
    %c0_46 = arith.constant 0 : index
    %65 = vector.load %arg6[%c0_45, %c0_46] : memref<1x4xf32, #tpu.memory_space<vmem>>, vector<1x4xf32>
    %cst_47 = arith.constant dense<0.000000e+00> : vector<2x4xf32>
    %66 = tpu.matmul %64, %65, %cst_47 {dimension_numbers = #tpu.dot_dimension_numbers<[1], [0], [0], [1], [0, 0, 1, 1], [], []>} : vector<2x1xf32>, vector<1x4xf32>, vector<2x4xf32> -> vector<2x4xf32>
    %c0_48 = arith.constant 0 : index
    %c0_49 = arith.constant 0 : index
    %67 = vector.load %arg7[%c0_48, %c0_49] : memref<1x4xf32, #tpu.memory_space<vmem>>, vector<1x4xf32>
    %68 = vector.broadcast %67 : vector<1x4xf32> to vector<2x4xf32>
    %69 = arith.addf %66, %68 : vector<2x4xf32>
    %cst_50 = arith.constant 0.000000e+00 : f32
    %70 = vector.broadcast %cst_50 : f32 to vector<2x4xf32>
    %71 = arith.subf %70, %69 : vector<2x4xf32>
    %72 = math.exp %71 : vector<2x4xf32>
    %cst_51 = arith.constant 1.000000e+00 : f32
    %73 = vector.broadcast %cst_51 : f32 to vector<2x4xf32>
    %74 = arith.addf %73, %72 : vector<2x4xf32>
    %cst_52 = arith.constant 1.000000e+00 : f32
    %75 = vector.broadcast %cst_52 : f32 to vector<2x4xf32>
    %76 = arith.divf %75, %74 : vector<2x4xf32>
    %77 = arith.addf %57, %76 : vector<2x4xf32>
    %cst_53 = arith.constant 0.000000e+00 : f32
    %78 = vector.broadcast %cst_53 : f32 to vector<2x32xf32>
    %79 = vector.extract_strided_slice %77 {offsets = [0, 0], sizes = [2, 1], strides = [1, 1]} : vector<2x4xf32> to vector<2x1xf32>
    %80 = vector.broadcast %79 : vector<2x1xf32> to vector<2x31xf32>
    %81 = arith.mulf %9, %80 : vector<2x31xf32>
    %c0_54 = arith.constant 0 : index
    %c0_55 = arith.constant 0 : index
    %c0_56 = arith.constant 0 : index
    %82 = vector.load %arg8[%c0_54, %c0_55, %c0_56] : memref<4x31x32xf32, #tpu.memory_space<vmem>>, vector<1x31x32xf32>
    %83 = vector.shape_cast %82 : vector<1x31x32xf32> to vector<31x32xf32>
    %cst_57 = arith.constant dense<0.000000e+00> : vector<2x32xf32>
    %84 = tpu.matmul %81, %83, %cst_57 {dimension_numbers = #tpu.dot_dimension_numbers<[1], [0], [0], [1], [0, 0, 1, 1], [], []>} : vector<2x31xf32>, vector<31x32xf32>, vector<2x32xf32> -> vector<2x32xf32>
    %85 = arith.addf %78, %84 : vector<2x32xf32>
    %86 = vector.extract_strided_slice %77 {offsets = [0, 1], sizes = [2, 1], strides = [1, 1]} : vector<2x4xf32> to vector<2x1xf32>
    %87 = vector.broadcast %86 : vector<2x1xf32> to vector<2x31xf32>
    %88 = arith.mulf %18, %87 : vector<2x31xf32>
    %c1_58 = arith.constant 1 : index
    %c0_59 = arith.constant 0 : index
    %c0_60 = arith.constant 0 : index
    %89 = vector.load %arg8[%c1_58, %c0_59, %c0_60] : memref<4x31x32xf32, #tpu.memory_space<vmem>>, vector<1x31x32xf32>
    %90 = vector.shape_cast %89 : vector<1x31x32xf32> to vector<31x32xf32>
    %cst_61 = arith.constant dense<0.000000e+00> : vector<2x32xf32>
    %91 = tpu.matmul %88, %90, %cst_61 {dimension_numbers = #tpu.dot_dimension_numbers<[1], [0], [0], [1], [0, 0, 1, 1], [], []>} : vector<2x31xf32>, vector<31x32xf32>, vector<2x32xf32> -> vector<2x32xf32>
    %92 = arith.addf %85, %91 : vector<2x32xf32>
    %93 = vector.extract_strided_slice %77 {offsets = [0, 2], sizes = [2, 1], strides = [1, 1]} : vector<2x4xf32> to vector<2x1xf32>
    %94 = vector.broadcast %93 : vector<2x1xf32> to vector<2x31xf32>
    %95 = arith.mulf %27, %94 : vector<2x31xf32>
    %c2_62 = arith.constant 2 : index
    %c0_63 = arith.constant 0 : index
    %c0_64 = arith.constant 0 : index
    %96 = vector.load %arg8[%c2_62, %c0_63, %c0_64] : memref<4x31x32xf32, #tpu.memory_space<vmem>>, vector<1x31x32xf32>
    %97 = vector.shape_cast %96 : vector<1x31x32xf32> to vector<31x32xf32>
    %cst_65 = arith.constant dense<0.000000e+00> : vector<2x32xf32>
    %98 = tpu.matmul %95, %97, %cst_65 {dimension_numbers = #tpu.dot_dimension_numbers<[1], [0], [0], [1], [0, 0, 1, 1], [], []>} : vector<2x31xf32>, vector<31x32xf32>, vector<2x32xf32> -> vector<2x32xf32>
    %99 = arith.addf %92, %98 : vector<2x32xf32>
    %100 = vector.extract_strided_slice %77 {offsets = [0, 3], sizes = [2, 1], strides = [1, 1]} : vector<2x4xf32> to vector<2x1xf32>
    %101 = vector.broadcast %100 : vector<2x1xf32> to vector<2x31xf32>
    %102 = arith.mulf %36, %101 : vector<2x31xf32>
    %c3_66 = arith.constant 3 : index
    %c0_67 = arith.constant 0 : index
    %c0_68 = arith.constant 0 : index
    %103 = vector.load %arg8[%c3_66, %c0_67, %c0_68] : memref<4x31x32xf32, #tpu.memory_space<vmem>>, vector<1x31x32xf32>
    %104 = vector.shape_cast %103 : vector<1x31x32xf32> to vector<31x32xf32>
    %cst_69 = arith.constant dense<0.000000e+00> : vector<2x32xf32>
    %105 = tpu.matmul %102, %104, %cst_69 {dimension_numbers = #tpu.dot_dimension_numbers<[1], [0], [0], [1], [0, 0, 1, 1], [], []>} : vector<2x31xf32>, vector<31x32xf32>, vector<2x32xf32> -> vector<2x32xf32>
    %106 = arith.addf %99, %105 : vector<2x32xf32>
    %cst_70 = arith.constant 7.812500e-03 : f32
    %107 = vector.broadcast %cst_70 : f32 to vector<2x32xf32>
    %108 = arith.mulf %106, %107 : vector<2x32xf32>
    %c0_71 = arith.constant 0 : index
    %c0_72 = arith.constant 0 : index
    %109 = vector.load %arg9[%c0_71, %c0_72] : memref<1x32xf32, #tpu.memory_space<vmem>>, vector<1x32xf32>
    %110 = vector.broadcast %109 : vector<1x32xf32> to vector<2x32xf32>
    %111 = arith.addf %108, %110 : vector<2x32xf32>
    %c0_73 = arith.constant 0 : index
    %c0_74 = arith.constant 0 : index
    %112 = vector.load %arg10[%c0_73, %c0_74] : memref<18x2xf32, #tpu.memory_space<vmem>>, vector<18x2xf32>
    %cst_75 = arith.constant dense<0.000000e+00> : vector<18x4xf32>
    %113 = tpu.matmul %112, %77, %cst_75 {dimension_numbers = #tpu.dot_dimension_numbers<[1], [0], [0], [1], [0, 0, 1, 1], [], []>} : vector<18x2xf32>, vector<2x4xf32>, vector<18x4xf32> -> vector<18x4xf32>
    %c0_76 = arith.constant 0 : index
    %c0_77 = arith.constant 0 : index
    %114 = vector.load %arg11[%c0_76, %c0_77] : memref<4x64xf32, #tpu.memory_space<vmem>>, vector<4x64xf32>
    %cst_78 = arith.constant dense<0.000000e+00> : vector<18x64xf32>
    %115 = tpu.matmul %113, %114, %cst_78 {dimension_numbers = #tpu.dot_dimension_numbers<[1], [0], [0], [1], [0, 0, 1, 1], [], []>} : vector<18x4xf32>, vector<4x64xf32>, vector<18x64xf32> -> vector<18x64xf32>
    %c0_79 = arith.constant 0 : index
    %c0_80 = arith.constant 0 : index
    %116 = vector.load %arg2[%c0_79, %c0_80] : memref<18x64xf32, #tpu.memory_space<vmem>>, vector<18x64xf32>
    %117 = arith.mulf %116, %115 : vector<18x64xf32>
    %118 = arith.truncf %117 : vector<18x64xf32> to vector<18x64xbf16>
    %c0_81 = arith.constant 0 : index
    %c0_82 = arith.constant 0 : index
    %119 = vector.load %arg12[%c0_81, %c0_82] : memref<64x32xbf16, #tpu.memory_space<vmem>>, vector<64x32xbf16>
    %cst_83 = arith.constant dense<0.000000e+00> : vector<18x32xf32>
    %120 = tpu.matmul %118, %119, %cst_83 {dimension_numbers = #tpu.dot_dimension_numbers<[1], [0], [0], [1], [0, 0, 1, 1], [], []>} : vector<18x64xbf16>, vector<64x32xbf16>, vector<18x32xf32> -> vector<18x32xf32>
    %c0_84 = arith.constant 0 : index
    %c0_85 = arith.constant 0 : index
    %121 = vector.load %arg13[%c0_84, %c0_85] : memref<18x32xf32, #tpu.memory_space<vmem>>, vector<18x32xf32>
    %122 = arith.addf %120, %121 : vector<18x32xf32>
    %c0_86 = arith.constant 0 : index
    %c0_87 = arith.constant 0 : index
    %123 = vector.load %arg14[%c0_86, %c0_87] : memref<18x18xf32, #tpu.memory_space<vmem>>, vector<18x18xf32>
    %c0_88 = arith.constant 0 : index
    %c0_89 = arith.constant 0 : index
    %c0_90 = arith.constant 0 : index
    %124 = vector.load %arg15[%c0_88, %c0_89, %c0_90] : memref<2x1x32xf32, #tpu.memory_space<vmem>>, vector<1x1x32xf32>
    %125 = vector.shape_cast %124 : vector<1x1x32xf32> to vector<1x32xf32>
    %c0_91 = arith.constant 0 : index
    %c0_92 = arith.constant 0 : index
    %c0_93 = arith.constant 0 : index
    %126 = vector.load %arg16[%c0_91, %c0_92, %c0_93] : memref<2x1x32xf32, #tpu.memory_space<vmem>>, vector<1x1x32xf32>
    %127 = vector.shape_cast %126 : vector<1x1x32xf32> to vector<1x32xf32>
    %cst_94 = arith.constant dense<0.000000e+00> : vector<18xf32>
    %128 = vector.multi_reduction <add>, %122, %cst_94 [1] : vector<18x32xf32> to vector<18xf32>
    %129 = vector.shape_cast %128 : vector<18xf32> to vector<18x1xf32>
    %cst_95 = arith.constant 3.200000e+01 : f32
    %130 = vector.broadcast %cst_95 : f32 to vector<18x1xf32>
    %131 = arith.divf %129, %130 : vector<18x1xf32>
    %132 = vector.broadcast %131 : vector<18x1xf32> to vector<18x32xf32>
    %133 = arith.subf %122, %132 : vector<18x32xf32>
    %134 = arith.mulf %133, %133 : vector<18x32xf32>
    %cst_96 = arith.constant dense<0.000000e+00> : vector<18xf32>
    %135 = vector.multi_reduction <add>, %134, %cst_96 [1] : vector<18x32xf32> to vector<18xf32>
    %136 = vector.shape_cast %135 : vector<18xf32> to vector<18x1xf32>
    %cst_97 = arith.constant 3.200000e+01 : f32
    %137 = vector.broadcast %cst_97 : f32 to vector<18x1xf32>
    %138 = arith.divf %136, %137 : vector<18x1xf32>
    %cst_98 = arith.constant 9.99999974E-6 : f32
    %139 = vector.broadcast %cst_98 : f32 to vector<18x1xf32>
    %140 = arith.addf %138, %139 : vector<18x1xf32>
    %141 = math.rsqrt %140 : vector<18x1xf32>
    %142 = vector.broadcast %141 : vector<18x1xf32> to vector<18x32xf32>
    %143 = arith.mulf %133, %142 : vector<18x32xf32>
    %144 = vector.broadcast %125 : vector<1x32xf32> to vector<18x32xf32>
    %145 = arith.mulf %143, %144 : vector<18x32xf32>
    %146 = vector.broadcast %127 : vector<1x32xf32> to vector<18x32xf32>
    %147 = arith.addf %145, %146 : vector<18x32xf32>
    %148 = arith.truncf %147 : vector<18x32xf32> to vector<18x32xbf16>
    %c0_99 = arith.constant 0 : index
    %c0_100 = arith.constant 0 : index
    %c0_101 = arith.constant 0 : index
    %149 = vector.load %arg17[%c0_99, %c0_100, %c0_101] : memref<2x32x96xbf16, #tpu.memory_space<vmem>>, vector<1x32x96xbf16>
    %150 = vector.shape_cast %149 : vector<1x32x96xbf16> to vector<32x96xbf16>
    %cst_102 = arith.constant dense<0.000000e+00> : vector<18x96xf32>
    %151 = tpu.matmul %148, %150, %cst_102 {dimension_numbers = #tpu.dot_dimension_numbers<[1], [0], [0], [1], [0, 0, 1, 1], [], []>} : vector<18x32xbf16>, vector<32x96xbf16>, vector<18x96xf32> -> vector<18x96xf32>
    %c0_103 = arith.constant 0 : index
    %c0_104 = arith.constant 0 : index
    %c0_105 = arith.constant 0 : index
    %152 = vector.load %arg18[%c0_103, %c0_104, %c0_105] : memref<2x1x96xf32, #tpu.memory_space<vmem>>, vector<1x1x96xf32>
    %153 = vector.shape_cast %152 : vector<1x1x96xf32> to vector<1x96xf32>
    %154 = vector.broadcast %153 : vector<1x96xf32> to vector<18x96xf32>
    %155 = arith.addf %151, %154 : vector<18x96xf32>
    %156 = vector.extract_strided_slice %155 {offsets = [0, 0], sizes = [18, 8], strides = [1, 1]} : vector<18x96xf32> to vector<18x8xf32>
    %157 = vector.extract_strided_slice %155 {offsets = [0, 32], sizes = [18, 8], strides = [1, 1]} : vector<18x96xf32> to vector<18x8xf32>
    %158 = vector.extract_strided_slice %155 {offsets = [0, 64], sizes = [18, 8], strides = [1, 1]} : vector<18x96xf32> to vector<18x8xf32>
    %cst_106 = arith.constant dense<0.000000e+00> : vector<18x18xf32>
    %159 = tpu.matmul %156, %157, %cst_106 {dimension_numbers = #tpu.dot_dimension_numbers<[1], [1], [0], [0], [0, 0, 1, 0], [], []>} : vector<18x8xf32>, vector<18x8xf32>, vector<18x18xf32> -> vector<18x18xf32>
    %cst_107 = arith.constant 0.353553385 : f32
    %160 = vector.broadcast %cst_107 : f32 to vector<18x18xf32>
    %161 = arith.mulf %159, %160 : vector<18x18xf32>
    %162 = arith.addf %161, %123 : vector<18x18xf32>
    %cst_108 = arith.constant dense<0xFF800000> : vector<18xf32>
    %163 = vector.multi_reduction <maximumf>, %162, %cst_108 [1] : vector<18x18xf32> to vector<18xf32>
    %164 = vector.shape_cast %163 : vector<18xf32> to vector<18x1xf32>
    %165 = vector.broadcast %164 : vector<18x1xf32> to vector<18x18xf32>
    %166 = arith.subf %162, %165 : vector<18x18xf32>
    %167 = math.exp %166 : vector<18x18xf32>
    %cst_109 = arith.constant dense<0.000000e+00> : vector<18xf32>
    %168 = vector.multi_reduction <add>, %167, %cst_109 [1] : vector<18x18xf32> to vector<18xf32>
    %169 = vector.shape_cast %168 : vector<18xf32> to vector<18x1xf32>
    %170 = tpu.reciprocal %169 {approx = true} : vector<18x1xf32> -> vector<18x1xf32>
    %171 = vector.broadcast %170 : vector<18x1xf32> to vector<18x18xf32>
    %172 = arith.mulf %167, %171 : vector<18x18xf32>
    %cst_110 = arith.constant dense<0.000000e+00> : vector<18x8xf32>
    %173 = tpu.matmul %172, %158, %cst_110 {dimension_numbers = #tpu.dot_dimension_numbers<[1], [0], [0], [1], [0, 0, 1, 1], [], []>} : vector<18x18xf32>, vector<18x8xf32>, vector<18x8xf32> -> vector<18x8xf32>
    %174 = vector.extract_strided_slice %155 {offsets = [0, 8], sizes = [18, 8], strides = [1, 1]} : vector<18x96xf32> to vector<18x8xf32>
    %175 = vector.extract_strided_slice %155 {offsets = [0, 40], sizes = [18, 8], strides = [1, 1]} : vector<18x96xf32> to vector<18x8xf32>
    %176 = vector.extract_strided_slice %155 {offsets = [0, 72], sizes = [18, 8], strides = [1, 1]} : vector<18x96xf32> to vector<18x8xf32>
    %cst_111 = arith.constant dense<0.000000e+00> : vector<18x18xf32>
    %177 = tpu.matmul %174, %175, %cst_111 {dimension_numbers = #tpu.dot_dimension_numbers<[1], [1], [0], [0], [0, 0, 1, 0], [], []>} : vector<18x8xf32>, vector<18x8xf32>, vector<18x18xf32> -> vector<18x18xf32>
    %cst_112 = arith.constant 0.353553385 : f32
    %178 = vector.broadcast %cst_112 : f32 to vector<18x18xf32>
    %179 = arith.mulf %177, %178 : vector<18x18xf32>
    %180 = arith.addf %179, %123 : vector<18x18xf32>
    %cst_113 = arith.constant dense<0xFF800000> : vector<18xf32>
    %181 = vector.multi_reduction <maximumf>, %180, %cst_113 [1] : vector<18x18xf32> to vector<18xf32>
    %182 = vector.shape_cast %181 : vector<18xf32> to vector<18x1xf32>
    %183 = vector.broadcast %182 : vector<18x1xf32> to vector<18x18xf32>
    %184 = arith.subf %180, %183 : vector<18x18xf32>
    %185 = math.exp %184 : vector<18x18xf32>
    %cst_114 = arith.constant dense<0.000000e+00> : vector<18xf32>
    %186 = vector.multi_reduction <add>, %185, %cst_114 [1] : vector<18x18xf32> to vector<18xf32>
    %187 = vector.shape_cast %186 : vector<18xf32> to vector<18x1xf32>
    %188 = tpu.reciprocal %187 {approx = true} : vector<18x1xf32> -> vector<18x1xf32>
    %189 = vector.broadcast %188 : vector<18x1xf32> to vector<18x18xf32>
    %190 = arith.mulf %185, %189 : vector<18x18xf32>
    %cst_115 = arith.constant dense<0.000000e+00> : vector<18x8xf32>
    %191 = tpu.matmul %190, %176, %cst_115 {dimension_numbers = #tpu.dot_dimension_numbers<[1], [0], [0], [1], [0, 0, 1, 1], [], []>} : vector<18x18xf32>, vector<18x8xf32>, vector<18x8xf32> -> vector<18x8xf32>
    %192 = vector.extract_strided_slice %155 {offsets = [0, 16], sizes = [18, 8], strides = [1, 1]} : vector<18x96xf32> to vector<18x8xf32>
    %193 = vector.extract_strided_slice %155 {offsets = [0, 48], sizes = [18, 8], strides = [1, 1]} : vector<18x96xf32> to vector<18x8xf32>
    %194 = vector.extract_strided_slice %155 {offsets = [0, 80], sizes = [18, 8], strides = [1, 1]} : vector<18x96xf32> to vector<18x8xf32>
    %cst_116 = arith.constant dense<0.000000e+00> : vector<18x18xf32>
    %195 = tpu.matmul %192, %193, %cst_116 {dimension_numbers = #tpu.dot_dimension_numbers<[1], [1], [0], [0], [0, 0, 1, 0], [], []>} : vector<18x8xf32>, vector<18x8xf32>, vector<18x18xf32> -> vector<18x18xf32>
    %cst_117 = arith.constant 0.353553385 : f32
    %196 = vector.broadcast %cst_117 : f32 to vector<18x18xf32>
    %197 = arith.mulf %195, %196 : vector<18x18xf32>
    %198 = arith.addf %197, %123 : vector<18x18xf32>
    %cst_118 = arith.constant dense<0xFF800000> : vector<18xf32>
    %199 = vector.multi_reduction <maximumf>, %198, %cst_118 [1] : vector<18x18xf32> to vector<18xf32>
    %200 = vector.shape_cast %199 : vector<18xf32> to vector<18x1xf32>
    %201 = vector.broadcast %200 : vector<18x1xf32> to vector<18x18xf32>
    %202 = arith.subf %198, %201 : vector<18x18xf32>
    %203 = math.exp %202 : vector<18x18xf32>
    %cst_119 = arith.constant dense<0.000000e+00> : vector<18xf32>
    %204 = vector.multi_reduction <add>, %203, %cst_119 [1] : vector<18x18xf32> to vector<18xf32>
    %205 = vector.shape_cast %204 : vector<18xf32> to vector<18x1xf32>
    %206 = tpu.reciprocal %205 {approx = true} : vector<18x1xf32> -> vector<18x1xf32>
    %207 = vector.broadcast %206 : vector<18x1xf32> to vector<18x18xf32>
    %208 = arith.mulf %203, %207 : vector<18x18xf32>
    %cst_120 = arith.constant dense<0.000000e+00> : vector<18x8xf32>
    %209 = tpu.matmul %208, %194, %cst_120 {dimension_numbers = #tpu.dot_dimension_numbers<[1], [0], [0], [1], [0, 0, 1, 1], [], []>} : vector<18x18xf32>, vector<18x8xf32>, vector<18x8xf32> -> vector<18x8xf32>
    %210 = vector.extract_strided_slice %155 {offsets = [0, 24], sizes = [18, 8], strides = [1, 1]} : vector<18x96xf32> to vector<18x8xf32>
    %211 = vector.extract_strided_slice %155 {offsets = [0, 56], sizes = [18, 8], strides = [1, 1]} : vector<18x96xf32> to vector<18x8xf32>
    %212 = vector.extract_strided_slice %155 {offsets = [0, 88], sizes = [18, 8], strides = [1, 1]} : vector<18x96xf32> to vector<18x8xf32>
    %cst_121 = arith.constant dense<0.000000e+00> : vector<18x18xf32>
    %213 = tpu.matmul %210, %211, %cst_121 {dimension_numbers = #tpu.dot_dimension_numbers<[1], [1], [0], [0], [0, 0, 1, 0], [], []>} : vector<18x8xf32>, vector<18x8xf32>, vector<18x18xf32> -> vector<18x18xf32>
    %cst_122 = arith.constant 0.353553385 : f32
    %214 = vector.broadcast %cst_122 : f32 to vector<18x18xf32>
    %215 = arith.mulf %213, %214 : vector<18x18xf32>
    %216 = arith.addf %215, %123 : vector<18x18xf32>
    %cst_123 = arith.constant dense<0xFF800000> : vector<18xf32>
    %217 = vector.multi_reduction <maximumf>, %216, %cst_123 [1] : vector<18x18xf32> to vector<18xf32>
    %218 = vector.shape_cast %217 : vector<18xf32> to vector<18x1xf32>
    %219 = vector.broadcast %218 : vector<18x1xf32> to vector<18x18xf32>
    %220 = arith.subf %216, %219 : vector<18x18xf32>
    %221 = math.exp %220 : vector<18x18xf32>
    %cst_124 = arith.constant dense<0.000000e+00> : vector<18xf32>
    %222 = vector.multi_reduction <add>, %221, %cst_124 [1] : vector<18x18xf32> to vector<18xf32>
    %223 = vector.shape_cast %222 : vector<18xf32> to vector<18x1xf32>
    %224 = tpu.reciprocal %223 {approx = true} : vector<18x1xf32> -> vector<18x1xf32>
    %225 = vector.broadcast %224 : vector<18x1xf32> to vector<18x18xf32>
    %226 = arith.mulf %221, %225 : vector<18x18xf32>
    %cst_125 = arith.constant dense<0.000000e+00> : vector<18x8xf32>
    %227 = tpu.matmul %226, %212, %cst_125 {dimension_numbers = #tpu.dot_dimension_numbers<[1], [0], [0], [1], [0, 0, 1, 1], [], []>} : vector<18x18xf32>, vector<18x8xf32>, vector<18x8xf32> -> vector<18x8xf32>
    %228 = tpu.concatenate %173, %191, %209, %227 in 1 : vector<18x8xf32>, vector<18x8xf32>, vector<18x8xf32>, vector<18x8xf32> -> vector<18x32xf32>
    %229 = arith.truncf %228 : vector<18x32xf32> to vector<18x32xbf16>
    %c0_126 = arith.constant 0 : index
    %c0_127 = arith.constant 0 : index
    %c0_128 = arith.constant 0 : index
    %230 = vector.load %arg19[%c0_126, %c0_127, %c0_128] : memref<2x32x32xbf16, #tpu.memory_space<vmem>>, vector<1x32x32xbf16>
    %231 = vector.shape_cast %230 : vector<1x32x32xbf16> to vector<32x32xbf16>
    %cst_129 = arith.constant dense<0.000000e+00> : vector<18x32xf32>
    %232 = tpu.matmul %229, %231, %cst_129 {dimension_numbers = #tpu.dot_dimension_numbers<[1], [0], [0], [1], [0, 0, 1, 1], [], []>} : vector<18x32xbf16>, vector<32x32xbf16>, vector<18x32xf32> -> vector<18x32xf32>
    %233 = arith.addf %122, %232 : vector<18x32xf32>
    %c0_130 = arith.constant 0 : index
    %c0_131 = arith.constant 0 : index
    %c0_132 = arith.constant 0 : index
    %234 = vector.load %arg20[%c0_130, %c0_131, %c0_132] : memref<2x1x32xf32, #tpu.memory_space<vmem>>, vector<1x1x32xf32>
    %235 = vector.shape_cast %234 : vector<1x1x32xf32> to vector<1x32xf32>
    %236 = vector.broadcast %235 : vector<1x32xf32> to vector<18x32xf32>
    %237 = arith.addf %233, %236 : vector<18x32xf32>
    %c0_133 = arith.constant 0 : index
    %c0_134 = arith.constant 0 : index
    %c0_135 = arith.constant 0 : index
    %238 = vector.load %arg21[%c0_133, %c0_134, %c0_135] : memref<2x1x32xf32, #tpu.memory_space<vmem>>, vector<1x1x32xf32>
    %239 = vector.shape_cast %238 : vector<1x1x32xf32> to vector<1x32xf32>
    %c0_136 = arith.constant 0 : index
    %c0_137 = arith.constant 0 : index
    %c0_138 = arith.constant 0 : index
    %240 = vector.load %arg22[%c0_136, %c0_137, %c0_138] : memref<2x1x32xf32, #tpu.memory_space<vmem>>, vector<1x1x32xf32>
    %241 = vector.shape_cast %240 : vector<1x1x32xf32> to vector<1x32xf32>
    %cst_139 = arith.constant dense<0.000000e+00> : vector<18xf32>
    %242 = vector.multi_reduction <add>, %237, %cst_139 [1] : vector<18x32xf32> to vector<18xf32>
    %243 = vector.shape_cast %242 : vector<18xf32> to vector<18x1xf32>
    %cst_140 = arith.constant 3.200000e+01 : f32
    %244 = vector.broadcast %cst_140 : f32 to vector<18x1xf32>
    %245 = arith.divf %243, %244 : vector<18x1xf32>
    %246 = vector.broadcast %245 : vector<18x1xf32> to vector<18x32xf32>
    %247 = arith.subf %237, %246 : vector<18x32xf32>
    %248 = arith.mulf %247, %247 : vector<18x32xf32>
    %cst_141 = arith.constant dense<0.000000e+00> : vector<18xf32>
    %249 = vector.multi_reduction <add>, %248, %cst_141 [1] : vector<18x32xf32> to vector<18xf32>
    %250 = vector.shape_cast %249 : vector<18xf32> to vector<18x1xf32>
    %cst_142 = arith.constant 3.200000e+01 : f32
    %251 = vector.broadcast %cst_142 : f32 to vector<18x1xf32>
    %252 = arith.divf %250, %251 : vector<18x1xf32>
    %cst_143 = arith.constant 9.99999974E-6 : f32
    %253 = vector.broadcast %cst_143 : f32 to vector<18x1xf32>
    %254 = arith.addf %252, %253 : vector<18x1xf32>
    %255 = math.rsqrt %254 : vector<18x1xf32>
    %256 = vector.broadcast %255 : vector<18x1xf32> to vector<18x32xf32>
    %257 = arith.mulf %247, %256 : vector<18x32xf32>
    %258 = vector.broadcast %239 : vector<1x32xf32> to vector<18x32xf32>
    %259 = arith.mulf %257, %258 : vector<18x32xf32>
    %260 = vector.broadcast %241 : vector<1x32xf32> to vector<18x32xf32>
    %261 = arith.addf %259, %260 : vector<18x32xf32>
    %262 = arith.truncf %261 : vector<18x32xf32> to vector<18x32xbf16>
    %c0_144 = arith.constant 0 : index
    %c0_145 = arith.constant 0 : index
    %c0_146 = arith.constant 0 : index
    %263 = vector.load %arg23[%c0_144, %c0_145, %c0_146] : memref<2x32x128xbf16, #tpu.memory_space<vmem>>, vector<1x32x128xbf16>
    %264 = vector.shape_cast %263 : vector<1x32x128xbf16> to vector<32x128xbf16>
    %cst_147 = arith.constant dense<0.000000e+00> : vector<18x128xf32>
    %265 = tpu.matmul %262, %264, %cst_147 {dimension_numbers = #tpu.dot_dimension_numbers<[1], [0], [0], [1], [0, 0, 1, 1], [], []>} : vector<18x32xbf16>, vector<32x128xbf16>, vector<18x128xf32> -> vector<18x128xf32>
    %c0_148 = arith.constant 0 : index
    %c0_149 = arith.constant 0 : index
    %c0_150 = arith.constant 0 : index
    %266 = vector.load %arg24[%c0_148, %c0_149, %c0_150] : memref<2x1x128xf32, #tpu.memory_space<vmem>>, vector<1x1x128xf32>
    %267 = vector.shape_cast %266 : vector<1x1x128xf32> to vector<1x128xf32>
    %268 = vector.broadcast %267 : vector<1x128xf32> to vector<18x128xf32>
    %269 = arith.addf %265, %268 : vector<18x128xf32>
    %cst_151 = arith.constant 5.000000e-01 : f32
    %270 = vector.broadcast %cst_151 : f32 to vector<18x128xf32>
    %271 = arith.mulf %270, %269 : vector<18x128xf32>
    %cst_152 = arith.constant 0.707106769 : f32
    %272 = vector.broadcast %cst_152 : f32 to vector<18x128xf32>
    %273 = arith.mulf %269, %272 : vector<18x128xf32>
    %cst_153 = arith.constant 0.000000e+00 : f32
    %274 = vector.broadcast %cst_153 : f32 to vector<18x128xf32>
    %275 = arith.cmpf oge, %273, %274 : vector<18x128xf32>
    %cst_154 = arith.constant 1.000000e+00 : f32
    %cst_155 = arith.constant -1.000000e+00 : f32
    %276 = vector.broadcast %cst_154 : f32 to vector<18x128xf32>
    %277 = vector.broadcast %cst_155 : f32 to vector<18x128xf32>
    %278 = arith.select %275, %276, %277 : vector<18x128xi1>, vector<18x128xf32>
    %279 = math.absf %273 : vector<18x128xf32>
    %cst_156 = arith.constant 0.327591091 : f32
    %280 = vector.broadcast %cst_156 : f32 to vector<18x128xf32>
    %281 = arith.mulf %280, %279 : vector<18x128xf32>
    %cst_157 = arith.constant 1.000000e+00 : f32
    %282 = vector.broadcast %cst_157 : f32 to vector<18x128xf32>
    %283 = arith.addf %282, %281 : vector<18x128xf32>
    %cst_158 = arith.constant 1.000000e+00 : f32
    %284 = vector.broadcast %cst_158 : f32 to vector<18x128xf32>
    %285 = arith.divf %284, %283 : vector<18x128xf32>
    %cst_159 = arith.constant 1.06140542 : f32
    %286 = vector.broadcast %cst_159 : f32 to vector<18x128xf32>
    %287 = arith.mulf %286, %285 : vector<18x128xf32>
    %cst_160 = arith.constant -1.45315206 : f32
    %288 = vector.broadcast %cst_160 : f32 to vector<18x128xf32>
    %289 = arith.addf %287, %288 : vector<18x128xf32>
    %290 = arith.mulf %289, %285 : vector<18x128xf32>
    %cst_161 = arith.constant 1.42141378 : f32
    %291 = vector.broadcast %cst_161 : f32 to vector<18x128xf32>
    %292 = arith.addf %290, %291 : vector<18x128xf32>
    %293 = arith.mulf %292, %285 : vector<18x128xf32>
    %cst_162 = arith.constant -0.284496725 : f32
    %294 = vector.broadcast %cst_162 : f32 to vector<18x128xf32>
    %295 = arith.addf %293, %294 : vector<18x128xf32>
    %296 = arith.mulf %295, %285 : vector<18x128xf32>
    %cst_163 = arith.constant 0.254829586 : f32
    %297 = vector.broadcast %cst_163 : f32 to vector<18x128xf32>
    %298 = arith.addf %296, %297 : vector<18x128xf32>
    %299 = arith.mulf %298, %285 : vector<18x128xf32>
    %cst_164 = arith.constant 0.000000e+00 : f32
    %300 = vector.broadcast %cst_164 : f32 to vector<18x128xf32>
    %301 = arith.subf %300, %279 : vector<18x128xf32>
    %302 = arith.mulf %301, %279 : vector<18x128xf32>
    %303 = math.exp %302 : vector<18x128xf32>
    %304 = arith.mulf %299, %303 : vector<18x128xf32>
    %cst_165 = arith.constant 1.000000e+00 : f32
    %305 = vector.broadcast %cst_165 : f32 to vector<18x128xf32>
    %306 = arith.subf %305, %304 : vector<18x128xf32>
    %307 = arith.mulf %278, %306 : vector<18x128xf32>
    %cst_166 = arith.constant 1.000000e+00 : f32
    %308 = vector.broadcast %cst_166 : f32 to vector<18x128xf32>
    %309 = arith.addf %308, %307 : vector<18x128xf32>
    %310 = arith.mulf %271, %309 : vector<18x128xf32>
    %311 = arith.truncf %310 : vector<18x128xf32> to vector<18x128xbf16>
    %c0_167 = arith.constant 0 : index
    %c0_168 = arith.constant 0 : index
    %c0_169 = arith.constant 0 : index
    %312 = vector.load %arg25[%c0_167, %c0_168, %c0_169] : memref<2x128x32xbf16, #tpu.memory_space<vmem>>, vector<1x128x32xbf16>
    %313 = vector.shape_cast %312 : vector<1x128x32xbf16> to vector<128x32xbf16>
    %cst_170 = arith.constant dense<0.000000e+00> : vector<18x32xf32>
    %314 = tpu.matmul %311, %313, %cst_170 {dimension_numbers = #tpu.dot_dimension_numbers<[1], [0], [0], [1], [0, 0, 1, 1], [], []>} : vector<18x128xbf16>, vector<128x32xbf16>, vector<18x32xf32> -> vector<18x32xf32>
    %315 = arith.addf %237, %314 : vector<18x32xf32>
    %c0_171 = arith.constant 0 : index
    %c0_172 = arith.constant 0 : index
    %c0_173 = arith.constant 0 : index
    %316 = vector.load %arg26[%c0_171, %c0_172, %c0_173] : memref<2x1x32xf32, #tpu.memory_space<vmem>>, vector<1x1x32xf32>
    %317 = vector.shape_cast %316 : vector<1x1x32xf32> to vector<1x32xf32>
    %318 = vector.broadcast %317 : vector<1x32xf32> to vector<18x32xf32>
    %319 = arith.addf %315, %318 : vector<18x32xf32>
    %c1_174 = arith.constant 1 : index
    %c0_175 = arith.constant 0 : index
    %c0_176 = arith.constant 0 : index
    %320 = vector.load %arg15[%c1_174, %c0_175, %c0_176] : memref<2x1x32xf32, #tpu.memory_space<vmem>>, vector<1x1x32xf32>
    %321 = vector.shape_cast %320 : vector<1x1x32xf32> to vector<1x32xf32>
    %c1_177 = arith.constant 1 : index
    %c0_178 = arith.constant 0 : index
    %c0_179 = arith.constant 0 : index
    %322 = vector.load %arg16[%c1_177, %c0_178, %c0_179] : memref<2x1x32xf32, #tpu.memory_space<vmem>>, vector<1x1x32xf32>
    %323 = vector.shape_cast %322 : vector<1x1x32xf32> to vector<1x32xf32>
    %cst_180 = arith.constant dense<0.000000e+00> : vector<18xf32>
    %324 = vector.multi_reduction <add>, %319, %cst_180 [1] : vector<18x32xf32> to vector<18xf32>
    %325 = vector.shape_cast %324 : vector<18xf32> to vector<18x1xf32>
    %cst_181 = arith.constant 3.200000e+01 : f32
    %326 = vector.broadcast %cst_181 : f32 to vector<18x1xf32>
    %327 = arith.divf %325, %326 : vector<18x1xf32>
    %328 = vector.broadcast %327 : vector<18x1xf32> to vector<18x32xf32>
    %329 = arith.subf %319, %328 : vector<18x32xf32>
    %330 = arith.mulf %329, %329 : vector<18x32xf32>
    %cst_182 = arith.constant dense<0.000000e+00> : vector<18xf32>
    %331 = vector.multi_reduction <add>, %330, %cst_182 [1] : vector<18x32xf32> to vector<18xf32>
    %332 = vector.shape_cast %331 : vector<18xf32> to vector<18x1xf32>
    %cst_183 = arith.constant 3.200000e+01 : f32
    %333 = vector.broadcast %cst_183 : f32 to vector<18x1xf32>
    %334 = arith.divf %332, %333 : vector<18x1xf32>
    %cst_184 = arith.constant 9.99999974E-6 : f32
    %335 = vector.broadcast %cst_184 : f32 to vector<18x1xf32>
    %336 = arith.addf %334, %335 : vector<18x1xf32>
    %337 = math.rsqrt %336 : vector<18x1xf32>
    %338 = vector.broadcast %337 : vector<18x1xf32> to vector<18x32xf32>
    %339 = arith.mulf %329, %338 : vector<18x32xf32>
    %340 = vector.broadcast %321 : vector<1x32xf32> to vector<18x32xf32>
    %341 = arith.mulf %339, %340 : vector<18x32xf32>
    %342 = vector.broadcast %323 : vector<1x32xf32> to vector<18x32xf32>
    %343 = arith.addf %341, %342 : vector<18x32xf32>
    %344 = arith.truncf %343 : vector<18x32xf32> to vector<18x32xbf16>
    %c1_185 = arith.constant 1 : index
    %c0_186 = arith.constant 0 : index
    %c0_187 = arith.constant 0 : index
    %345 = vector.load %arg17[%c1_185, %c0_186, %c0_187] : memref<2x32x96xbf16, #tpu.memory_space<vmem>>, vector<1x32x96xbf16>
    %346 = vector.shape_cast %345 : vector<1x32x96xbf16> to vector<32x96xbf16>
    %cst_188 = arith.constant dense<0.000000e+00> : vector<18x96xf32>
    %347 = tpu.matmul %344, %346, %cst_188 {dimension_numbers = #tpu.dot_dimension_numbers<[1], [0], [0], [1], [0, 0, 1, 1], [], []>} : vector<18x32xbf16>, vector<32x96xbf16>, vector<18x96xf32> -> vector<18x96xf32>
    %c1_189 = arith.constant 1 : index
    %c0_190 = arith.constant 0 : index
    %c0_191 = arith.constant 0 : index
    %348 = vector.load %arg18[%c1_189, %c0_190, %c0_191] : memref<2x1x96xf32, #tpu.memory_space<vmem>>, vector<1x1x96xf32>
    %349 = vector.shape_cast %348 : vector<1x1x96xf32> to vector<1x96xf32>
    %350 = vector.broadcast %349 : vector<1x96xf32> to vector<18x96xf32>
    %351 = arith.addf %347, %350 : vector<18x96xf32>
    %352 = vector.extract_strided_slice %351 {offsets = [0, 0], sizes = [18, 8], strides = [1, 1]} : vector<18x96xf32> to vector<18x8xf32>
    %353 = vector.extract_strided_slice %351 {offsets = [0, 32], sizes = [18, 8], strides = [1, 1]} : vector<18x96xf32> to vector<18x8xf32>
    %354 = vector.extract_strided_slice %351 {offsets = [0, 64], sizes = [18, 8], strides = [1, 1]} : vector<18x96xf32> to vector<18x8xf32>
    %cst_192 = arith.constant dense<0.000000e+00> : vector<18x18xf32>
    %355 = tpu.matmul %352, %353, %cst_192 {dimension_numbers = #tpu.dot_dimension_numbers<[1], [1], [0], [0], [0, 0, 1, 0], [], []>} : vector<18x8xf32>, vector<18x8xf32>, vector<18x18xf32> -> vector<18x18xf32>
    %cst_193 = arith.constant 0.353553385 : f32
    %356 = vector.broadcast %cst_193 : f32 to vector<18x18xf32>
    %357 = arith.mulf %355, %356 : vector<18x18xf32>
    %358 = arith.addf %357, %123 : vector<18x18xf32>
    %cst_194 = arith.constant dense<0xFF800000> : vector<18xf32>
    %359 = vector.multi_reduction <maximumf>, %358, %cst_194 [1] : vector<18x18xf32> to vector<18xf32>
    %360 = vector.shape_cast %359 : vector<18xf32> to vector<18x1xf32>
    %361 = vector.broadcast %360 : vector<18x1xf32> to vector<18x18xf32>
    %362 = arith.subf %358, %361 : vector<18x18xf32>
    %363 = math.exp %362 : vector<18x18xf32>
    %cst_195 = arith.constant dense<0.000000e+00> : vector<18xf32>
    %364 = vector.multi_reduction <add>, %363, %cst_195 [1] : vector<18x18xf32> to vector<18xf32>
    %365 = vector.shape_cast %364 : vector<18xf32> to vector<18x1xf32>
    %366 = tpu.reciprocal %365 {approx = true} : vector<18x1xf32> -> vector<18x1xf32>
    %367 = vector.broadcast %366 : vector<18x1xf32> to vector<18x18xf32>
    %368 = arith.mulf %363, %367 : vector<18x18xf32>
    %cst_196 = arith.constant dense<0.000000e+00> : vector<18x8xf32>
    %369 = tpu.matmul %368, %354, %cst_196 {dimension_numbers = #tpu.dot_dimension_numbers<[1], [0], [0], [1], [0, 0, 1, 1], [], []>} : vector<18x18xf32>, vector<18x8xf32>, vector<18x8xf32> -> vector<18x8xf32>
    %370 = vector.extract_strided_slice %351 {offsets = [0, 8], sizes = [18, 8], strides = [1, 1]} : vector<18x96xf32> to vector<18x8xf32>
    %371 = vector.extract_strided_slice %351 {offsets = [0, 40], sizes = [18, 8], strides = [1, 1]} : vector<18x96xf32> to vector<18x8xf32>
    %372 = vector.extract_strided_slice %351 {offsets = [0, 72], sizes = [18, 8], strides = [1, 1]} : vector<18x96xf32> to vector<18x8xf32>
    %cst_197 = arith.constant dense<0.000000e+00> : vector<18x18xf32>
    %373 = tpu.matmul %370, %371, %cst_197 {dimension_numbers = #tpu.dot_dimension_numbers<[1], [1], [0], [0], [0, 0, 1, 0], [], []>} : vector<18x8xf32>, vector<18x8xf32>, vector<18x18xf32> -> vector<18x18xf32>
    %cst_198 = arith.constant 0.353553385 : f32
    %374 = vector.broadcast %cst_198 : f32 to vector<18x18xf32>
    %375 = arith.mulf %373, %374 : vector<18x18xf32>
    %376 = arith.addf %375, %123 : vector<18x18xf32>
    %cst_199 = arith.constant dense<0xFF800000> : vector<18xf32>
    %377 = vector.multi_reduction <maximumf>, %376, %cst_199 [1] : vector<18x18xf32> to vector<18xf32>
    %378 = vector.shape_cast %377 : vector<18xf32> to vector<18x1xf32>
    %379 = vector.broadcast %378 : vector<18x1xf32> to vector<18x18xf32>
    %380 = arith.subf %376, %379 : vector<18x18xf32>
    %381 = math.exp %380 : vector<18x18xf32>
    %cst_200 = arith.constant dense<0.000000e+00> : vector<18xf32>
    %382 = vector.multi_reduction <add>, %381, %cst_200 [1] : vector<18x18xf32> to vector<18xf32>
    %383 = vector.shape_cast %382 : vector<18xf32> to vector<18x1xf32>
    %384 = tpu.reciprocal %383 {approx = true} : vector<18x1xf32> -> vector<18x1xf32>
    %385 = vector.broadcast %384 : vector<18x1xf32> to vector<18x18xf32>
    %386 = arith.mulf %381, %385 : vector<18x18xf32>
    %cst_201 = arith.constant dense<0.000000e+00> : vector<18x8xf32>
    %387 = tpu.matmul %386, %372, %cst_201 {dimension_numbers = #tpu.dot_dimension_numbers<[1], [0], [0], [1], [0, 0, 1, 1], [], []>} : vector<18x18xf32>, vector<18x8xf32>, vector<18x8xf32> -> vector<18x8xf32>
    %388 = vector.extract_strided_slice %351 {offsets = [0, 16], sizes = [18, 8], strides = [1, 1]} : vector<18x96xf32> to vector<18x8xf32>
    %389 = vector.extract_strided_slice %351 {offsets = [0, 48], sizes = [18, 8], strides = [1, 1]} : vector<18x96xf32> to vector<18x8xf32>
    %390 = vector.extract_strided_slice %351 {offsets = [0, 80], sizes = [18, 8], strides = [1, 1]} : vector<18x96xf32> to vector<18x8xf32>
    %cst_202 = arith.constant dense<0.000000e+00> : vector<18x18xf32>
    %391 = tpu.matmul %388, %389, %cst_202 {dimension_numbers = #tpu.dot_dimension_numbers<[1], [1], [0], [0], [0, 0, 1, 0], [], []>} : vector<18x8xf32>, vector<18x8xf32>, vector<18x18xf32> -> vector<18x18xf32>
    %cst_203 = arith.constant 0.353553385 : f32
    %392 = vector.broadcast %cst_203 : f32 to vector<18x18xf32>
    %393 = arith.mulf %391, %392 : vector<18x18xf32>
    %394 = arith.addf %393, %123 : vector<18x18xf32>
    %cst_204 = arith.constant dense<0xFF800000> : vector<18xf32>
    %395 = vector.multi_reduction <maximumf>, %394, %cst_204 [1] : vector<18x18xf32> to vector<18xf32>
    %396 = vector.shape_cast %395 : vector<18xf32> to vector<18x1xf32>
    %397 = vector.broadcast %396 : vector<18x1xf32> to vector<18x18xf32>
    %398 = arith.subf %394, %397 : vector<18x18xf32>
    %399 = math.exp %398 : vector<18x18xf32>
    %cst_205 = arith.constant dense<0.000000e+00> : vector<18xf32>
    %400 = vector.multi_reduction <add>, %399, %cst_205 [1] : vector<18x18xf32> to vector<18xf32>
    %401 = vector.shape_cast %400 : vector<18xf32> to vector<18x1xf32>
    %402 = tpu.reciprocal %401 {approx = true} : vector<18x1xf32> -> vector<18x1xf32>
    %403 = vector.broadcast %402 : vector<18x1xf32> to vector<18x18xf32>
    %404 = arith.mulf %399, %403 : vector<18x18xf32>
    %cst_206 = arith.constant dense<0.000000e+00> : vector<18x8xf32>
    %405 = tpu.matmul %404, %390, %cst_206 {dimension_numbers = #tpu.dot_dimension_numbers<[1], [0], [0], [1], [0, 0, 1, 1], [], []>} : vector<18x18xf32>, vector<18x8xf32>, vector<18x8xf32> -> vector<18x8xf32>
    %406 = vector.extract_strided_slice %351 {offsets = [0, 24], sizes = [18, 8], strides = [1, 1]} : vector<18x96xf32> to vector<18x8xf32>
    %407 = vector.extract_strided_slice %351 {offsets = [0, 56], sizes = [18, 8], strides = [1, 1]} : vector<18x96xf32> to vector<18x8xf32>
    %408 = vector.extract_strided_slice %351 {offsets = [0, 88], sizes = [18, 8], strides = [1, 1]} : vector<18x96xf32> to vector<18x8xf32>
    %cst_207 = arith.constant dense<0.000000e+00> : vector<18x18xf32>
    %409 = tpu.matmul %406, %407, %cst_207 {dimension_numbers = #tpu.dot_dimension_numbers<[1], [1], [0], [0], [0, 0, 1, 0], [], []>} : vector<18x8xf32>, vector<18x8xf32>, vector<18x18xf32> -> vector<18x18xf32>
    %cst_208 = arith.constant 0.353553385 : f32
    %410 = vector.broadcast %cst_208 : f32 to vector<18x18xf32>
    %411 = arith.mulf %409, %410 : vector<18x18xf32>
    %412 = arith.addf %411, %123 : vector<18x18xf32>
    %cst_209 = arith.constant dense<0xFF800000> : vector<18xf32>
    %413 = vector.multi_reduction <maximumf>, %412, %cst_209 [1] : vector<18x18xf32> to vector<18xf32>
    %414 = vector.shape_cast %413 : vector<18xf32> to vector<18x1xf32>
    %415 = vector.broadcast %414 : vector<18x1xf32> to vector<18x18xf32>
    %416 = arith.subf %412, %415 : vector<18x18xf32>
    %417 = math.exp %416 : vector<18x18xf32>
    %cst_210 = arith.constant dense<0.000000e+00> : vector<18xf32>
    %418 = vector.multi_reduction <add>, %417, %cst_210 [1] : vector<18x18xf32> to vector<18xf32>
    %419 = vector.shape_cast %418 : vector<18xf32> to vector<18x1xf32>
    %420 = tpu.reciprocal %419 {approx = true} : vector<18x1xf32> -> vector<18x1xf32>
    %421 = vector.broadcast %420 : vector<18x1xf32> to vector<18x18xf32>
    %422 = arith.mulf %417, %421 : vector<18x18xf32>
    %cst_211 = arith.constant dense<0.000000e+00> : vector<18x8xf32>
    %423 = tpu.matmul %422, %408, %cst_211 {dimension_numbers = #tpu.dot_dimension_numbers<[1], [0], [0], [1], [0, 0, 1, 1], [], []>} : vector<18x18xf32>, vector<18x8xf32>, vector<18x8xf32> -> vector<18x8xf32>
    %424 = tpu.concatenate %369, %387, %405, %423 in 1 : vector<18x8xf32>, vector<18x8xf32>, vector<18x8xf32>, vector<18x8xf32> -> vector<18x32xf32>
    %425 = arith.truncf %424 : vector<18x32xf32> to vector<18x32xbf16>
    %c1_212 = arith.constant 1 : index
    %c0_213 = arith.constant 0 : index
    %c0_214 = arith.constant 0 : index
    %426 = vector.load %arg19[%c1_212, %c0_213, %c0_214] : memref<2x32x32xbf16, #tpu.memory_space<vmem>>, vector<1x32x32xbf16>
    %427 = vector.shape_cast %426 : vector<1x32x32xbf16> to vector<32x32xbf16>
    %cst_215 = arith.constant dense<0.000000e+00> : vector<18x32xf32>
    %428 = tpu.matmul %425, %427, %cst_215 {dimension_numbers = #tpu.dot_dimension_numbers<[1], [0], [0], [1], [0, 0, 1, 1], [], []>} : vector<18x32xbf16>, vector<32x32xbf16>, vector<18x32xf32> -> vector<18x32xf32>
    %429 = arith.addf %319, %428 : vector<18x32xf32>
    %c1_216 = arith.constant 1 : index
    %c0_217 = arith.constant 0 : index
    %c0_218 = arith.constant 0 : index
    %430 = vector.load %arg20[%c1_216, %c0_217, %c0_218] : memref<2x1x32xf32, #tpu.memory_space<vmem>>, vector<1x1x32xf32>
    %431 = vector.shape_cast %430 : vector<1x1x32xf32> to vector<1x32xf32>
    %432 = vector.broadcast %431 : vector<1x32xf32> to vector<18x32xf32>
    %433 = arith.addf %429, %432 : vector<18x32xf32>
    %c1_219 = arith.constant 1 : index
    %c0_220 = arith.constant 0 : index
    %c0_221 = arith.constant 0 : index
    %434 = vector.load %arg21[%c1_219, %c0_220, %c0_221] : memref<2x1x32xf32, #tpu.memory_space<vmem>>, vector<1x1x32xf32>
    %435 = vector.shape_cast %434 : vector<1x1x32xf32> to vector<1x32xf32>
    %c1_222 = arith.constant 1 : index
    %c0_223 = arith.constant 0 : index
    %c0_224 = arith.constant 0 : index
    %436 = vector.load %arg22[%c1_222, %c0_223, %c0_224] : memref<2x1x32xf32, #tpu.memory_space<vmem>>, vector<1x1x32xf32>
    %437 = vector.shape_cast %436 : vector<1x1x32xf32> to vector<1x32xf32>
    %cst_225 = arith.constant dense<0.000000e+00> : vector<18xf32>
    %438 = vector.multi_reduction <add>, %433, %cst_225 [1] : vector<18x32xf32> to vector<18xf32>
    %439 = vector.shape_cast %438 : vector<18xf32> to vector<18x1xf32>
    %cst_226 = arith.constant 3.200000e+01 : f32
    %440 = vector.broadcast %cst_226 : f32 to vector<18x1xf32>
    %441 = arith.divf %439, %440 : vector<18x1xf32>
    %442 = vector.broadcast %441 : vector<18x1xf32> to vector<18x32xf32>
    %443 = arith.subf %433, %442 : vector<18x32xf32>
    %444 = arith.mulf %443, %443 : vector<18x32xf32>
    %cst_227 = arith.constant dense<0.000000e+00> : vector<18xf32>
    %445 = vector.multi_reduction <add>, %444, %cst_227 [1] : vector<18x32xf32> to vector<18xf32>
    %446 = vector.shape_cast %445 : vector<18xf32> to vector<18x1xf32>
    %cst_228 = arith.constant 3.200000e+01 : f32
    %447 = vector.broadcast %cst_228 : f32 to vector<18x1xf32>
    %448 = arith.divf %446, %447 : vector<18x1xf32>
    %cst_229 = arith.constant 9.99999974E-6 : f32
    %449 = vector.broadcast %cst_229 : f32 to vector<18x1xf32>
    %450 = arith.addf %448, %449 : vector<18x1xf32>
    %451 = math.rsqrt %450 : vector<18x1xf32>
    %452 = vector.broadcast %451 : vector<18x1xf32> to vector<18x32xf32>
    %453 = arith.mulf %443, %452 : vector<18x32xf32>
    %454 = vector.broadcast %435 : vector<1x32xf32> to vector<18x32xf32>
    %455 = arith.mulf %453, %454 : vector<18x32xf32>
    %456 = vector.broadcast %437 : vector<1x32xf32> to vector<18x32xf32>
    %457 = arith.addf %455, %456 : vector<18x32xf32>
    %458 = arith.truncf %457 : vector<18x32xf32> to vector<18x32xbf16>
    %c1_230 = arith.constant 1 : index
    %c0_231 = arith.constant 0 : index
    %c0_232 = arith.constant 0 : index
    %459 = vector.load %arg23[%c1_230, %c0_231, %c0_232] : memref<2x32x128xbf16, #tpu.memory_space<vmem>>, vector<1x32x128xbf16>
    %460 = vector.shape_cast %459 : vector<1x32x128xbf16> to vector<32x128xbf16>
    %cst_233 = arith.constant dense<0.000000e+00> : vector<18x128xf32>
    %461 = tpu.matmul %458, %460, %cst_233 {dimension_numbers = #tpu.dot_dimension_numbers<[1], [0], [0], [1], [0, 0, 1, 1], [], []>} : vector<18x32xbf16>, vector<32x128xbf16>, vector<18x128xf32> -> vector<18x128xf32>
    %c1_234 = arith.constant 1 : index
    %c0_235 = arith.constant 0 : index
    %c0_236 = arith.constant 0 : index
    %462 = vector.load %arg24[%c1_234, %c0_235, %c0_236] : memref<2x1x128xf32, #tpu.memory_space<vmem>>, vector<1x1x128xf32>
    %463 = vector.shape_cast %462 : vector<1x1x128xf32> to vector<1x128xf32>
    %464 = vector.broadcast %463 : vector<1x128xf32> to vector<18x128xf32>
    %465 = arith.addf %461, %464 : vector<18x128xf32>
    %cst_237 = arith.constant 5.000000e-01 : f32
    %466 = vector.broadcast %cst_237 : f32 to vector<18x128xf32>
    %467 = arith.mulf %466, %465 : vector<18x128xf32>
    %cst_238 = arith.constant 0.707106769 : f32
    %468 = vector.broadcast %cst_238 : f32 to vector<18x128xf32>
    %469 = arith.mulf %465, %468 : vector<18x128xf32>
    %cst_239 = arith.constant 0.000000e+00 : f32
    %470 = vector.broadcast %cst_239 : f32 to vector<18x128xf32>
    %471 = arith.cmpf oge, %469, %470 : vector<18x128xf32>
    %cst_240 = arith.constant 1.000000e+00 : f32
    %cst_241 = arith.constant -1.000000e+00 : f32
    %472 = vector.broadcast %cst_240 : f32 to vector<18x128xf32>
    %473 = vector.broadcast %cst_241 : f32 to vector<18x128xf32>
    %474 = arith.select %471, %472, %473 : vector<18x128xi1>, vector<18x128xf32>
    %475 = math.absf %469 : vector<18x128xf32>
    %cst_242 = arith.constant 0.327591091 : f32
    %476 = vector.broadcast %cst_242 : f32 to vector<18x128xf32>
    %477 = arith.mulf %476, %475 : vector<18x128xf32>
    %cst_243 = arith.constant 1.000000e+00 : f32
    %478 = vector.broadcast %cst_243 : f32 to vector<18x128xf32>
    %479 = arith.addf %478, %477 : vector<18x128xf32>
    %cst_244 = arith.constant 1.000000e+00 : f32
    %480 = vector.broadcast %cst_244 : f32 to vector<18x128xf32>
    %481 = arith.divf %480, %479 : vector<18x128xf32>
    %cst_245 = arith.constant 1.06140542 : f32
    %482 = vector.broadcast %cst_245 : f32 to vector<18x128xf32>
    %483 = arith.mulf %482, %481 : vector<18x128xf32>
    %cst_246 = arith.constant -1.45315206 : f32
    %484 = vector.broadcast %cst_246 : f32 to vector<18x128xf32>
    %485 = arith.addf %483, %484 : vector<18x128xf32>
    %486 = arith.mulf %485, %481 : vector<18x128xf32>
    %cst_247 = arith.constant 1.42141378 : f32
    %487 = vector.broadcast %cst_247 : f32 to vector<18x128xf32>
    %488 = arith.addf %486, %487 : vector<18x128xf32>
    %489 = arith.mulf %488, %481 : vector<18x128xf32>
    %cst_248 = arith.constant -0.284496725 : f32
    %490 = vector.broadcast %cst_248 : f32 to vector<18x128xf32>
    %491 = arith.addf %489, %490 : vector<18x128xf32>
    %492 = arith.mulf %491, %481 : vector<18x128xf32>
    %cst_249 = arith.constant 0.254829586 : f32
    %493 = vector.broadcast %cst_249 : f32 to vector<18x128xf32>
    %494 = arith.addf %492, %493 : vector<18x128xf32>
    %495 = arith.mulf %494, %481 : vector<18x128xf32>
    %cst_250 = arith.constant 0.000000e+00 : f32
    %496 = vector.broadcast %cst_250 : f32 to vector<18x128xf32>
    %497 = arith.subf %496, %475 : vector<18x128xf32>
    %498 = arith.mulf %497, %475 : vector<18x128xf32>
    %499 = math.exp %498 : vector<18x128xf32>
    %500 = arith.mulf %495, %499 : vector<18x128xf32>
    %cst_251 = arith.constant 1.000000e+00 : f32
    %501 = vector.broadcast %cst_251 : f32 to vector<18x128xf32>
    %502 = arith.subf %501, %500 : vector<18x128xf32>
    %503 = arith.mulf %474, %502 : vector<18x128xf32>
    %cst_252 = arith.constant 1.000000e+00 : f32
    %504 = vector.broadcast %cst_252 : f32 to vector<18x128xf32>
    %505 = arith.addf %504, %503 : vector<18x128xf32>
    %506 = arith.mulf %467, %505 : vector<18x128xf32>
    %507 = arith.truncf %506 : vector<18x128xf32> to vector<18x128xbf16>
    %c1_253 = arith.constant 1 : index
    %c0_254 = arith.constant 0 : index
    %c0_255 = arith.constant 0 : index
    %508 = vector.load %arg25[%c1_253, %c0_254, %c0_255] : memref<2x128x32xbf16, #tpu.memory_space<vmem>>, vector<1x128x32xbf16>
    %509 = vector.shape_cast %508 : vector<1x128x32xbf16> to vector<128x32xbf16>
    %cst_256 = arith.constant dense<0.000000e+00> : vector<18x32xf32>
    %510 = tpu.matmul %507, %509, %cst_256 {dimension_numbers = #tpu.dot_dimension_numbers<[1], [0], [0], [1], [0, 0, 1, 1], [], []>} : vector<18x128xbf16>, vector<128x32xbf16>, vector<18x32xf32> -> vector<18x32xf32>
    %511 = arith.addf %433, %510 : vector<18x32xf32>
    %c1_257 = arith.constant 1 : index
    %c0_258 = arith.constant 0 : index
    %c0_259 = arith.constant 0 : index
    %512 = vector.load %arg26[%c1_257, %c0_258, %c0_259] : memref<2x1x32xf32, #tpu.memory_space<vmem>>, vector<1x1x32xf32>
    %513 = vector.shape_cast %512 : vector<1x1x32xf32> to vector<1x32xf32>
    %514 = vector.broadcast %513 : vector<1x32xf32> to vector<18x32xf32>
    %515 = arith.addf %511, %514 : vector<18x32xf32>
    %c0_260 = arith.constant 0 : index
    %c0_261 = arith.constant 0 : index
    %516 = vector.load %arg27[%c0_260, %c0_261] : memref<2x18xf32, #tpu.memory_space<vmem>>, vector<2x18xf32>
    %cst_262 = arith.constant dense<0.000000e+00> : vector<2x32xf32>
    %517 = tpu.matmul %516, %515, %cst_262 {dimension_numbers = #tpu.dot_dimension_numbers<[1], [0], [0], [1], [0, 0, 1, 1], [], []>} : vector<2x18xf32>, vector<18x32xf32>, vector<2x32xf32> -> vector<2x32xf32>
    %c0_263 = arith.constant 0 : index
    %c0_264 = arith.constant 0 : index
    %518 = vector.load %arg28[%c0_263, %c0_264] : memref<1x32xf32, #tpu.memory_space<vmem>>, vector<1x32xf32>
    %c0_265 = arith.constant 0 : index
    %c0_266 = arith.constant 0 : index
    %519 = vector.load %arg29[%c0_265, %c0_266] : memref<1x32xf32, #tpu.memory_space<vmem>>, vector<1x32xf32>
    %cst_267 = arith.constant dense<0.000000e+00> : vector<2xf32>
    %520 = vector.multi_reduction <add>, %517, %cst_267 [1] : vector<2x32xf32> to vector<2xf32>
    %521 = vector.shape_cast %520 : vector<2xf32> to vector<2x1xf32>
    %cst_268 = arith.constant 3.200000e+01 : f32
    %522 = vector.broadcast %cst_268 : f32 to vector<2x1xf32>
    %523 = arith.divf %521, %522 : vector<2x1xf32>
    %524 = vector.broadcast %523 : vector<2x1xf32> to vector<2x32xf32>
    %525 = arith.subf %517, %524 : vector<2x32xf32>
    %526 = arith.mulf %525, %525 : vector<2x32xf32>
    %cst_269 = arith.constant dense<0.000000e+00> : vector<2xf32>
    %527 = vector.multi_reduction <add>, %526, %cst_269 [1] : vector<2x32xf32> to vector<2xf32>
    %528 = vector.shape_cast %527 : vector<2xf32> to vector<2x1xf32>
    %cst_270 = arith.constant 3.200000e+01 : f32
    %529 = vector.broadcast %cst_270 : f32 to vector<2x1xf32>
    %530 = arith.divf %528, %529 : vector<2x1xf32>
    %cst_271 = arith.constant 9.99999974E-6 : f32
    %531 = vector.broadcast %cst_271 : f32 to vector<2x1xf32>
    %532 = arith.addf %530, %531 : vector<2x1xf32>
    %533 = math.rsqrt %532 : vector<2x1xf32>
    %534 = vector.broadcast %533 : vector<2x1xf32> to vector<2x32xf32>
    %535 = arith.mulf %525, %534 : vector<2x32xf32>
    %536 = vector.broadcast %518 : vector<1x32xf32> to vector<2x32xf32>
    %537 = arith.mulf %535, %536 : vector<2x32xf32>
    %538 = vector.broadcast %519 : vector<1x32xf32> to vector<2x32xf32>
    %539 = arith.addf %537, %538 : vector<2x32xf32>
    %c0_272 = arith.constant 0 : index
    %c0_273 = arith.constant 0 : index
    %540 = vector.load %arg30[%c0_272, %c0_273] : memref<32x32xf32, #tpu.memory_space<vmem>>, vector<32x32xf32>
    %cst_274 = arith.constant dense<0.000000e+00> : vector<2x32xf32>
    %541 = tpu.matmul %539, %540, %cst_274 {dimension_numbers = #tpu.dot_dimension_numbers<[1], [0], [0], [1], [0, 0, 1, 1], [], []>} : vector<2x32xf32>, vector<32x32xf32>, vector<2x32xf32> -> vector<2x32xf32>
    %c0_275 = arith.constant 0 : index
    %c0_276 = arith.constant 0 : index
    %542 = vector.load %arg31[%c0_275, %c0_276] : memref<32x32xf32, #tpu.memory_space<vmem>>, vector<32x32xf32>
    %cst_277 = arith.constant dense<0.000000e+00> : vector<2x32xf32>
    %543 = tpu.matmul %111, %542, %cst_277 {dimension_numbers = #tpu.dot_dimension_numbers<[1], [0], [0], [1], [0, 0, 1, 1], [], []>} : vector<2x32xf32>, vector<32x32xf32>, vector<2x32xf32> -> vector<2x32xf32>
    %544 = arith.addf %541, %543 : vector<2x32xf32>
    %c0_278 = arith.constant 0 : index
    %c0_279 = arith.constant 0 : index
    %545 = vector.load %arg32[%c0_278, %c0_279] : memref<1x32xf32, #tpu.memory_space<vmem>>, vector<1x32xf32>
    %546 = vector.broadcast %545 : vector<1x32xf32> to vector<2x32xf32>
    %547 = arith.addf %544, %546 : vector<2x32xf32>
    %548 = arith.addf %547, %111 : vector<2x32xf32>
    %c0_280 = arith.constant 0 : index
    %c0_281 = arith.constant 0 : index
    %549 = vector.load %arg33[%c0_280, %c0_281] : memref<1x32xf32, #tpu.memory_space<vmem>>, vector<1x32xf32>
    %c0_282 = arith.constant 0 : index
    %c0_283 = arith.constant 0 : index
    %550 = vector.load %arg34[%c0_282, %c0_283] : memref<1x32xf32, #tpu.memory_space<vmem>>, vector<1x32xf32>
    %cst_284 = arith.constant dense<0.000000e+00> : vector<2xf32>
    %551 = vector.multi_reduction <add>, %548, %cst_284 [1] : vector<2x32xf32> to vector<2xf32>
    %552 = vector.shape_cast %551 : vector<2xf32> to vector<2x1xf32>
    %cst_285 = arith.constant 3.200000e+01 : f32
    %553 = vector.broadcast %cst_285 : f32 to vector<2x1xf32>
    %554 = arith.divf %552, %553 : vector<2x1xf32>
    %555 = vector.broadcast %554 : vector<2x1xf32> to vector<2x32xf32>
    %556 = arith.subf %548, %555 : vector<2x32xf32>
    %557 = arith.mulf %556, %556 : vector<2x32xf32>
    %cst_286 = arith.constant dense<0.000000e+00> : vector<2xf32>
    %558 = vector.multi_reduction <add>, %557, %cst_286 [1] : vector<2x32xf32> to vector<2xf32>
    %559 = vector.shape_cast %558 : vector<2xf32> to vector<2x1xf32>
    %cst_287 = arith.constant 3.200000e+01 : f32
    %560 = vector.broadcast %cst_287 : f32 to vector<2x1xf32>
    %561 = arith.divf %559, %560 : vector<2x1xf32>
    %cst_288 = arith.constant 9.99999974E-6 : f32
    %562 = vector.broadcast %cst_288 : f32 to vector<2x1xf32>
    %563 = arith.addf %561, %562 : vector<2x1xf32>
    %564 = math.rsqrt %563 : vector<2x1xf32>
    %565 = vector.broadcast %564 : vector<2x1xf32> to vector<2x32xf32>
    %566 = arith.mulf %556, %565 : vector<2x32xf32>
    %567 = vector.broadcast %549 : vector<1x32xf32> to vector<2x32xf32>
    %568 = arith.mulf %566, %567 : vector<2x32xf32>
    %569 = vector.broadcast %550 : vector<1x32xf32> to vector<2x32xf32>
    %570 = arith.addf %568, %569 : vector<2x32xf32>
    %c0_289 = arith.constant 0 : index
    %c0_290 = arith.constant 0 : index
    %571 = vector.load %arg35[%c0_289, %c0_290] : memref<32x16xf32, #tpu.memory_space<vmem>>, vector<32x16xf32>
    %cst_291 = arith.constant dense<0.000000e+00> : vector<2x16xf32>
    %572 = tpu.matmul %570, %571, %cst_291 {dimension_numbers = #tpu.dot_dimension_numbers<[1], [0], [0], [1], [0, 0, 1, 1], [], []>} : vector<2x32xf32>, vector<32x16xf32>, vector<2x16xf32> -> vector<2x16xf32>
    %c0_292 = arith.constant 0 : index
    %c0_293 = arith.constant 0 : index
    %573 = vector.load %arg36[%c0_292, %c0_293] : memref<1x16xf32, #tpu.memory_space<vmem>>, vector<1x16xf32>
    %574 = vector.broadcast %573 : vector<1x16xf32> to vector<2x16xf32>
    %575 = arith.addf %572, %574 : vector<2x16xf32>
    %cst_294 = arith.constant 5.000000e-01 : f32
    %576 = vector.broadcast %cst_294 : f32 to vector<2x16xf32>
    %577 = arith.mulf %576, %575 : vector<2x16xf32>
    %cst_295 = arith.constant 0.707106769 : f32
    %578 = vector.broadcast %cst_295 : f32 to vector<2x16xf32>
    %579 = arith.mulf %575, %578 : vector<2x16xf32>
    %cst_296 = arith.constant 0.000000e+00 : f32
    %580 = vector.broadcast %cst_296 : f32 to vector<2x16xf32>
    %581 = arith.cmpf oge, %579, %580 : vector<2x16xf32>
    %cst_297 = arith.constant 1.000000e+00 : f32
    %cst_298 = arith.constant -1.000000e+00 : f32
    %582 = vector.broadcast %cst_297 : f32 to vector<2x16xf32>
    %583 = vector.broadcast %cst_298 : f32 to vector<2x16xf32>
    %584 = arith.select %581, %582, %583 : vector<2x16xi1>, vector<2x16xf32>
    %585 = math.absf %579 : vector<2x16xf32>
    %cst_299 = arith.constant 0.327591091 : f32
    %586 = vector.broadcast %cst_299 : f32 to vector<2x16xf32>
    %587 = arith.mulf %586, %585 : vector<2x16xf32>
    %cst_300 = arith.constant 1.000000e+00 : f32
    %588 = vector.broadcast %cst_300 : f32 to vector<2x16xf32>
    %589 = arith.addf %588, %587 : vector<2x16xf32>
    %cst_301 = arith.constant 1.000000e+00 : f32
    %590 = vector.broadcast %cst_301 : f32 to vector<2x16xf32>
    %591 = arith.divf %590, %589 : vector<2x16xf32>
    %cst_302 = arith.constant 1.06140542 : f32
    %592 = vector.broadcast %cst_302 : f32 to vector<2x16xf32>
    %593 = arith.mulf %592, %591 : vector<2x16xf32>
    %cst_303 = arith.constant -1.45315206 : f32
    %594 = vector.broadcast %cst_303 : f32 to vector<2x16xf32>
    %595 = arith.addf %593, %594 : vector<2x16xf32>
    %596 = arith.mulf %595, %591 : vector<2x16xf32>
    %cst_304 = arith.constant 1.42141378 : f32
    %597 = vector.broadcast %cst_304 : f32 to vector<2x16xf32>
    %598 = arith.addf %596, %597 : vector<2x16xf32>
    %599 = arith.mulf %598, %591 : vector<2x16xf32>
    %cst_305 = arith.constant -0.284496725 : f32
    %600 = vector.broadcast %cst_305 : f32 to vector<2x16xf32>
    %601 = arith.addf %599, %600 : vector<2x16xf32>
    %602 = arith.mulf %601, %591 : vector<2x16xf32>
    %cst_306 = arith.constant 0.254829586 : f32
    %603 = vector.broadcast %cst_306 : f32 to vector<2x16xf32>
    %604 = arith.addf %602, %603 : vector<2x16xf32>
    %605 = arith.mulf %604, %591 : vector<2x16xf32>
    %cst_307 = arith.constant 0.000000e+00 : f32
    %606 = vector.broadcast %cst_307 : f32 to vector<2x16xf32>
    %607 = arith.subf %606, %585 : vector<2x16xf32>
    %608 = arith.mulf %607, %585 : vector<2x16xf32>
    %609 = math.exp %608 : vector<2x16xf32>
    %610 = arith.mulf %605, %609 : vector<2x16xf32>
    %cst_308 = arith.constant 1.000000e+00 : f32
    %611 = vector.broadcast %cst_308 : f32 to vector<2x16xf32>
    %612 = arith.subf %611, %610 : vector<2x16xf32>
    %613 = arith.mulf %584, %612 : vector<2x16xf32>
    %cst_309 = arith.constant 1.000000e+00 : f32
    %614 = vector.broadcast %cst_309 : f32 to vector<2x16xf32>
    %615 = arith.addf %614, %613 : vector<2x16xf32>
    %616 = arith.mulf %577, %615 : vector<2x16xf32>
    %c0_310 = arith.constant 0 : index
    %c0_311 = arith.constant 0 : index
    %617 = vector.load %arg37[%c0_310, %c0_311] : memref<16x2xf32, #tpu.memory_space<vmem>>, vector<16x2xf32>
    %cst_312 = arith.constant dense<0.000000e+00> : vector<2x2xf32>
    %618 = tpu.matmul %616, %617, %cst_312 {dimension_numbers = #tpu.dot_dimension_numbers<[1], [0], [0], [1], [0, 0, 1, 1], [], []>} : vector<2x16xf32>, vector<16x2xf32>, vector<2x2xf32> -> vector<2x2xf32>
    %c0_313 = arith.constant 0 : index
    %c0_314 = arith.constant 0 : index
    %619 = vector.load %arg38[%c0_313, %c0_314] : memref<1x2xf32, #tpu.memory_space<vmem>>, vector<1x2xf32>
    %620 = vector.broadcast %619 : vector<1x2xf32> to vector<2x2xf32>
    %621 = arith.addf %618, %620 : vector<2x2xf32>
    %c0_315 = arith.constant 0 : index
    %c0_316 = arith.constant 0 : index
    %622 = vector.load %arg39[%c0_315, %c0_316] : memref<2x2xf32, #tpu.memory_space<vmem>>, vector<2x2xf32>
    tpu.vector_store %arg39[%c0_315, %c0_316], %621 {strides = array<i32>} : memref<2x2xf32, #tpu.memory_space<vmem>>, vector<2x2xf32>,
    return
  }
  func.func @transform_0(%arg0: i32) -> (i32, i32, i32) {
    %c0_i32 = arith.constant 0 : i32
    %c0_i32_0 = arith.constant 0 : i32
    %c0_i32_1 = arith.constant 0 : i32
    return %c0_i32, %arg0, %c0_i32_0 : i32, i32, i32
  }
  func.func @transform_1(%arg0: i32) -> (i32, i32) {
    %c0_i32 = arith.constant 0 : i32
    %c0_i32_0 = arith.constant 0 : i32
    return %arg0, %c0_i32 : i32, i32
  }
  func.func @transform_2(%arg0: i32) -> (i32, i32) {
    %c0_i32 = arith.constant 0 : i32
    %c0_i32_0 = arith.constant 0 : i32
    %c0_i32_1 = arith.constant 0 : i32
    return %c0_i32, %c0_i32_0 : i32, i32
  }
  func.func @transform_3(%arg0: i32) -> (i32, i32) {
    %c0_i32 = arith.constant 0 : i32
    %c0_i32_0 = arith.constant 0 : i32
    %c0_i32_1 = arith.constant 0 : i32
    return %c0_i32, %c0_i32_0 : i32, i32
  }
  func.func @transform_4(%arg0: i32) -> (i32, i32) {
    %c0_i32 = arith.constant 0 : i32
    %c0_i32_0 = arith.constant 0 : i32
    %c0_i32_1 = arith.constant 0 : i32
    return %c0_i32, %c0_i32_0 : i32, i32
  }
  func.func @transform_5(%arg0: i32) -> (i32, i32) {
    %c0_i32 = arith.constant 0 : i32
    %c0_i32_0 = arith.constant 0 : i32
    %c0_i32_1 = arith.constant 0 : i32
    return %c0_i32, %c0_i32_0 : i32, i32
  }
  func.func @transform_6(%arg0: i32) -> (i32, i32) {
    %c0_i32 = arith.constant 0 : i32
    %c0_i32_0 = arith.constant 0 : i32
    %c0_i32_1 = arith.constant 0 : i32
    return %c0_i32, %c0_i32_0 : i32, i32
  }
  func.func @transform_7(%arg0: i32) -> (i32, i32, i32) {
    %c0_i32 = arith.constant 0 : i32
    %c0_i32_0 = arith.constant 0 : i32
    %c0_i32_1 = arith.constant 0 : i32
    %c0_i32_2 = arith.constant 0 : i32
    return %c0_i32, %c0_i32_0, %c0_i32_1 : i32, i32, i32
  }
  func.func @transform_8(%arg0: i32) -> (i32, i32) {
    %c0_i32 = arith.constant 0 : i32
    %c0_i32_0 = arith.constant 0 : i32
    %c0_i32_1 = arith.constant 0 : i32
    return %c0_i32, %c0_i32_0 : i32, i32
  }
  func.func @transform_9(%arg0: i32) -> (i32, i32) {
    %c0_i32 = arith.constant 0 : i32
    %c0_i32_0 = arith.constant 0 : i32
    %c0_i32_1 = arith.constant 0 : i32
    return %c0_i32, %c0_i32_0 : i32, i32
  }
  func.func @transform_10(%arg0: i32) -> (i32, i32) {
    %c0_i32 = arith.constant 0 : i32
    %c0_i32_0 = arith.constant 0 : i32
    %c0_i32_1 = arith.constant 0 : i32
    return %c0_i32, %c0_i32_0 : i32, i32
  }
  func.func @transform_11(%arg0: i32) -> (i32, i32) {
    %c0_i32 = arith.constant 0 : i32
    %c0_i32_0 = arith.constant 0 : i32
    %c0_i32_1 = arith.constant 0 : i32
    return %c0_i32, %c0_i32_0 : i32, i32
  }
  func.func @transform_12(%arg0: i32) -> (i32, i32) {
    %c0_i32 = arith.constant 0 : i32
    %c0_i32_0 = arith.constant 0 : i32
    %c0_i32_1 = arith.constant 0 : i32
    return %c0_i32, %c0_i32_0 : i32, i32
  }
  func.func @transform_13(%arg0: i32) -> (i32, i32) {
    %c0_i32 = arith.constant 0 : i32
    %c0_i32_0 = arith.constant 0 : i32
    %c0_i32_1 = arith.constant 0 : i32
    return %c0_i32, %c0_i32_0 : i32, i32
  }
  func.func @transform_14(%arg0: i32) -> (i32, i32, i32) {
    %c0_i32 = arith.constant 0 : i32
    %c0_i32_0 = arith.constant 0 : i32
    %c0_i32_1 = arith.constant 0 : i32
    %c0_i32_2 = arith.constant 0 : i32
    return %c0_i32, %c0_i32_0, %c0_i32_1 : i32, i32, i32
  }
  func.func @transform_15(%arg0: i32) -> (i32, i32, i32) {
    %c0_i32 = arith.constant 0 : i32
    %c0_i32_0 = arith.constant 0 : i32
    %c0_i32_1 = arith.constant 0 : i32
    %c0_i32_2 = arith.constant 0 : i32
    return %c0_i32, %c0_i32_0, %c0_i32_1 : i32, i32, i32
  }
  func.func @transform_16(%arg0: i32) -> (i32, i32, i32) {
    %c0_i32 = arith.constant 0 : i32
    %c0_i32_0 = arith.constant 0 : i32
    %c0_i32_1 = arith.constant 0 : i32
    %c0_i32_2 = arith.constant 0 : i32
    return %c0_i32, %c0_i32_0, %c0_i32_1 : i32, i32, i32
  }
  func.func @transform_17(%arg0: i32) -> (i32, i32, i32) {
    %c0_i32 = arith.constant 0 : i32
    %c0_i32_0 = arith.constant 0 : i32
    %c0_i32_1 = arith.constant 0 : i32
    %c0_i32_2 = arith.constant 0 : i32
    return %c0_i32, %c0_i32_0, %c0_i32_1 : i32, i32, i32
  }
  func.func @transform_18(%arg0: i32) -> (i32, i32, i32) {
    %c0_i32 = arith.constant 0 : i32
    %c0_i32_0 = arith.constant 0 : i32
    %c0_i32_1 = arith.constant 0 : i32
    %c0_i32_2 = arith.constant 0 : i32
    return %c0_i32, %c0_i32_0, %c0_i32_1 : i32, i32, i32
  }
  func.func @transform_19(%arg0: i32) -> (i32, i32, i32) {
    %c0_i32 = arith.constant 0 : i32
    %c0_i32_0 = arith.constant 0 : i32
    %c0_i32_1 = arith.constant 0 : i32
    %c0_i32_2 = arith.constant 0 : i32
    return %c0_i32, %c0_i32_0, %c0_i32_1 : i32, i32, i32
  }
  func.func @transform_20(%arg0: i32) -> (i32, i32, i32) {
    %c0_i32 = arith.constant 0 : i32
    %c0_i32_0 = arith.constant 0 : i32
    %c0_i32_1 = arith.constant 0 : i32
    %c0_i32_2 = arith.constant 0 : i32
    return %c0_i32, %c0_i32_0, %c0_i32_1 : i32, i32, i32
  }
  func.func @transform_21(%arg0: i32) -> (i32, i32, i32) {
    %c0_i32 = arith.constant 0 : i32
    %c0_i32_0 = arith.constant 0 : i32
    %c0_i32_1 = arith.constant 0 : i32
    %c0_i32_2 = arith.constant 0 : i32
    return %c0_i32, %c0_i32_0, %c0_i32_1 : i32, i32, i32
  }
  func.func @transform_22(%arg0: i32) -> (i32, i32, i32) {
    %c0_i32 = arith.constant 0 : i32
    %c0_i32_0 = arith.constant 0 : i32
    %c0_i32_1 = arith.constant 0 : i32
    %c0_i32_2 = arith.constant 0 : i32
    return %c0_i32, %c0_i32_0, %c0_i32_1 : i32, i32, i32
  }
  func.func @transform_23(%arg0: i32) -> (i32, i32, i32) {
    %c0_i32 = arith.constant 0 : i32
    %c0_i32_0 = arith.constant 0 : i32
    %c0_i32_1 = arith.constant 0 : i32
    %c0_i32_2 = arith.constant 0 : i32
    return %c0_i32, %c0_i32_0, %c0_i32_1 : i32, i32, i32
  }
  func.func @transform_24(%arg0: i32) -> (i32, i32, i32) {
    %c0_i32 = arith.constant 0 : i32
    %c0_i32_0 = arith.constant 0 : i32
    %c0_i32_1 = arith.constant 0 : i32
    %c0_i32_2 = arith.constant 0 : i32
    return %c0_i32, %c0_i32_0, %c0_i32_1 : i32, i32, i32
  }
  func.func @transform_25(%arg0: i32) -> (i32, i32, i32) {
    %c0_i32 = arith.constant 0 : i32
    %c0_i32_0 = arith.constant 0 : i32
    %c0_i32_1 = arith.constant 0 : i32
    %c0_i32_2 = arith.constant 0 : i32
    return %c0_i32, %c0_i32_0, %c0_i32_1 : i32, i32, i32
  }
  func.func @transform_26(%arg0: i32) -> (i32, i32) {
    %c0_i32 = arith.constant 0 : i32
    %c0_i32_0 = arith.constant 0 : i32
    %c0_i32_1 = arith.constant 0 : i32
    return %c0_i32, %c0_i32_0 : i32, i32
  }
  func.func @transform_27(%arg0: i32) -> (i32, i32) {
    %c0_i32 = arith.constant 0 : i32
    %c0_i32_0 = arith.constant 0 : i32
    %c0_i32_1 = arith.constant 0 : i32
    return %c0_i32, %c0_i32_0 : i32, i32
  }
  func.func @transform_28(%arg0: i32) -> (i32, i32) {
    %c0_i32 = arith.constant 0 : i32
    %c0_i32_0 = arith.constant 0 : i32
    %c0_i32_1 = arith.constant 0 : i32
    return %c0_i32, %c0_i32_0 : i32, i32
  }
  func.func @transform_29(%arg0: i32) -> (i32, i32) {
    %c0_i32 = arith.constant 0 : i32
    %c0_i32_0 = arith.constant 0 : i32
    %c0_i32_1 = arith.constant 0 : i32
    return %c0_i32, %c0_i32_0 : i32, i32
  }
  func.func @transform_30(%arg0: i32) -> (i32, i32) {
    %c0_i32 = arith.constant 0 : i32
    %c0_i32_0 = arith.constant 0 : i32
    %c0_i32_1 = arith.constant 0 : i32
    return %c0_i32, %c0_i32_0 : i32, i32
  }
  func.func @transform_31(%arg0: i32) -> (i32, i32) {
    %c0_i32 = arith.constant 0 : i32
    %c0_i32_0 = arith.constant 0 : i32
    %c0_i32_1 = arith.constant 0 : i32
    return %c0_i32, %c0_i32_0 : i32, i32
  }
  func.func @transform_32(%arg0: i32) -> (i32, i32) {
    %c0_i32 = arith.constant 0 : i32
    %c0_i32_0 = arith.constant 0 : i32
    %c0_i32_1 = arith.constant 0 : i32
    return %c0_i32, %c0_i32_0 : i32, i32
  }
  func.func @transform_33(%arg0: i32) -> (i32, i32) {
    %c0_i32 = arith.constant 0 : i32
    %c0_i32_0 = arith.constant 0 : i32
    %c0_i32_1 = arith.constant 0 : i32
    return %c0_i32, %c0_i32_0 : i32, i32
  }
  func.func @transform_34(%arg0: i32) -> (i32, i32) {
    %c0_i32 = arith.constant 0 : i32
    %c0_i32_0 = arith.constant 0 : i32
    %c0_i32_1 = arith.constant 0 : i32
    return %c0_i32, %c0_i32_0 : i32, i32
  }
  func.func @transform_35(%arg0: i32) -> (i32, i32) {
    %c0_i32 = arith.constant 0 : i32
    %c0_i32_0 = arith.constant 0 : i32
    %c0_i32_1 = arith.constant 0 : i32
    return %c0_i32, %c0_i32_0 : i32, i32
  }
  func.func @transform_36(%arg0: i32) -> (i32, i32) {
    %c0_i32 = arith.constant 0 : i32
    %c0_i32_0 = arith.constant 0 : i32
    %c0_i32_1 = arith.constant 0 : i32
    return %c0_i32, %c0_i32_0 : i32, i32
  }
  func.func @transform_37(%arg0: i32) -> (i32, i32) {
    %c0_i32 = arith.constant 0 : i32
    %c0_i32_0 = arith.constant 0 : i32
    %c0_i32_1 = arith.constant 0 : i32
    return %c0_i32, %c0_i32_0 : i32, i32
  }
  func.func @transform_38(%arg0: i32) -> (i32, i32) {
    %c0_i32 = arith.constant 0 : i32
    %c0_i32_0 = arith.constant 0 : i32
    return %arg0, %c0_i32 : i32, i32
  }
}

</mosaic_0001>

<bundles_post_ra>
// kernel: tile.9
= control target key start
LH: loop header
LB: loop body
LE: loop exit
PB: predicated region body
PF: predicated region fallthrough
CT: control target
= control target key end

     0   :  { %vm3_vm0 = vcmask 261120   ;;  %s6_s6 = smov 3  ;;  %s48_s0 = inlined_call_operand.vmem [shape: f32[2,9,32], index: 0, kind: input, shape index: {}]   ;;  %s49_s1 = inlined_call_operand.vmem [shape: f32[18,32], index: 1, kind: output, shape index: {}]  }
   0x1   :  { %v2_v0 = vld [vmem:[%s48_s0] sm:$0xff]   ;;  %v18_v2 = vld [vmem:[%s48_s0 + $0x11] sm:$0xff]  }
   0x2   :  { %v16_v1 = vld [vmem:[%s48_s0 + $0x8] ss:$8 sm:%s6_s6]   ;;  %4 = vst.msk [vmem:[%s49_s1] sm:$0xff] %vm3_vm0, %v2_v0   ;;  %19 = vst.msk [vmem:[%s49_s1 + $0xa] sm:$0xff] %vm3_vm0, %v18_v2  }
   0x3   :  { %17 = vst.msk [vmem:[%s49_s1 + $0x8] sm:$0x3] %vm3_vm0, %v16_v1  }

// kernel: eeg_transformer_forward.1
= control target key start
LH: loop header
LB: loop body
LE: loop exit
PB: predicated region body
PF: predicated region fallthrough
CT: control target
= control target key end

     0   :  { %s6930_s6 = smov 1   ;;  %s6931_s10 = smov 2   ;;  %s8267_s0 = inlined_call_operand.smem [shape: u32[39], index: -1, kind: input, shape index: {}] }
   0x1   :  { %s7000_s5 = sld [smem:[%s8267_s0]]   ;;  %s6932_s14 = smov 3  }
   0x2   :  { %s7005_s9 = sld [smem:[%s8267_s0 + %s6930_s6]]   ;;  %s6933_s18 = smov 4  }
   0x3   :  { %s7010_s13 = sld [smem:[%s8267_s0 + %s6931_s10]]   ;;  %s6934_s22 = smov 5  }
   0x4   :  { %s7015_s17 = sld [smem:[%s8267_s0 + %s6932_s14]]   ;;  %s6935_s26 = smov 6  }
   0x5   :  { %s5169_s21 = sld [smem:[%s8267_s0 + %s6933_s18]]   ;;  %s6936_s30 = smov 7  }
   0x6   :  { %s7023_s25 = sld [smem:[%s8267_s0 + %s6934_s22]]   ;;  %s6937_s4 = smov 8  }
   0x7   :  { %s7028_s29 = sld [smem:[%s8267_s0 + %s6935_s26]]   ;;  %s6938_s10 = smov 9  }
   0x8   :  { %s7033_s3 = sld [smem:[%s8267_s0 + %s6936_s30]]   ;;  %s6939_s15 = smov 10  }
   0x9   :  { %s7038_s8 = sld [smem:[%s8267_s0 + %s6937_s4]]   ;;  %s6940_s20 = smov 11  }
   0xa   :  { %s7043_s14 = sld [smem:[%s8267_s0 + %s6938_s10]]   ;;  %s6941_s26 = smov 12  }
   0xb   :  { %s7048_s19 = sld [smem:[%s8267_s0 + %s6939_s15]]   ;;  %v82_v0 = vstv %s5169_s21  ;;  %s6942_s1 = smov 13  }
   0xc   :  { %s7053_s24 = sld [smem:[%s8267_s0 + %s6940_s20]]   ;;  %83 = vst [vmem:[#allocation2] sm:$0x1] %v82_v0  ;;  %s6943_s21 = smov 14  }
   0xd   :  { %s7058_s30 = sld [smem:[%s8267_s0 + %s6941_s26]]   ;;  %s6944_s12 = smov 15  }
   0xe   :  { %s7063_s6 = sld [smem:[%s8267_s0 + %s6942_s1]]   ;;  %s6945_s20 = smov 16  }
   0xf   :  { %8281 = sst [smem:[#allocation6_spill]] %s7038_s8  ;;  %s6946_s27 = smov 17  }
  0x10   :  { %s7068_s11 = sld [smem:[%s8267_s0 + %s6943_s21]]   ;;  %s6947_s4 = smov 18  }
  0x11   :  { %s7073_s18 = sld [smem:[%s8267_s0 + %s6944_s12]]   ;;  %s6948_s12 = smov 19  }
  0x12   :  { %s7078_s26 = sld [smem:[%s8267_s0 + %s6945_s20]]   ;;  %s6949_s20 = smov 20  }
  0x13   :  { %s7083_s2 = sld [smem:[%s8267_s0 + %s6946_s27]]   ;;  %s6950_s27 = smov 21  }
  0x14   :  { %8282 = sst [smem:[#allocation7_spill]] %s7063_s6 }
  0x15   :  { %s7088_s10 = sld [smem:[%s8267_s0 + %s6947_s4]]   ;;  %s6951_s4 = smov 22  }
  0x16   :  { %s7093_s8 = sld [smem:[%s8267_s0 + %s6948_s12]]   ;;  %s6952_s12 = smov 23  }
  0x17   :  { %s7098_s6 = sld [smem:[%s8267_s0 + %s6949_s20]]   ;;  %s6953_s20 = smov 24  }
  0x19   :  { %8283 = sst [smem:[#allocation8_spill]] %s7083_s2 }
  0x1a   :  { %s7103_s2 = sld [smem:[%s8267_s0 + %s6950_s27]]   ;;  %s6954_s27 = smov 25  }
  0x1b   :  { %8284 = sst [smem:[#allocation9_spill]] %s7088_s10 }
  0x1c   :  { %8285 = sst [smem:[#allocation10_spill]] %s7093_s8 }
  0x1d   :  { %8286 = sst [smem:[#allocation11_spill]] %s7098_s6 }
  0x1e   :  { %s7108_s10 = sld [smem:[%s8267_s0 + %s6951_s4]]   ;;  %s6955_s4 = smov 26  }
  0x1f   :  { %s7113_s8 = sld [smem:[%s8267_s0 + %s6952_s12]]   ;;  %s6956_s12 = smov 27  }
  0x20   :  { %8287 = sst [smem:[#allocation12_spill]] %s7103_s2 }
  0x21   :  { %s7118_s6 = sld [smem:[%s8267_s0 + %s6953_s20]]   ;;  %s6957_s20 = smov 28  }
  0x22   :  { %s7123_s2 = sld [smem:[%s8267_s0 + %s6954_s27]]   ;;  %s6958_s27 = smov 29  }
  0x24   :  { %8288 = sst [smem:[#allocation13_spill]] %s7108_s10 }
  0x25   :  { %8289 = sst [smem:[#allocation14_spill]] %s7113_s8 }
  0x26   :  { %s7128_s10 = sld [smem:[%s8267_s0 + %s6955_s4]]   ;;  %s6959_s4 = smov 30  }
  0x27   :  { %8290 = sst [smem:[#allocation15_spill]] %s7118_s6 }
  0x28   :  { %8291 = sst [smem:[#allocation16_spill]] %s7123_s2 }
  0x29   :  { %s7133_s8 = sld [smem:[%s8267_s0 + %s6956_s12]]   ;;  %s6960_s12 = smov 31  }
  0x2a   :  { %s7138_s6 = sld [smem:[%s8267_s0 + %s6957_s20]]   ;;  %s6961_s20 = smov 32  }
  0x2b   :  { %s7143_s2 = sld [smem:[%s8267_s0 + %s6958_s27]]   ;;  %s6962_s27 = smov 33  }
  0x2c   :  { %8292 = sst [smem:[#allocation17_spill]] %s7128_s10 }
  0x2d   :  { %s7148_s10 = sld [smem:[%s8267_s0 + %s6959_s4]]   ;;  %s6963_s4 = smov 34  }
  0x2f   :  { %8293 = sst [smem:[#allocation18_spill]] %s7133_s8 }
  0x30   :  { %8294 = sst [smem:[#allocation19_spill]] %s7138_s6 }
  0x31   :  { %8295 = sst [smem:[#allocation20_spill]] %s7143_s2 }
  0x32   :  { %s7153_s8 = sld [smem:[%s8267_s0 + %s6960_s12]]   ;;  %s6964_s12 = smov 35  }
  0x33   :  { %8296 = sst [smem:[#allocation21_spill]] %s7148_s10 }
  0x34   :  { %s7158_s6 = sld [smem:[%s8267_s0 + %s6961_s20]]   ;;  %s6965_s20 = smov 36  }
  0x35   :  { %s7163_s2 = sld [smem:[%s8267_s0 + %s6962_s27]]   ;;  %s6966_s27 = smov 37  }
  0x36   :  { %s7168_s10 = sld [smem:[%s8267_s0 + %s6963_s4]]   ;;  %s6967_s4 = smov 38  }
  0x38   :  { %8297 = sst [smem:[#allocation22_spill]] %s7153_s8 }
  0x39   :  { %s7173_s8 = sld [smem:[%s8267_s0 + %s6964_s12]]  }
  0x3a   :  { %8298 = sst [smem:[#allocation23_spill]] %s7158_s6 }
  0x3b   :  { %8299 = sst [smem:[#allocation24_spill]] %s7163_s2 }
  0x3c   :  { %8300 = sst [smem:[#allocation25_spill]] %s7168_s10 }
  0x3d   :  { %s7178_s6 = sld [smem:[%s8267_s0 + %s6965_s20]]  }
  0x3e   :  { %s7183_s2 = sld [smem:[%s8267_s0 + %s6966_s27]]  }
  0x3f   :  { %s7188_s10 = sld [smem:[%s8267_s0 + %s6967_s4]]  }
  0x40   :  { %vm179_vm0 = vcmask 1041408   ;;  %v7191_v1 = vld [vmem:[%s7000_s5 + $0x4] sm:$0x3]  ;;  %v7194_v2 = vld [vmem:[%s7000_s5] sm:$0x3]  ;;  %v6968_v7 = vmov 0.0|0.0  }
  0x41   :  { %v339_v3 = vsel %vm179_vm0, %v7191_v1, 0.0  ;;  %v180_v4 = vsel %vm179_vm0, %v7194_v2, 0.0  ;;  %v7201_v5 = vld [vmem:[%s7000_s5 + $0x6] sm:$0x3]  ;;  %v7204_v6 = vld [vmem:[%s7000_s5 + $0x2] sm:$0x3]  ;;  %6324 = vmatprep.subr.bf16.mxu0 %v6968_v7  ;;  %6348 = vmatprep.subr.bf16.mxu1 %v6968_v7 }
  0x42   :  { %340 = vadd.xlane.f32.xlu1 %v339_v3  ;;  %181 = vadd.xlane.f32.xlu0 %v180_v4  ;;  %v162_v8 = vld [vmem:[%s7010_s13] sm:$0xff]  ;;  %v163_v9 = vld [vmem:[%s7010_s13 + $0x8] sm:$0xff]  ;;  %v418_v10 = vsel %vm179_vm0, %v7201_v5, 0.0  ;;  %v260_v11 = vsel %vm179_vm0, %v7204_v6, 0.0  ;;  %v164_v13 = vld [vmem:[%s7010_s13 + $0x10] sm:$0xff]  ;;  %vm6969_vm1 = vmmov 0  }
  0x43   :  { %v7214_v12 = vpack.c.bf16 %v163_v9, %v162_v8  ;;  %v165_v14 = vld [vmem:[%s7010_s13 + $0x18] sm:$0xff]  ;;  %v6970_v16 = vmov 0.0   ;;  %v166_v17 = vld [vmem:[%s7010_s13 + $0x20] sm:$0xff]  ;;  %v167_v18 = vld [vmem:[%s7010_s13 + $0x28] sm:$0xff]  ;;  %v264_v19 = vsel %vm179_vm0, %v7204_v6, -inf  ;;  %v185_v20 = vsel %vm179_vm0, %v7194_v2, -inf }
  0x44   :  { %v7219_v15 = vpack.c.bf16 %v165_v14, %v164_v13  ;;  %5741 = vmatprep.mubr.msk.f32.mxu0 %vm6969_vm1, %v6970_v16  ;;  %v343_v21 = vsel %vm179_vm0, %v7191_v1, -inf  ;;  %v422_v22 = vsel %vm179_vm0, %v7201_v5, -inf  ;;  %v168_v23 = vld [vmem:[%s7010_s13 + $0x30] sm:$0xff]  ;;  %v169_v24 = vld [vmem:[%s7010_s13 + $0x38] sm:$0xff]  ;;  %5776 = vmatprep.mubr.msk.f32.mxu1 %vm6969_vm1, %v6970_v16  ;;  %v6331_v25 = vpack.c.bf16 %v167_v18, %v166_v17  ;;  %v170_v26 = vld [vmem:[%s7010_s13 + $0x40] sm:$0xff] }
  0x45   :  { %6326 = vmatpush3.bf16.msra.mxu0 %v7214_v12  ;;  %6350 = vmatpush3.bf16.msra.mxu1 %v7214_v12  ;;  %v171_v27 = vld [vmem:[%s7010_s13 + $0x48] sm:$0xff]  ;;  %v6334_v28 = vpack.c.bf16 %v169_v24, %v168_v23  ;;  %v172_v29 = vld [vmem:[%s7010_s13 + $0x50] sm:$0xff]  ;;  %v173_v30 = vld [vmem:[%s7010_s13 + $0x58] sm:$0xff] }
  0x46   :  { %419 = vadd.xlane.f32.xlu1 %v418_v10  ;;  %261 = vadd.xlane.f32.xlu0 %v260_v11  ;;  %v6337_v31 = vpack.c.bf16 %v171_v27, %v170_v26  ;;  %v6340_v32 = vpack.c.bf16 %v173_v30, %v172_v29  ;;  %v174_v33 = vld [vmem:[%s7010_s13 + $0x60] sm:$0xff]  ;;  %v175_v34 = vld [vmem:[%s7010_s13 + $0x68] sm:$0xff]  ;;  %v176_v35 = vld [vmem:[%s7010_s13 + $0x70] sm:$0xff] }
  0x47   :  { %6327 = vmatprep.subr.bf16.mxu0 %v6968_v7  ;;  %6351 = vmatprep.subr.bf16.mxu1 %v6968_v7  ;;  %v177_v36 = vld [vmem:[%s7010_s13 + $0x78] sm:$0xff]  ;;  %v6343_v37 = vpack.c.bf16 %v175_v34, %v174_v33 }
  0x48   :  { %v6346_v38 = vpack.c.bf16 %v177_v36, %v176_v35 }
  0x49   :  { %6329 = vmatpush3.bf16.msra.mxu0 %v7219_v15  ;;  %6353 = vmatpush3.bf16.msra.mxu1 %v7219_v15 }
  0x4a   :  { %265 = vmax.xlane.f32.xlu1 %v264_v19  ;;  %186 = vmax.xlane.f32.xlu0 %v185_v20 }
  0x4b   :  { %6330 = vmatprep.subr.bf16.mxu0 %v6968_v7  ;;  %6354 = vmatprep.subr.bf16.mxu1 %v6968_v7 }
  0x4d   :  { %6332 = vmatpush3.bf16.msra.mxu0 %v6331_v25  ;;  %6356 = vmatpush3.bf16.msra.mxu1 %v6331_v25 }
  0x4e   :  { %344 = vmax.xlane.f32.xlu0 %v343_v21  ;;  %423 = vmax.xlane.f32.xlu1 %v422_v22 }
  0x4f   :  { %6333 = vmatprep.subr.bf16.mxu0 %v6968_v7  ;;  %6357 = vmatprep.subr.bf16.mxu1 %v6968_v7 }
  0x51   :  { %6335 = vmatpush3.bf16.msra.mxu0 %v6334_v28  ;;  %6359 = vmatpush3.bf16.msra.mxu1 %v6334_v28 }
  0x52   :  { %6336 = vmatprep.subr.bf16.mxu0 %v6968_v7  ;;  %6360 = vmatprep.subr.bf16.mxu1 %v6968_v7 }
  0x55   :  { %6338 = vmatpush3.bf16.msra.mxu0 %v6337_v31  ;;  %6362 = vmatpush3.bf16.msra.mxu1 %v6337_v31 }
  0x56   :  { %6339 = vmatprep.subr.bf16.mxu0 %v6968_v7  ;;  %6363 = vmatprep.subr.bf16.mxu1 %v6968_v7 }
  0x59   :  { %6341 = vmatpush3.bf16.msra.mxu0 %v6340_v32  ;;  %6365 = vmatpush3.bf16.msra.mxu1 %v6340_v32 }
  0x5a   :  { %6342 = vmatprep.subr.bf16.mxu0 %v6968_v7  ;;  %6366 = vmatprep.subr.bf16.mxu1 %v6968_v7 }
  0x5d   :  { %6344 = vmatpush3.bf16.msra.mxu0 %v6343_v37 }
  0x5e   :  { %6345 = vmatprep.subr.bf16.mxu0 %v6968_v7 }
  0x5f   :  { %84 = vsyncpa [#allocation4], 0  ;;  %6368 = vmatpush3.bf16.msra.mxu1 %v6343_v37  ;;  %v504_v39 = vld [vmem:[%s7015_s17] sm:$0xf]  ;;  %vm516_vm2 = vcmask 1043456   ;;  %vm495_vm3 = vcmask 7168  }
  0x60   :  { %6369 = vmatprep.subr.bf16.mxu1 %v6968_v7  ;;  %vm497_vm4 = vcmask 15360   ;;  %vm499_vm5 = vcmask 23552   ;;  %vm512_vm6 = vcmask 31744   ;;  %v591_v58 = vld [vmem:[%s7023_s25] sm:$0x1]  ;;  %vm602_vm7 = vcmask 1040384  }
  0x61   :  { %6347 = vmatpush3.bf16.msra.mxu0 %v6346_v38  ;;  %v5207_v3 = vld [vmem:[#allocation2] ss:$0 sm:$0xff]  ;;  %v1194_v34 = vld [vmem:[%s7043_s14 + $0x8] sm:$0xff]  ;;  %v1195_v35 = vld [vmem:[%s7043_s14 + $0x10] sm:$0x3]  ;;  %vm1423_vm8 = vcmask 523264  }
  0x62   :  { %6372 = vmatprep.subr.bf16.mxu0 %v6968_v7  ;;  %v5210_v13 = vld [vmem:[%s7028_s29] ss:$0 sm:$0xff]  ;;  %vm1483_vm9 = vcmask 261120   ;;  %vm1490_vm10 = vcmask 254976   ;;  %vm860_vm11 = vcmask 1046528   ;;  %vm6972_vm12 = vmmov 1  }
  0x63   :  { %6371 = vmatpush3.bf16.msra.mxu1 %v6346_v38  ;;  %v1287_v33 = vld [vmem:[%s7048_s19] sm:$0xf]  ;;  %vm7387_vm13 = vmpackc.low %vm860_vm11, %vm6972_vm12  ;;  %vm856_vm14 = vcmask 252928   ;;  %s8303_s0 = sld [smem:[#allocation8_spill]]  ;;  %s6976_s5 = smov 72   ;;  %vm1631_vm15 = vcmask 64512  }
  0x64   :  { %5742 = vmatmul.mubr.f32.vlgmr.msra.gmra.mrb[0].mxu0 %v7194_v2  ;;  %6396 = vmatprep.subr.bf16.mxu1 %v6968_v7  ;;  %v6711_v36 = vld [vmem:[%s7053_s24] sm:$0xff]   ;;  %s6978_s13 = smov 112   ;;  %s6979_s17 = smov 88  }
  0x65   :  { %6374 = vmatpush3.bf16.msra.mxu0 %v7214_v12  ;;  %5811 = vmatprep.mubr.msk.f32.mxu0 %vm6969_vm1, %v6970_v16  ;;  %s6980_s25 = smov 104   ;;  %s6981_s29 = smov 120  }
  0x66   :  { %6375 = vmatprep.subr.bf16.mxu0 %v6968_v7  ;;  %5777 = vmatmul.mubr.f32.vlgmr.msra.gmra.mrb[0].mxu1 %v7204_v6  ;;  %s6983_s19 = smov 64   ;;  %s6986_s12 = smov 40  }
  0x67   :  { %6398 = vmatpush3.bf16.msra.mxu1 %v7214_v12  ;;  %5846 = vmatprep.mubr.msk.f32.mxu1 %vm6969_vm1, %v6970_v16  ;;  %s8307_s15 = sld [smem:[#allocation9_spill]]  ;;  %s6987_s16 = smov 8  }
  0x68   :  { %6399 = vmatprep.subr.bf16.mxu1 %v6968_v7  ;;  %s6988_s20 = smov 16   ;;  %s6989_s22 = smov 24  }
  0x69   :  { %6377 = vmatpush3.bf16.msra.mxu0 %v7219_v15  ;;  %s8308_s23 = sld [smem:[#allocation10_spill]]  ;;  %s8309_s27 = sld [smem:[#allocation13_spill]] }
  0x6a   :  { %6378 = vmatprep.subr.bf16.mxu0 %v6968_v7  ;;  %s8310_s28 = sld [smem:[#allocation11_spill]]  ;;  %s8311_s1 = sld [smem:[#allocation12_spill]] }
  0x6b   :  { %6401 = vmatpush3.bf16.msra.mxu1 %v7219_v15  ;;  %s8312_s4 = sld [smem:[#allocation15_spill]]  ;;  %s8313_s21 = sld [smem:[#allocation14_spill]] }
  0x6c   :  { %6402 = vmatprep.subr.bf16.mxu1 %v6968_v7  ;;  %s8314_s7 = sld [smem:[#allocation16_spill]] }
  0x6d   :  { %6380 = vmatpush3.bf16.msra.mxu0 %v6331_v25 }
  0x6e   :  { %6381 = vmatprep.subr.bf16.mxu0 %v6968_v7 }
  0x6f   :  { %6404 = vmatpush3.bf16.msra.mxu1 %v6331_v25 }
  0x70   :  { %6405 = vmatprep.subr.bf16.mxu1 %v6968_v7 }
  0x71   :  { %6383 = vmatpush3.bf16.msra.mxu0 %v6334_v28 }
  0x72   :  { %6384 = vmatprep.subr.bf16.mxu0 %v6968_v7 }
  0x73   :  { %6407 = vmatpush3.bf16.msra.mxu1 %v6334_v28 }
  0x74   :  { %6408 = vmatprep.subr.bf16.mxu1 %v6968_v7 }
  0x75   :  { %6386 = vmatpush3.bf16.msra.mxu0 %v6337_v31 }
  0x76   :  { %6387 = vmatprep.subr.bf16.mxu0 %v6968_v7 }
  0x77   :  { %6410 = vmatpush3.bf16.msra.mxu1 %v6337_v31 }
  0x78   :  { %6411 = vmatprep.subr.bf16.mxu1 %v6968_v7 }
  0x79   :  { %6389 = vmatpush3.bf16.msra.mxu0 %v6340_v32 }
  0x7a   :  { %6390 = vmatprep.subr.bf16.mxu0 %v6968_v7 }
  0x7b   :  { %6413 = vmatpush3.bf16.msra.mxu1 %v6340_v32  ;;  %v1193_v32 = vld [vmem:[%s7043_s14] sm:$0xff]  ;;  %s8306_s14 = sld [smem:[#allocation7_spill]] }
  0x7c   :  { %6414 = vmatprep.subr.bf16.mxu1 %v6968_v7 }
  0x7d   :  { %6392 = vmatpush3.bf16.msra.mxu0 %v6343_v37 }
  0x7e   :  { %6393 = vmatprep.subr.bf16.mxu0 %v6968_v7 }
  0x7f   :  { %6416 = vmatpush3.bf16.msra.mxu1 %v6343_v37 }
  0x80   :  { %6417 = vmatprep.subr.bf16.mxu1 %v6968_v7 }
  0x81   :  { %6395 = vmatpush3.bf16.msra.mxu0 %v6346_v38 }
  0x82   :  { %5849 = vmatprep.subr.mxu0 %v6970_v16 }
  0x83   :  { %6419 = vmatpush3.bf16.msra.mxu1 %v6346_v38 }
  0x84   :  { %5812 = vmatmul.mubr.f32.vlgmr.msra.gmra.mrb[2].mxu0 %v7191_v1  ;;  %5854 = vmatprep.subr.mxu1 %v6970_v16 }
  0x85   :  { %5850 = vmatpush3.msk.msra.mxu0 %vm516_vm2, %v504_v39  ;;  %5851 = vmatprep.mubr.msk.f32.mxu0 %vm6969_vm1, %v6970_v16 }
  0x86   :  { %5859 = vmatprep.subr.mxu0 %v6970_v16  ;;  %5847 = vmatmul.mubr.f32.vlgmr.msra.gmra.mrb[2].mxu1 %v7201_v5 }
  0x87   :  { %5856 = vmatprep.mubr.msk.f32.mxu1 %vm6969_vm1, %v6970_v16  ;;  %5855 = vmatpush3.msk.msra.mxu1 %vm602_vm7, %v591_v58 }
  0x88   :  { %5864 = vmatprep.subr.mxu1 %v6970_v16 }
  0xcf   :  { %v341_v40 = vpop.xlane.xlu1 %340  ;;  %v182_v41 = vpop.xlane.xlu0 %181 }
  0xd0   :  { %v184_v44 = vmul.f32 0.0078125, %v182_v41  ;;  %v342_v47 = vmul.f32 0.0078125, %v341_v40 }
  0xd3   :  { %v420_v42 = vpop.xlane.xlu1 %419  ;;  %v262_v43 = vpop.xlane.xlu0 %261 }
  0xd4   :  { %v421_v45 = vmul.f32 0.0078125, %v420_v42  ;;  %v263_v46 = vmul.f32 0.0078125, %v262_v43  ;;  %v6712_v43 = vld [vmem:[%s7053_s24 + $0x8] sm:$0xff]  }
  0xd6   :  { %v496_v48 = vsel %vm495_vm3, %v184_v44, %v263_v46  ;;  %v6713_v44 = vld [vmem:[%s7053_s24 + $0x10] sm:$0xff]  }
  0xd7   :  { %v266_v49 = vpop.xlane.xlu1 %265  ;;  %v187_v50 = vpop.xlane.xlu0 %186  ;;  %v498_v51 = vsel %vm497_vm4, %v496_v48, %v342_v47  ;;  %v1380_v48 = vld [vmem:[%s7005_s9] sm:$0xff] }
  0xd8   :  { %v500_v52 = vsel %vm499_vm5, %v498_v51, %v421_v45  ;;  %v501_v53 = vsel %vm495_vm3, %v187_v50, %v266_v49  ;;  %v6714_v45 = vld [vmem:[%s7053_s24 + $0x18] sm:$0xff]   ;;  %v1381_v49 = vld [vmem:[%s7005_s9 + $0x8] sm:$0xff]  ;;  %s6984_s24 = smov 56  }
  0xd9   :  { %5852 = vmatmul.mubr.msk.f32.vlgmr.msra.gmra.mrb[4].mxu0 %vm512_vm6, %v500_v52 }
  0xda   :  { %5860 = vmatpush3.msk.msra.mxu0 %vm516_vm2, %v504_v39  ;;  %5861 = vmatprep.mubr.msk.f32.mxu0 %vm6969_vm1, %v6970_v16 }
  0xdb   :  { %v345_v54 = vpop.xlane.xlu0 %344  ;;  %v424_v55 = vpop.xlane.xlu1 %423  ;;  %6420 = vmatprep.subr.bf16.mxu0 %v6968_v7 }
  0xdc   :  { %v502_v56 = vsel %vm497_vm4, %v501_v53, %v345_v54  ;;  %v1382_v54 = vld [vmem:[%s7005_s9 + $0x10] sm:$0x3]  ;;  %s6977_s9 = smov 96  }
  0xdd   :  { %v503_v57 = vsel %vm499_vm5, %v502_v56, %v424_v55  ;;  %vm2629_vm5 = vcmask 130048  }
  0xde   :  { %5862 = vmatmul.mubr.msk.f32.vlgmr.msra.gmra.mrb[6].mxu0 %vm512_vm6, %v503_v57 }
  0xdf   :  { %5877 = vmatprep.mubr.msk.f32.mxu0 %vm6969_vm1, %v6970_v16 }
 0x137   :  { %v7314_v59 = vpop.f32.mrb[0].mxu0 }
 0x138   :  { %v5743_v60 = vpop.f32.mrb[1].mxu0 }
 0x139   :  { %v7316_v61 = vpop.f32.mrb[0].mxu1 }
 0x13a   :  { %v5778_v62 = vpop.f32.mrb[1].mxu1 }
 0x13b   :  { %v6971_v62 = vmov 1  }
 0x13c   :  { %6596 = vset.pattern.permute.xlu1 %v6971_v62 }
 0x157   :  { %v7318_v63 = vpop.f32.mrb[2].mxu0 }
 0x158   :  { %v5813_v0 = vpop.f32.mrb[3].mxu0 }
 0x159   :  { %v7320_v1 = vpop.f32.mrb[2].mxu1  ;;  %v1396_v0 = vld [vmem:[%s7058_s30] sm:$0xff] }
 0x15a   :  { %v5848_v2 = vpop.f32.mrb[3].mxu1 }
 0x1ac   :  { %v586_v4 = vpop.f32.mrb[4].mxu0 }
 0x1ad   :  { %v587_v5 = vadd.f32 %v5207_v3, %v586_v4  ;;  %v5853_v6 = vpop.f32.mrb[5].mxu0 }
 0x1af   :  { %v590_v8 = vmax.f32 %v587_v5, 0.0  ;;  %v1397_v5 = vld [vmem:[%s7058_s30 + $0x8] sm:$0xff] }
 0x1b1   :  { %5857 = vmatmul.mubr.msk.f32.vlgmr.msra.gmra.mrb[4].mxu1 %vm495_vm3, %v590_v8  ;;  %v751_v9 = vpop.f32.mrb[6].mxu0 }
 0x1b2   :  { %v752_v10 = vadd.f32 %v5207_v3, %v751_v9  ;;  %v5863_v11 = vpop.f32.mrb[7].mxu0  ;;  %5865 = vmatpush3.msk.msra.mxu1 %vm602_vm7, %v591_v58  ;;  %5866 = vmatprep.mubr.msk.f32.mxu1 %vm6969_vm1, %v6970_v16  ;;  %v1398_v3 = vld [vmem:[%s7058_s30 + $0x10] sm:$0x3]  ;;  %s6985_s30 = smov 48  }
 0x1b3   :  { %5913 = vmatprep.subr.mxu1 %v6970_v16 }
 0x1b4   :  { %v755_v12 = vmax.f32 %v752_v10, 0.0 }
 0x1b6   :  { %5867 = vmatmul.mubr.msk.f32.vlgmr.msra.gmra.mrb[6].mxu1 %vm495_vm3, %v755_v12  ;;  %vm1730_vm3 = vcmask 146432  }
 0x1b7   :  { %5915 = vmatprep.mubr.msk.f32.mxu1 %vm6969_vm1, %v6970_v16 }
 0x284   :  { %v672_v14 = vpop.f32.mrb[4].mxu1 }
 0x285   :  { %v673_v15 = vadd.f32 %v5210_v13, %v672_v14  ;;  %v5858_v17 = vpop.f32.mrb[5].mxu1 }
 0x286   :  { %v5218_v17 = vld [vmem:[%s7033_s3 + $0x28] sm:$0xff] }
 0x287   :  { %v676_v18 = vsub.f32 0.0, %v673_v15  ;;  %v5217_v15 = vld [vmem:[%s7033_s3 + $0x20] sm:$0xff] }
 0x289   :  { %v677_v19 = vmul.f32 1.442695, %v676_v18  ;;  %v825_v20 = vpop.f32.mrb[6].mxu1  ;;  %v6421_v18 = vpack.c.bf16 %v5218_v17, %v5217_v15 }
 0x28a   :  { %v826_v21 = vadd.f32 %v5210_v13, %v825_v20  ;;  %v5868_v22 = vpop.f32.mrb[7].mxu1  ;;  %v5220_v20 = vld [vmem:[%s7033_s3 + $0x38] sm:$0x7f] }
 0x28b   :  { %6743 = vpow2.f32 %v677_v19  ;;  %6422 = vmatpush3.bf16.msra.mxu0 %v6421_v18  ;;  %v5219_v19 = vld [vmem:[%s7033_s3 + $0x30] sm:$0xff] }
 0x28c   :  { %v829_v23 = vsub.f32 0.0, %v826_v21  ;;  %6423 = vmatprep.subr.bf16.mxu0 %v6968_v7  ;;  %v6424_v21 = vpack.c.bf16 %v5220_v20, %v5219_v19  ;;  %v5233_v18 = vld [vmem:[%s7033_s3 + $0x70] sm:$0xff]  ;;  %v5234_v19 = vld [vmem:[%s7033_s3 + $0x78] sm:$0x7f]  ;;  %v5252_v20 = vld [vmem:[%s7068_s11] ss:$0 sm:$0xff] }
 0x28e   :  { %v830_v24 = vmul.f32 1.442695, %v829_v23  ;;  %v6973_v23 = vmov 2  }
 0x28f   :  { %6426 = vmatpush3.bf16.msk.msra.mxu0 %vm7387_vm13, %v6424_v21 }
 0x290   :  { %6745 = vpow2.f32 %v830_v24  ;;  %6427 = vmatprep.subr.bf16.mxu0 %v6968_v7  ;;  %v6974_v24 = vmov 3  }
 0x295   :  { %v6744_v25 = vpop.eup %6743 }
 0x296   :  { %v679_v26 = vadd.f32 1.0, %v6744_v25  ;;  %v6975_v25 = vmov 0  }
 0x297   :  { %6597 = vset.pattern.permute.xlu0 %v6975_v25 }
 0x298   :  { %6747 = vrcp.f32 %v679_v26 }
 0x29a   :  { %v6746_v27 = vpop.eup %6745 }
 0x29b   :  { %v832_v28 = vadd.f32 1.0, %v6746_v27 }
 0x29d   :  { %6749 = vrcp.f32 %v832_v28 }
 0x2a2   :  { %v6748_v29 = vpop.eup %6747 }
 0x2a7   :  { %v6750_v30 = vpop.eup %6749 }
 0x2a8   :  { %v7331_v31 = vadd.f32 %v6750_v30, %v6748_v29 }
 0x2aa   :  { %5914 = vmatpush3.msk.msra.mxu1 %vm179_vm0, %v7331_v31 }
 0x2ab   :  { %5916 = vmatmul.mubr.msk.f32.vlgmr.msra.gmra.mrb[8].mxu1 %vm497_vm4, %v1193_v32  ;;  %5924 = vmatprep.subr.mxu1 %v6970_v16 }
 0x2ac   :  { %5918 = vmatprep.mubr.msk.f32.mxu1 %vm6969_vm1, %v6970_v16  ;;  %5925 = vmatpush3.msk.msra.mxu1 %vm516_vm2, %v1287_v33  ;;  %vm7492_vm2 = vmpackc.low %vm1631_vm15, %vm1631_vm15 }
 0x2ad   :  { %5935 = vmatprep.subr.bf16.mxu1 %v6711_v36 }
 0x2af   :  { %5919 = vmatmul.mubr.msk.f32.gmra.mrb[10].mxu1 %vm497_vm4, %v1194_v34 }
 0x2b0   :  { %5921 = vmatprep.mubr.msk.f32.mxu1 %vm6969_vm1, %v6970_v16 }
 0x2b3   :  { %5922 = vmatmul.mubr.msk.f32.gmra.mrb[12].mxu1 %vm497_vm4, %v1195_v35  ;;  %vm1737_vm4 = vcmask 140288  }
 0x2b4   :  { %5926 = vmatprep.mubr.msk.f32.mxu1 %vm6969_vm1, %v6970_v16 }
 0x37e   :  { %v1273_v37 = vpop.f32.mrb[8].mxu1 }
 0x37f   :  { %v5917_v38 = vpop.f32.mrb[9].mxu1  ;;  %5927 = vmatmul.mubr.msk.f32.vlgmr.msra.gmra.mrb[14].mxu1 %vm512_vm6, %v1273_v37 }
 0x380   :  { %5929 = vmatprep.mubr.msk.f32.mxu1 %vm6969_vm1, %v6970_v16  ;;  %5936 = vmatpush3.bf16.msra.mxu1 %v6711_v36 }
 0x381   :  { %5937 = vmatprep.subr.bf16.mxu1 %v6712_v43 }
 0x382   :  { %v1278_v39 = vpop.f32.mrb[10].mxu1 }
 0x383   :  { %v5920_v40 = vpop.f32.mrb[11].mxu1  ;;  %5930 = vmatmul.mubr.msk.f32.gmra.mrb[16].mxu1 %vm512_vm6, %v1278_v39 }
 0x384   :  { %5932 = vmatprep.mubr.msk.f32.mxu1 %vm6969_vm1, %v6970_v16  ;;  %5938 = vmatpush3.bf16.msra.mxu1 %v6712_v43  ;;  %v842_v43 = vld [vmem:[%s7033_s3] sm:$0xff] }
 0x385   :  { %5939 = vmatprep.subr.bf16.mxu1 %v6713_v44 }
 0x386   :  { %v1283_v41 = vpop.f32.mrb[12].mxu1 }
 0x387   :  { %v5923_v42 = vpop.f32.mrb[13].mxu1  ;;  %5933 = vmatmul.mubr.msk.f32.gmra.mrb[18].mxu1 %vm512_vm6, %v1283_v41  ;;  %vm2633_vm6 = vcmask 195584  }
 0x388   :  { %5940 = vmatpush3.bf16.msra.mxu1 %v6713_v44  ;;  %v843_v44 = vld [vmem:[%s7033_s3 + $0x8] sm:$0xff] }
 0x389   :  { %5941 = vmatprep.subr.bf16.mxu1 %v6714_v45 }
 0x38c   :  { %5942 = vmatpush3.bf16.msra.mxu1 %v6714_v45  ;;  %v6428_v45 = vpack.c.bf16 %v843_v44, %v842_v43 }
 0x38d   :  { %6448 = vmatprep.subr.bf16.mxu1 %v6968_v7 }
 0x452   :  { %v1366_v46 = vpop.f32.mrb[14].mxu1 }
 0x453   :  { %v5928_v47 = vpop.f32.mrb[15].mxu1  ;;  %v1383_v51 = vmul.f32 %v1380_v48, %v1366_v46  ;;  %v844_v46 = vld [vmem:[%s7033_s3 + $0x10] sm:$0xff] }
 0x454   :  { %v845_v47 = vld [vmem:[%s7033_s3 + $0x18] sm:$0x7f] }
 0x455   :  { %v6431_v48 = vpack.c.bf16 %v845_v47, %v844_v46 }
 0x456   :  { %v1371_v50 = vpop.f32.mrb[16].mxu1 }
 0x457   :  { %v1384_v52 = vmul.f32 %v1381_v49, %v1371_v50  ;;  %v5931_v53 = vpop.f32.mrb[17].mxu1 }
 0x459   :  { %v1386_v55 = vpack.c.bf16 %v1384_v52, %v1383_v51 }
 0x45a   :  { %v1376_v56 = vpop.f32.mrb[18].mxu1 }
 0x45b   :  { %v1385_v57 = vmul.f32 %v1382_v54, %v1376_v56  ;;  %v5934_v58 = vpop.f32.mrb[19].mxu1  ;;  %5943 = vmatprep.mubr.msk.bf16.mxu1 %vm1423_vm8, %v1386_v55 }
 0x45c   :  { %v5225_v58 = vld [vmem:[%s7033_s3 + $0x40] sm:$0xff] }
 0x45d   :  { %v1387_v60 = vpack.c.bf16 %v1385_v57, %v1385_v57 }
 0x45f   :  { %5944 = vmatmul.mubr.msk.bf16.vlgmr.msra.gmra.mrb[20].mxu1 %vm1423_vm8, %v1387_v60  ;;  %v5226_v60 = vld [vmem:[%s7033_s3 + $0x48] sm:$0xff] }
 0x460   :  { %5961 = vmatprep.mubr.msk.f32.mxu1 %vm6969_vm1, %v6970_v16  ;;  %v6435_v62 = vpack.c.bf16 %v5226_v60, %v5225_v58 }
 0x532   :  { %v5945_v2 = vpop.f32.mrb[20].mxu1 }
 0x533   :  { %v1464_v4 = vpop.f32.mrb[21].mxu1  ;;  %v7372_v10 = vadd.f32 %v5945_v2, %v1398_v3  ;;  %v5227_v2 = vld [vmem:[%s7033_s3 + $0x50] sm:$0xff]  ;;  %v5228_v3 = vld [vmem:[%s7033_s3 + $0x58] sm:$0x7f] }
 0x534   :  { %v7370_v6 = vadd.f32 %v1464_v4, %v1396_v0  ;;  %v5946_v8 = vpop.f32.mrb[22].mxu1  ;;  %v6438_v4 = vpack.c.bf16 %v5228_v3, %v5227_v2 }
 0x535   :  { %v1467_v9 = vpop.f32.mrb[23].mxu1  ;;  %v1491_v14 = vsel %vm1490_vm10, %v7372_v10, 0.0  ;;  %v5231_v8 = vld [vmem:[%s7033_s3 + $0x60] sm:$0xff] }
 0x536   :  { %v7374_v11 = vadd.f32 %v1467_v9, %v1397_v5  ;;  %v1484_v12 = vsel %vm1483_vm9, %v7370_v6, 0.0  ;;  %v5232_v9 = vld [vmem:[%s7033_s3 + $0x68] sm:$0xff]  ;;  %s6982_s3 = smov 80  }
 0x537   :  { %1485 = vadd.xlane.f32.xlu0 %v1484_v12 }
 0x538   :  { %v1487_v13 = vsel %vm1483_vm9, %v7374_v11, 0.0 }
 0x539   :  { %1488 = vadd.xlane.f32.xlu1 %v1487_v13 }
 0x53b   :  { %1492 = vadd.xlane.f32.xlu0 %v1491_v14 }
 0x54a   :  { %847 = vperm.xlu1 %6596, %v7331_v31  }
 0x54e   :  { %6598 = vset.pattern.permute.xlu1 %v6973_v23 }
 0x54f   :  { %1011 = vperm.xlu1 %6598, %v7331_v31  }
 0x553   :  { %6599 = vset.pattern.permute.xlu1 %v6974_v24 }
 0x554   :  { %1098 = vperm.xlu1 %6599, %v7331_v31  }
 0x5c4   :  { %v1486_v26 = vpop.xlane.xlu0 %1485 }
 0x5c5   :  { %v1495_v28 = vmul.f32 0.03125, %v1486_v26 }
 0x5c6   :  { %v1489_v27 = vpop.xlane.xlu1 %1488 }
 0x5c7   :  { %v1498_v33 = vsub.f32 %v7370_v6, %v1495_v28  ;;  %v1496_v34 = vmul.f32 0.03125, %v1489_v27  ;;  %v5253_v27 = vld [vmem:[%s7073_s18] ss:$0 sm:$0xff] }
 0x5c8   :  { %v1493_v29 = vpop.xlane.xlu0 %1492 }
 0x5c9   :  { %v1497_v30 = vmul.f32 0.03125, %v1493_v29  ;;  %v1499_v38 = vsub.f32 %v7374_v11, %v1496_v34  ;;  %v1501_v40 = vmul.f32 %v1498_v33, %v1498_v33 }
 0x5ca   :  { %v848_v32 = vpop.permute.xlu1 %847 }
 0x5cb   :  { %v7399_v35 = vsub.f32 %v7372_v10, %v1497_v30  ;;  %v850_v36 = vmul.f32 %v848_v32, %v7316_v61  ;;  %v1504_v41 = vsel %vm1483_vm9, %v1501_v40, 0.0  ;;  %v1502_v42 = vmul.f32 %v1499_v38, %v1499_v38 }
 0x5cd   :  { %5878 = vmatmul.mubr.msk.f32.vlgmr.msra.gmra.mrb[8].mxu0 %vm856_vm14, %v850_v36  ;;  %v1503_v37 = vmul.f32 %v7399_v35, %v7399_v35  ;;  %v1507_v61 = vsel %vm1483_vm9, %v1502_v42, 0.0 }
 0x5ce   :  { %5888 = vmatprep.mubr.msk.f32.mxu0 %vm6969_vm1, %v6970_v16  ;;  %6429 = vmatpush3.bf16.msra.mxu0 %v6428_v45  ;;  %v1012_v12 = vpop.permute.xlu1 %1011 }
 0x5cf   :  { %v1510_v39 = vsel %vm1490_vm10, %v1503_v37, 0.0  ;;  %6430 = vmatprep.subr.bf16.mxu0 %v6968_v7  ;;  %v1014_v17 = vmul.f32 %v1012_v12, %v7318_v63  ;;  %v6715_v63 = vld [vmem:[%s7078_s26] sm:$0xff]  }
 0x5d0   :  { %1511 = vadd.xlane.f32.xlu0 %v1510_v39  ;;  %v5254_v39 = vld [vmem:[%s8303_s0] ss:$0 sm:$0xff] }
 0x5d2   :  { %6433 = vmatpush3.bf16.msk.msra.mxu0 %vm7387_vm13, %v6431_v48 }
 0x5d3   :  { %6434 = vmatprep.subr.bf16.mxu0 %v6968_v7  ;;  %v1099_v28 = vpop.permute.xlu1 %1098 }
 0x5d4   :  { %1505 = vadd.xlane.f32.xlu0 %v1504_v41  ;;  %v1101_v32 = vmul.f32 %v1099_v28, %v7320_v1 }
 0x5d8   :  { %1508 = vadd.xlane.f32.xlu0 %v1507_v61 }
 0x5ee   :  { %838 = vperm.xlu0 %6597, %v7331_v31  }
 0x5f2   :  { %6710 = vset.pattern.permute.xlu0 %v6974_v24  ;;  %v6445_v24 = vpack.c.bf16 %v5234_v19, %v5233_v18 }
 0x65d   :  { %v1512_v49 = vpop.xlane.xlu0 %1511 }
 0x65e   :  { %v1515_v53 = vmul.f32 0.03125, %v1512_v49 }
 0x660   :  { %v1518_v57 = vadd.f32 1e-05, %v1515_v53 }
 0x661   :  { %v1506_v50 = vpop.xlane.xlu0 %1505 }
 0x662   :  { %v1513_v51 = vmul.f32 0.03125, %v1506_v50 }
 0x664   :  { %v1516_v52 = vadd.f32 1e-05, %v1513_v51 }
 0x665   :  { %v1509_v54 = vpop.xlane.xlu0 %1508 }
 0x666   :  { %v1514_v55 = vmul.f32 0.03125, %v1509_v54  ;;  %6751 = vrsqrt.f32 %v1516_v52 }
 0x668   :  { %v1517_v56 = vadd.f32 1e-05, %v1514_v55 }
 0x66a   :  { %6753 = vrsqrt.f32 %v1517_v56 }
 0x66b   :  { %6755 = vrsqrt.f32 %v1518_v57 }
 0x66d   :  { %v839_v31 = vpop.permute.xlu0 %838 }
 0x66e   :  { %v841_v0 = vmul.f32 %v839_v31, %v7314_v59  ;;  %v6442_v59 = vpack.c.bf16 %v5232_v9, %v5231_v8 }
 0x670   :  { %5889 = vmatmul.mubr.msk.f32.vlgmr.msra.gmra.mrb[8].mxu0 %vm856_vm14, %v841_v0  ;;  %v6752_v5 = vpop.eup %6751 }
 0x671   :  { %6436 = vmatpush3.bf16.msra.mxu0 %v6435_v62  ;;  %5899 = vmatprep.mubr.msk.f32.mxu0 %vm6969_vm1, %v6970_v16  ;;  %v1522_v14 = vmul.f32 %v6752_v5, %v1498_v33  ;;  %v6716_v33 = vld [vmem:[%s7078_s26 + $0x8] sm:$0xff]  }
 0x672   :  { %6437 = vmatprep.subr.bf16.mxu0 %v6968_v7 }
 0x673   :  { %v1531_v25 = vmul.f32 %v5252_v20, %v1522_v14 }
 0x674   :  { %v6754_v13 = vpop.eup %6753 }
 0x675   :  { %6440 = vmatpush3.bf16.msk.msra.mxu0 %vm7387_vm13, %v6438_v4  ;;  %v1523_v15 = vmul.f32 %v6754_v13, %v1499_v38  ;;  %v6756_v21 = vpop.eup %6755  ;;  %v1540_v30 = vadd.f32 %v5253_v27, %v1531_v25 }
 0x676   :  { %6441 = vmatprep.subr.bf16.mxu0 %v6968_v7  ;;  %v1524_v26 = vmul.f32 %v6756_v21, %v7399_v35 }
 0x677   :  { %v1532_v23 = vmul.f32 %v5252_v20, %v1523_v15 }
 0x678   :  { %5900 = vmatmul.mubr.msk.f32.vlgmr.msra.gmra.mrb[8].mxu0 %vm856_vm14, %v1014_v17  ;;  %v1533_v34 = vmul.f32 %v5252_v20, %v1524_v26  ;;  %v1478_v20 = vld [vmem:[%s8306_s14] sm:$0xff]  ;;  %v1479_v26 = vld [vmem:[%s8306_s14 + $0x8] sm:$0xff] }
 0x679   :  { %6443 = vmatpush3.bf16.msra.mxu0 %v6442_v59  ;;  %5910 = vmatprep.mubr.msk.f32.mxu0 %vm6969_vm1, %v6970_v16  ;;  %v1541_v29 = vadd.f32 %v5253_v27, %v1532_v23 }
 0x67a   :  { %6444 = vmatprep.subr.bf16.mxu0 %v6968_v7  ;;  %v1542_v35 = vadd.f32 %v5253_v27, %v1533_v34 }
 0x67b   :  { %v1543_v36 = vpack.c.bf16 %v1541_v29, %v1540_v30 }
 0x67c   :  { %v1544_v37 = vpack.c.bf16 %v1542_v35, %v1542_v35 }
 0x67d   :  { %6447 = vmatpush3.bf16.msk.msra.mxu0 %vm7387_vm13, %v6445_v24 }
 0x67e   :  { %5947 = vmatprep.subr.bf16.mxu0 %v6715_v63 }
 0x680   :  { %5911 = vmatmul.mubr.msk.f32.vlgmr.msra.gmra.mrb[8].mxu0 %vm856_vm14, %v1101_v32  ;;  %v1480_v32 = vld [vmem:[%s8306_s14 + $0x10] sm:$0x3] }
 0x681   :  { %5948 = vmatpush3.bf16.msra.mxu0 %v6715_v63  ;;  %5951 = vmatprep.mubr.msk.bf16.mxu0 %vm1483_vm9, %v1543_v36 }
 0x682   :  { %5949 = vmatprep.subr.bf16.mxu0 %v6716_v33 }
 0x685   :  { %5950 = vmatpush3.bf16.msra.mxu0 %v6716_v33 }
 0x686   :  { %6452 = vmatprep.subr.bf16.mxu0 %v6968_v7 }
 0x688   :  { %5952 = vmatmul.mubr.msk.bf16.vlgmr.msra.gmra.mrb[12].mxu0 %vm1483_vm9, %v1544_v37 }
 0x689   :  { %5976 = vmatprep.mubr.msk.f32.mxu0 %vm6969_vm1, %v6970_v16 }
 0x753   :  { %v7455_v1 = vpop.f32.mrb[8].mxu0 }
 0x754   :  { %v5912_v22 = vpop.f32.mrb[9].mxu0 }
 0x75b   :  { %v5953_v38 = vpop.f32.mrb[12].mxu0 }
 0x75c   :  { %v1608_v40 = vpop.f32.mrb[13].mxu0  ;;  %v7464_v45 = vadd.f32 %v5953_v38, %v5254_v39 }
 0x75d   :  { %v5954_v41 = vpop.f32.mrb[14].mxu0  ;;  %v1609_v61 = vadd.f32 %v5254_v39, %v1608_v40 }
 0x75e   :  { %v1611_v42 = vpop.f32.mrb[15].mxu0 }
 0x75f   :  { %v1612_v43 = vadd.f32 %v5254_v39, %v1611_v42 }
 0x761   :  { %v7458_v44 = vpack.i.bf16 %v1612_v43, %v1609_v61 }
 0x763   :  { %6616 = vrot.lane.b32.xlu0 %v7458_v44, %s6976_s5  ;;  %6601 = vrot.lane.b32.xlu1 %v7458_v44, %s6977_s9 }
 0x767   :  { %2108 = vrot.lane.b32.xlu0 %v1612_v43, %s6978_s13  ;;  %1629 = vrot.lane.b32.xlu1 %v7464_v45, %s6977_s9 }
 0x76b   :  { %2358 = vrot.lane.b32.xlu0 %v7464_v45, %s6976_s5  ;;  %6606 = vrot.lane.b32.xlu1 %v7458_v44, %s6979_s17 }
 0x76f   :  { %2350 = vrot.lane.b32.xlu0 %v1612_v43, %s6980_s25  ;;  %1874 = vrot.lane.b32.xlu1 %v7464_v45, %s6979_s17 }
 0x773   :  { %1864 = vrot.lane.b32.xlu1 %v1609_v61, %s6981_s29 }
 0x777   :  { %6611 = vrot.lane.b32.xlu1 %v7458_v44, %s6982_s3 }
 0x77b   :  { %1868 = vrot.lane.b32.xlu1 %v7464_v45, %s6981_s29 }
 0x77f   :  { %1866 = vrot.lane.b32.xlu1 %v1612_v43, %s6981_s29 }
 0x783   :  { %2116 = vrot.lane.b32.xlu1 %v7464_v45, %s6982_s3 }
 0x787   :  { %2106 = vrot.lane.b32.xlu1 %v1609_v61, %s6978_s13 }
 0x78b   :  { %2110 = vrot.lane.b32.xlu1 %v7464_v45, %s6978_s13 }
 0x78f   :  { %2348 = vrot.lane.b32.xlu1 %v1609_v61, %s6980_s25 }
 0x793   :  { %2352 = vrot.lane.b32.xlu1 %v7464_v45, %s6980_s25 }
 0x7d5   :  { %v6602_v46 = vpop.permute.xlu1 %6601  ;;  %v6617_v3 = vpop.permute.xlu0 %6616 }
 0x7d6   :  { %v6604_v47 = vunpack.i.h.bf16 %v6602_v46  ;;  %v6603_v48 = vunpack.i.l.bf16 %v6602_v46  ;;  %v6619_v5 = vunpack.i.h.bf16 %v6617_v3  ;;  %v6618_v8 = vunpack.i.l.bf16 %v6617_v3 }
 0x7d8   :  { %v6449_v50 = vpack.c.bf16 %v6604_v47, %v6603_v48  ;;  %v6470_v9 = vpack.c.bf16 %v6619_v5, %v6618_v8 }
 0x7d9   :  { %v1630_v51 = vpop.permute.xlu1 %1629  ;;  %v2109_v13 = vpop.permute.xlu0 %2108 }
 0x7da   :  { %6451 = vmatpush3.bf16.xpose.msk.msra.mxu1 %vm7492_vm2, %v6449_v50 }
 0x7db   :  { %5959 = vmatprep.subr.mxu1 %v6970_v16 }
 0x7dd   :  { %v6607_v52 = vpop.permute.xlu1 %6606  ;;  %v2359_v14 = vpop.permute.xlu0 %2358 }
 0x7de   :  { %v6609_v53 = vunpack.i.h.bf16 %v6607_v52  ;;  %v6608_v54 = vunpack.i.l.bf16 %v6607_v52 }
 0x7e0   :  { %v6456_v56 = vpack.c.bf16 %v6609_v53, %v6608_v54 }
 0x7e1   :  { %v1875_v55 = vpop.permute.xlu1 %1874  ;;  %v2351_v17 = vpop.permute.xlu0 %2350 }
 0x7e2   :  { %5960 = vmatpush3.xpose.msk.msra.mxu1 %vm1631_vm15, %v1630_v51 }
 0x7e3   :  { %6455 = vmatprep.subr.bf16.mxu1 %v6968_v7 }
 0x7e5   :  { %v1865_v57 = vpop.permute.xlu1 %1864  ;;  %5962 = vmatmul.mubr.msk.f32.vlgmr.msra.gmra.mrb[24].mxu1 %vm1631_vm15, %v1609_v61 }
 0x7e6   :  { %6458 = vmatpush3.bf16.xpose.msk.msra.mxu1 %vm7492_vm2, %v6456_v56  ;;  %5964 = vmatprep.mubr.msk.f32.mxu1 %vm6969_vm1, %v6970_v16 }
 0x7e7   :  { %5989 = vmatprep.subr.mxu1 %v6970_v16 }
 0x7e9   :  { %v6612_v58 = vpop.permute.xlu1 %6611  ;;  %5965 = vmatmul.mubr.msk.f32.gmra.mrb[26].mxu1 %vm1631_vm15, %v1612_v43 }
 0x7ea   :  { %5967 = vmatprep.mubr.msk.f32.mxu1 %vm6969_vm1, %v6970_v16  ;;  %v6614_v60 = vunpack.i.h.bf16 %v6612_v58  ;;  %v6613_v31 = vunpack.i.l.bf16 %v6612_v58 }
 0x7ec   :  { %v6463_v0 = vpack.c.bf16 %v6614_v60, %v6613_v31 }
 0x7ed   :  { %v1869_v62 = vpop.permute.xlu1 %1868  ;;  %5968 = vmatmul.mubr.msk.f32.gmra.mrb[28].mxu1 %vm1631_vm15, %v7464_v45 }
 0x7ee   :  { %5990 = vmatpush3.xpose.msk.msra.mxu1 %vm1631_vm15, %v1875_v55  ;;  %5991 = vmatprep.mubr.msk.f32.mxu1 %vm6969_vm1, %v6970_v16 }
 0x7ef   :  { %6462 = vmatprep.subr.bf16.mxu1 %v6968_v7 }
 0x7f1   :  { %v1867_v2 = vpop.permute.xlu1 %1866  ;;  %5992 = vmatmul.mubr.msk.f32.vlgmr.msra.gmra.mrb[30].mxu1 %vm1631_vm15, %v1865_v57 }
 0x7f2   :  { %6465 = vmatpush3.bf16.xpose.msk.msra.mxu1 %vm7492_vm2, %v6463_v0  ;;  %5994 = vmatprep.mubr.msk.f32.mxu1 %vm6969_vm1, %v6970_v16 }
 0x7f3   :  { %6019 = vmatprep.subr.mxu1 %v6970_v16 }
 0x7f5   :  { %5995 = vmatmul.mubr.msk.f32.gmra.mrb[32].mxu1 %vm1631_vm15, %v1867_v2  ;;  %v2117_v4 = vpop.permute.xlu1 %2116 }
 0x7f6   :  { %5997 = vmatprep.mubr.msk.f32.mxu1 %vm6969_vm1, %v6970_v16 }
 0x7f9   :  { %5998 = vmatmul.mubr.msk.f32.gmra.mrb[34].mxu1 %vm1631_vm15, %v1869_v62  ;;  %v2107_v12 = vpop.permute.xlu1 %2106 }
 0x7fa   :  { %6020 = vmatpush3.xpose.msk.msra.mxu1 %vm1631_vm15, %v2117_v4  ;;  %6021 = vmatprep.mubr.msk.f32.mxu1 %vm6969_vm1, %v6970_v16 }
 0x7fb   :  { %6469 = vmatprep.subr.bf16.mxu1 %v6968_v7 }
 0x7fd   :  { %6022 = vmatmul.mubr.msk.f32.vlgmr.msra.gmra.mrb[36].mxu1 %vm1631_vm15, %v2107_v12  ;;  %v2111_v59 = vpop.permute.xlu1 %2110 }
 0x7fe   :  { %6472 = vmatpush3.bf16.xpose.msk.msra.mxu1 %vm7492_vm2, %v6470_v9  ;;  %6024 = vmatprep.mubr.msk.f32.mxu1 %vm6969_vm1, %v6970_v16 }
 0x7ff   :  { %6049 = vmatprep.subr.mxu1 %v6970_v16 }
 0x801   :  { %6025 = vmatmul.mubr.msk.f32.gmra.mrb[38].mxu1 %vm1631_vm15, %v2109_v13  ;;  %v2349_v15 = vpop.permute.xlu1 %2348 }
 0x802   :  { %6027 = vmatprep.mubr.msk.f32.mxu1 %vm6969_vm1, %v6970_v16 }
 0x805   :  { %6028 = vmatmul.mubr.msk.f32.gmra.mrb[40].mxu1 %vm1631_vm15, %v2111_v59  ;;  %v2353_v18 = vpop.permute.xlu1 %2352 }
 0x806   :  { %6050 = vmatpush3.xpose.msk.msra.mxu1 %vm1631_vm15, %v2359_v14  ;;  %6051 = vmatprep.mubr.msk.f32.mxu1 %vm6969_vm1, %v6970_v16 }
 0x809   :  { %6052 = vmatmul.mubr.msk.f32.vlgmr.msra.gmra.mrb[42].mxu1 %vm1631_vm15, %v2349_v15 }
 0x80a   :  { %6054 = vmatprep.mubr.msk.f32.mxu1 %vm6969_vm1, %v6970_v16 }
 0x80d   :  { %6055 = vmatmul.mubr.msk.f32.gmra.mrb[44].mxu1 %vm1631_vm15, %v2351_v17 }
 0x80e   :  { %6057 = vmatprep.mubr.msk.f32.mxu1 %vm6969_vm1, %v6970_v16 }
 0x811   :  { %6058 = vmatmul.mubr.msk.f32.gmra.mrb[46].mxu1 %vm1631_vm15, %v2353_v18 }
 0x8b8   :  { %v1710_v19 = vpop.f32.mrb[24].mxu1 }
 0x8b9   :  { %v1724_v21 = vmul.f32 0.35355338, %v1710_v19  ;;  %v5963_v23 = vpop.f32.mrb[25].mxu1 }
 0x8bb   :  { %v7551_v24 = vadd.f32 %v1724_v21, %v1478_v20 }
 0x8bc   :  { %v1715_v25 = vpop.f32.mrb[26].mxu1 }
 0x8bd   :  { %v1725_v63 = vmul.f32 0.35355338, %v1715_v25  ;;  %v5966_v27 = vpop.f32.mrb[27].mxu1  ;;  %v1731_v28 = vsel %vm1730_vm3, %v7551_v24, -inf }
 0x8be   :  { %1732 = vmax.xlane.f32.xlu0 %v1731_v28 }
 0x8bf   :  { %v7556_v29 = vadd.f32 %v1725_v63, %v1479_v26 }
 0x8c0   :  { %v1720_v30 = vpop.f32.mrb[28].mxu1 }
 0x8c1   :  { %v1726_v33 = vmul.f32 0.35355338, %v1720_v30  ;;  %v5969_v34 = vpop.f32.mrb[29].mxu1  ;;  %v1734_v36 = vsel %vm1730_vm3, %v7556_v29, -inf }
 0x8c2   :  { %1735 = vmax.xlane.f32.xlu1 %v1734_v36 }
 0x8c3   :  { %v7561_v35 = vadd.f32 %v1726_v33, %v1480_v32 }
 0x8c4   :  { %v1954_v37 = vpop.f32.mrb[30].mxu1 }
 0x8c5   :  { %v1968_v22 = vmul.f32 0.35355338, %v1954_v37  ;;  %v5993_v38 = vpop.f32.mrb[31].mxu1  ;;  %v1738_v39 = vsel %vm1737_vm4, %v7561_v35, -inf }
 0x8c6   :  { %1739 = vmax.xlane.f32.xlu0 %v1738_v39 }
 0x8c7   :  { %v7565_v40 = vadd.f32 %v1968_v22, %v1478_v20 }
 0x8c8   :  { %v1959_v41 = vpop.f32.mrb[32].mxu1 }
 0x8c9   :  { %v1969_v42 = vmul.f32 0.35355338, %v1959_v41  ;;  %v5996_v61 = vpop.f32.mrb[33].mxu1  ;;  %v1974_v43 = vsel %vm1730_vm3, %v7565_v40, -inf }
 0x8ca   :  { %1975 = vmax.xlane.f32.xlu0 %v1974_v43 }
 0x8cb   :  { %v7569_v46 = vadd.f32 %v1969_v42, %v1479_v26 }
 0x8cc   :  { %v1964_v47 = vpop.f32.mrb[34].mxu1 }
 0x8cd   :  { %v1970_v48 = vmul.f32 0.35355338, %v1964_v47  ;;  %v5999_v50 = vpop.f32.mrb[35].mxu1  ;;  %v1977_v51 = vsel %vm1730_vm3, %v7569_v46, -inf }
 0x8ce   :  { %1978 = vmax.xlane.f32.xlu1 %v1977_v51 }
 0x8cf   :  { %v7573_v52 = vadd.f32 %v1970_v48, %v1480_v32 }
 0x8d0   :  { %v2196_v53 = vpop.f32.mrb[36].mxu1 }
 0x8d1   :  { %v2210_v54 = vmul.f32 0.35355338, %v2196_v53  ;;  %v6023_v55 = vpop.f32.mrb[37].mxu1  ;;  %v1980_v56 = vsel %vm1737_vm4, %v7573_v52, -inf }
 0x8d2   :  { %1981 = vmax.xlane.f32.xlu0 %v1980_v56 }
 0x8d3   :  { %v7577_v57 = vadd.f32 %v2210_v54, %v1478_v20 }
 0x8d4   :  { %v2201_v58 = vpop.f32.mrb[38].mxu1 }
 0x8d5   :  { %v2211_v60 = vmul.f32 0.35355338, %v2201_v58  ;;  %v6026_v31 = vpop.f32.mrb[39].mxu1  ;;  %v2216_v62 = vsel %vm1730_vm3, %v7577_v57, -inf }
 0x8d6   :  { %2217 = vmax.xlane.f32.xlu1 %v2216_v62 }
 0x8d7   :  { %v7581_v0 = vadd.f32 %v2211_v60, %v1479_v26 }
 0x8d8   :  { %v2206_v2 = vpop.f32.mrb[40].mxu1 }
 0x8d9   :  { %v2212_v3 = vmul.f32 0.35355338, %v2206_v2  ;;  %v6029_v4 = vpop.f32.mrb[41].mxu1  ;;  %v2219_v5 = vsel %vm1730_vm3, %v7581_v0, -inf }
 0x8da   :  { %2220 = vmax.xlane.f32.xlu0 %v2219_v5 }
 0x8db   :  { %v7585_v8 = vadd.f32 %v2212_v3, %v1480_v32 }
 0x8dc   :  { %v2438_v9 = vpop.f32.mrb[42].mxu1 }
 0x8dd   :  { %v2452_v12 = vmul.f32 0.35355338, %v2438_v9  ;;  %v6053_v13 = vpop.f32.mrb[43].mxu1  ;;  %v2222_v59 = vsel %vm1737_vm4, %v7585_v8, -inf }
 0x8de   :  { %2223 = vmax.xlane.f32.xlu1 %v2222_v59 }
 0x8df   :  { %v7589_v14 = vadd.f32 %v2452_v12, %v1478_v20 }
 0x8e0   :  { %v2443_v15 = vpop.f32.mrb[44].mxu1 }
 0x8e1   :  { %v2453_v17 = vmul.f32 0.35355338, %v2443_v15  ;;  %v6056_v18 = vpop.f32.mrb[45].mxu1  ;;  %v2458_v19 = vsel %vm1730_vm3, %v7589_v14, -inf }
 0x8e2   :  { %2459 = vmax.xlane.f32.xlu0 %v2458_v19 }
 0x8e3   :  { %v7593_v21 = vadd.f32 %v2453_v17, %v1479_v26 }
 0x8e4   :  { %v2448_v23 = vpop.f32.mrb[46].mxu1 }
 0x8e5   :  { %v2454_v25 = vmul.f32 0.35355338, %v2448_v23  ;;  %v6059_v63 = vpop.f32.mrb[47].mxu1  ;;  %v2461_v27 = vsel %vm1730_vm3, %v7593_v21, -inf }
 0x8e6   :  { %2462 = vmax.xlane.f32.xlu1 %v2461_v27 }
 0x8e7   :  { %v7597_v28 = vadd.f32 %v2454_v25, %v1480_v32 }
 0x8e9   :  { %v2464_v20 = vsel %vm1737_vm4, %v7597_v28, -inf }
 0x8ea   :  { %2465 = vmax.xlane.f32.xlu0 %v2464_v20 }
 0x8f7   :  { %1769 = vrot.lane.b32.xlu1 %v7464_v45, %s6983_s19 }
 0x8fb   :  { %6626 = vrot.lane.b32.xlu1 %v7458_v44, %s6984_s24 }
 0x900   :  { %6621 = vrot.lane.b32.xlu0 %v7458_v44, %s6983_s19 }
 0x94b   :  { %v1733_v26 = vpop.xlane.xlu0 %1732 }
 0x94c   :  { %v1741_v30 = vsub.f32 %v7551_v24, %v1733_v26 }
 0x94e   :  { %v1744_v32 = vmul.f32 1.442695, %v1741_v30 }
 0x94f   :  { %v1736_v33 = vpop.xlane.xlu1 %1735 }
 0x950   :  { %6757 = vpow2.f32 %v1744_v32  ;;  %v1742_v34 = vsub.f32 %v7556_v29, %v1736_v33 }
 0x952   :  { %v1746_v36 = vmul.f32 1.442695, %v1742_v34 }
 0x953   :  { %v1740_v37 = vpop.xlane.xlu0 %1739 }
 0x954   :  { %6759 = vpow2.f32 %v1746_v36  ;;  %v1743_v22 = vsub.f32 %v7561_v35, %v1740_v37 }
 0x956   :  { %v1748_v38 = vmul.f32 1.442695, %v1743_v22 }
 0x957   :  { %v1976_v39 = vpop.xlane.xlu0 %1975 }
 0x958   :  { %6761 = vpow2.f32 %v1748_v38  ;;  %v1983_v41 = vsub.f32 %v7565_v40, %v1976_v39 }
 0x95a   :  { %v7611_v42 = vpop.eup %6757  ;;  %v1986_v61 = vmul.f32 1.442695, %v1983_v41 }
 0x95b   :  { %v1979_v43 = vpop.xlane.xlu1 %1978  ;;  %v1750_v24 = vsel %vm1730_vm3, %v7611_v42, 0.0 }
 0x95c   :  { %6763 = vpow2.f32 %v1986_v61  ;;  %v1984_v29 = vsub.f32 %v7569_v46, %v1979_v43  ;;  %1751 = vadd.xlane.f32.xlu1 %v1750_v24 }
 0x95e   :  { %v7616_v47 = vpop.eup %6759  ;;  %v1988_v48 = vmul.f32 1.442695, %v1984_v29 }
 0x95f   :  { %v1982_v35 = vpop.xlane.xlu0 %1981  ;;  %v1753_v50 = vsel %vm1730_vm3, %v7616_v47, 0.0 }
 0x960   :  { %6765 = vpow2.f32 %v1988_v48  ;;  %v1985_v40 = vsub.f32 %v7573_v52, %v1982_v35  ;;  %1754 = vadd.xlane.f32.xlu0 %v1753_v50 }
 0x962   :  { %v7621_v51 = vpop.eup %6761  ;;  %v1990_v53 = vmul.f32 1.442695, %v1985_v40 }
 0x963   :  { %v2218_v54 = vpop.xlane.xlu1 %2217  ;;  %v1756_v55 = vsel %vm1737_vm4, %v7621_v51, 0.0 }
 0x964   :  { %6767 = vpow2.f32 %v1990_v53  ;;  %v2225_v46 = vsub.f32 %v7577_v57, %v2218_v54  ;;  %1757 = vadd.xlane.f32.xlu1 %v1756_v55 }
 0x966   :  { %v7626_v56 = vpop.eup %6763  ;;  %v2228_v58 = vmul.f32 1.442695, %v2225_v46 }
 0x967   :  { %v2221_v60 = vpop.xlane.xlu0 %2220  ;;  %v1992_v31 = vsel %vm1730_vm3, %v7626_v56, 0.0 }
 0x968   :  { %6769 = vpow2.f32 %v2228_v58  ;;  %v2226_v52 = vsub.f32 %v7581_v0, %v2221_v60  ;;  %1993 = vadd.xlane.f32.xlu0 %v1992_v31 }
 0x96a   :  { %v7631_v62 = vpop.eup %6765  ;;  %v2230_v2 = vmul.f32 1.442695, %v2226_v52 }
 0x96b   :  { %v2224_v3 = vpop.xlane.xlu1 %2223  ;;  %v1995_v4 = vsel %vm1730_vm3, %v7631_v62, 0.0 }
 0x96c   :  { %6771 = vpow2.f32 %v2230_v2  ;;  %v2227_v57 = vsub.f32 %v7585_v8, %v2224_v3  ;;  %1996 = vadd.xlane.f32.xlu1 %v1995_v4 }
 0x96e   :  { %v7636_v5 = vpop.eup %6767  ;;  %v2232_v9 = vmul.f32 1.442695, %v2227_v57 }
 0x96f   :  { %v2460_v12 = vpop.xlane.xlu0 %2459  ;;  %v1998_v13 = vsel %vm1737_vm4, %v7636_v5, 0.0 }
 0x970   :  { %6773 = vpow2.f32 %v2232_v9  ;;  %v2467_v0 = vsub.f32 %v7589_v14, %v2460_v12  ;;  %1999 = vadd.xlane.f32.xlu1 %v1998_v13 }
 0x972   :  { %v7641_v59 = vpop.eup %6769  ;;  %v2470_v15 = vmul.f32 1.442695, %v2467_v0 }
 0x973   :  { %v2234_v17 = vsel %vm1730_vm3, %v7641_v59, 0.0  ;;  %v2463_v26 = vpop.xlane.xlu1 %2462 }
 0x974   :  { %6775 = vpow2.f32 %v2470_v15  ;;  %2235 = vadd.xlane.f32.xlu1 %v2234_v17  ;;  %v2468_v34 = vsub.f32 %v7593_v21, %v2463_v26 }
 0x976   :  { %v7645_v8 = vpop.eup %6771  ;;  %v2472_v36 = vmul.f32 1.442695, %v2468_v34 }
 0x977   :  { %v2466_v18 = vpop.xlane.xlu0 %2465  ;;  %v2237_v19 = vsel %vm1730_vm3, %v7645_v8, 0.0  ;;  %v1770_v33 = vpop.permute.xlu1 %1769 }
 0x978   :  { %2238 = vadd.xlane.f32.xlu0 %v2237_v19  ;;  %v2469_v37 = vsub.f32 %v7597_v28, %v2466_v18  ;;  %6777 = vpow2.f32 %v2472_v36 }
 0x97a   :  { %v7649_v23 = vpop.eup %6773  ;;  %v2474_v22 = vmul.f32 1.442695, %v2469_v37 }
 0x97b   :  { %v6622_v25 = vpop.permute.xlu0 %6621  ;;  %v2240_v14 = vsel %vm1737_vm4, %v7649_v23, 0.0  ;;  %v6627_v21 = vpop.permute.xlu1 %6626 }
 0x97c   :  { %v6624_v63 = vunpack.i.h.bf16 %v6622_v25  ;;  %2241 = vadd.xlane.f32.xlu1 %v2240_v14  ;;  %v6623_v27 = vunpack.i.l.bf16 %v6622_v25  ;;  %6779 = vpow2.f32 %v2474_v22  ;;  %v6629_v29 = vunpack.i.h.bf16 %v6627_v21 }
 0x97d   :  { %v6628_v48 = vunpack.i.l.bf16 %v6627_v21 }
 0x97e   :  { %v7653_v20 = vpop.eup %6775  ;;  %v6453_v30 = vpack.c.bf16 %v6624_v63, %v6623_v27 }
 0x97f   :  { %v2476_v32 = vsel %vm1730_vm3, %v7653_v20, 0.0  ;;  %v6460_v40 = vpack.c.bf16 %v6629_v29, %v6628_v48 }
 0x980   :  { %2477 = vadd.xlane.f32.xlu0 %v2476_v32  ;;  %6454 = vmatpush3.bf16.msra.mxu0 %v6453_v30 }
 0x981   :  { %5974 = vmatprep.subr.mxu0 %v6970_v16 }
 0x982   :  { %v7666_v38 = vpop.eup %6777 }
 0x983   :  { %v2479_v39 = vsel %vm1730_vm3, %v7666_v38, 0.0 }
 0x984   :  { %5975 = vmatpush3.msk.msra.mxu0 %vm179_vm0, %v1770_v33 }
 0x985   :  { %6459 = vmatprep.subr.bf16.mxu0 %v6968_v7 }
 0x986   :  { %v7670_v41 = vpop.eup %6779 }
 0x987   :  { %v2482_v61 = vsel %vm1737_vm4, %v7670_v41, 0.0 }
 0x98d   :  { %6631 = vrot.lane.b32.xlu1 %v7458_v44, %s6985_s30 }
 0x996   :  { %2011 = vrot.lane.b32.xlu0 %v7464_v45, %s6984_s24 }
 0x9b1   :  { %2480 = vadd.xlane.f32.xlu1 %v2479_v39 }
 0x9b5   :  { %2483 = vadd.xlane.f32.xlu0 %v2482_v61 }
 0x9c2   :  { %2253 = vrot.lane.b32.xlu1 %v7464_v45, %s6985_s30 }
 0x9c6   :  { %6636 = vrot.lane.b32.xlu1 %v7458_v44, %s6986_s12 }
 0x9ca   :  { %2495 = vrot.lane.b32.xlu1 %v7464_v45, %s6986_s12 }
 0x9e9   :  { %v1752_v28 = vpop.xlane.xlu1 %1751 }
 0x9ea   :  { %6781 = vrcp.f32 %v1752_v28 }
 0x9ed   :  { %v1755_v43 = vpop.xlane.xlu0 %1754 }
 0x9ee   :  { %6783 = vrcp.f32 %v1755_v43 }
 0x9f1   :  { %v1758_v24 = vpop.xlane.xlu1 %1757 }
 0x9f2   :  { %6785 = vrcp.f32 %v1758_v24 }
 0x9f4   :  { %v6782_v35 = vpop.eup %6781 }
 0x9f5   :  { %v1762_v50 = vmul.f32 %v6782_v35, %v7611_v42  ;;  %v1994_v46 = vpop.xlane.xlu0 %1993 }
 0x9f6   :  { %6787 = vrcp.f32 %v1994_v46 }
 0x9f7   :  { %5977 = vmatmul.mubr.msk.f32.vlgmr.msra.gmra.mrb[10].mxu0 %vm1730_vm3, %v1762_v50  ;;  %v6717_v50 = vld [vmem:[%s8307_s15] sm:$0xff]  }
 0x9f8   :  { %v6784_v53 = vpop.eup %6783  ;;  %6461 = vmatpush3.bf16.msra.mxu0 %v6460_v40  ;;  %5979 = vmatprep.mubr.msk.f32.mxu0 %vm6969_vm1, %v6970_v16 }
 0x9f9   :  { %v1997_v44 = vpop.xlane.xlu1 %1996  ;;  %v1763_v45 = vmul.f32 %v6784_v53, %v7616_v47  ;;  %6004 = vmatprep.subr.mxu0 %v6970_v16  ;;  %6075 = vmatprep.subr.bf16.mxu1 %v6717_v50 }
 0x9fa   :  { %6789 = vrcp.f32 %v1997_v44  ;;  %6076 = vmatpush3.bf16.msra.mxu1 %v6717_v50 }
 0x9fb   :  { %5980 = vmatmul.mubr.msk.f32.gmra.mrb[16].mxu0 %vm1730_vm3, %v1763_v45 }
 0x9fc   :  { %v6786_v54 = vpop.eup %6785  ;;  %5982 = vmatprep.mubr.msk.f32.mxu0 %vm6969_vm1, %v6970_v16 }
 0x9fd   :  { %v1764_v42 = vmul.f32 %v6786_v54, %v7621_v51  ;;  %v2000_v55 = vpop.xlane.xlu1 %1999 }
 0x9fe   :  { %6791 = vrcp.f32 %v2000_v55  ;;  %v6718_v55 = vld [vmem:[%s8307_s15 + $0x8] sm:$0xff]  }
 0x9ff   :  { %5983 = vmatmul.mubr.msk.f32.gmra.mrb[18].mxu0 %vm1730_vm3, %v1764_v42  ;;  %6077 = vmatprep.subr.bf16.mxu1 %v6718_v55 }
 0xa00   :  { %6006 = vmatprep.mubr.msk.f32.mxu0 %vm6969_vm1, %v6970_v16  ;;  %v6788_v2 = vpop.eup %6787  ;;  %6078 = vmatpush3.bf16.msra.mxu1 %v6718_v55 }
 0xa01   :  { %v2236_v58 = vpop.xlane.xlu1 %2235  ;;  %v2004_v51 = vmul.f32 %v6788_v2, %v7626_v56 }
 0xa02   :  { %6793 = vrcp.f32 %v2236_v58 }
 0xa04   :  { %v6790_v9 = vpop.eup %6789 }
 0xa05   :  { %v2239_v47 = vpop.xlane.xlu0 %2238  ;;  %v2005_v13 = vmul.f32 %v6790_v9, %v7631_v62 }
 0xa06   :  { %6795 = vrcp.f32 %v2239_v47 }
 0xa08   :  { %v6792_v0 = vpop.eup %6791 }
 0xa09   :  { %v2242_v60 = vpop.xlane.xlu1 %2241  ;;  %v2006_v56 = vmul.f32 %v6792_v0, %v7636_v5 }
 0xa0a   :  { %6797 = vrcp.f32 %v2242_v60 }
 0xa0c   :  { %v6794_v62 = vpop.eup %6793 }
 0xa0d   :  { %v6632_v31 = vpop.permute.xlu1 %6631  ;;  %v2478_v52 = vpop.xlane.xlu0 %2477  ;;  %v2246_v17 = vmul.f32 %v6794_v62, %v7641_v59 }
 0xa0e   :  { %v6634_v3 = vunpack.i.h.bf16 %v6632_v31  ;;  %v6633_v4 = vunpack.i.l.bf16 %v6632_v31  ;;  %6799 = vrcp.f32 %v2478_v52 }
 0xa10   :  { %v6467_v12 = vpack.c.bf16 %v6634_v3, %v6633_v4  ;;  %v6796_v19 = vpop.eup %6795 }
 0xa11   :  { %v2012_v57 = vpop.permute.xlu0 %2011  ;;  %v2247_v14 = vmul.f32 %v6796_v19, %v7645_v8 }
 0xa12   :  { %6005 = vmatpush3.msk.msra.mxu0 %vm179_vm0, %v2012_v57 }
 0xa13   :  { %6007 = vmatmul.mubr.msk.f32.vlgmr.msra.gmra.mrb[20].mxu0 %vm1730_vm3, %v2004_v51  ;;  %6466 = vmatprep.subr.bf16.mxu0 %v6968_v7 }
 0xa14   :  { %6468 = vmatpush3.bf16.msra.mxu0 %v6467_v12  ;;  %6009 = vmatprep.mubr.msk.f32.mxu0 %vm6969_vm1, %v6970_v16  ;;  %v6798_v63 = vpop.eup %6797 }
 0xa15   :  { %6034 = vmatprep.subr.mxu0 %v6970_v16  ;;  %v2248_v30 = vmul.f32 %v6798_v63, %v7649_v23 }
 0xa17   :  { %6010 = vmatmul.mubr.msk.f32.gmra.mrb[22].mxu0 %vm1730_vm3, %v2005_v13 }
 0xa18   :  { %6012 = vmatprep.mubr.msk.f32.mxu0 %vm6969_vm1, %v6970_v16  ;;  %v6800_v32 = vpop.eup %6799 }
 0xa19   :  { %v2488_v8 = vmul.f32 %v6800_v32, %v7653_v20 }
 0xa1b   :  { %6013 = vmatmul.mubr.msk.f32.gmra.mrb[24].mxu0 %vm1730_vm3, %v2006_v56 }
 0xa1c   :  { %6036 = vmatprep.mubr.msk.f32.mxu0 %vm6969_vm1, %v6970_v16 }
 0xa3e   :  { %v2481_v15 = vpop.xlane.xlu1 %2480 }
 0xa3f   :  { %6801 = vrcp.f32 %v2481_v15 }
 0xa42   :  { %v2254_v18 = vpop.permute.xlu1 %2253  ;;  %v2484_v5 = vpop.xlane.xlu0 %2483 }
 0xa43   :  { %6035 = vmatpush3.msk.msra.mxu0 %vm179_vm0, %v2254_v18  ;;  %6803 = vrcp.f32 %v2484_v5 }
 0xa44   :  { %6037 = vmatmul.mubr.msk.f32.vlgmr.msra.gmra.mrb[26].mxu0 %vm1730_vm3, %v2246_v17  ;;  %6473 = vmatprep.subr.bf16.mxu0 %v6968_v7 }
 0xa45   :  { %6039 = vmatprep.mubr.msk.f32.mxu0 %vm6969_vm1, %v6970_v16 }
 0xa46   :  { %v6637_v25 = vpop.permute.xlu1 %6636 }
 0xa47   :  { %v6639_v27 = vunpack.i.h.bf16 %v6637_v25  ;;  %v6638_v26 = vunpack.i.l.bf16 %v6637_v25 }
 0xa48   :  { %6040 = vmatmul.mubr.msk.f32.gmra.mrb[28].mxu0 %vm1730_vm3, %v2247_v14 }
 0xa49   :  { %v6474_v59 = vpack.c.bf16 %v6639_v27, %v6638_v26  ;;  %6042 = vmatprep.mubr.msk.f32.mxu0 %vm6969_vm1, %v6970_v16  ;;  %v6802_v34 = vpop.eup %6801 }
 0xa4a   :  { %v2496_v33 = vpop.permute.xlu1 %2495  ;;  %v2489_v23 = vmul.f32 %v6802_v34, %v7666_v38  ;;  %v5303_v34 = vld [vmem:[%s8308_s23] ss:$0 sm:$0xff] }
 0xa4b   :  { %6475 = vmatpush3.bf16.msra.mxu0 %v6474_v59 }
 0xa4c   :  { %6043 = vmatmul.mubr.msk.f32.gmra.mrb[30].mxu0 %vm1730_vm3, %v2248_v30  ;;  %6064 = vmatprep.subr.mxu0 %v6970_v16 }
 0xa4d   :  { %6066 = vmatprep.mubr.msk.f32.mxu0 %vm6969_vm1, %v6970_v16  ;;  %v6804_v36 = vpop.eup %6803 }
 0xa4e   :  { %v2490_v37 = vmul.f32 %v6804_v36, %v7670_v41 }
 0xa4f   :  { %6065 = vmatpush3.msk.msra.mxu0 %vm179_vm0, %v2496_v33 }
 0xa50   :  { %6067 = vmatmul.mubr.msk.f32.vlgmr.msra.gmra.mrb[32].mxu0 %vm1730_vm3, %v2488_v8 }
 0xa51   :  { %6069 = vmatprep.mubr.msk.f32.mxu0 %vm6969_vm1, %v6970_v16 }
 0xa54   :  { %6070 = vmatmul.mubr.msk.f32.gmra.mrb[34].mxu0 %vm1730_vm3, %v2489_v23 }
 0xa55   :  { %6072 = vmatprep.mubr.msk.f32.mxu0 %vm6969_vm1, %v6970_v16 }
 0xa58   :  { %6073 = vmatmul.mubr.msk.f32.gmra.mrb[36].mxu0 %vm1730_vm3, %v2490_v37 }
 0xaca   :  { %v1850_v20 = vpop.f32.mrb[10].mxu0 }
 0xacb   :  { %v5978_v22 = vpop.f32.mrb[11].mxu0 }
 0xace   :  { %v1855_v39 = vpop.f32.mrb[16].mxu0 }
 0xacf   :  { %v5981_v61 = vpop.f32.mrb[17].mxu0 }
 0xad2   :  { %v1860_v21 = vpop.f32.mrb[18].mxu0 }
 0xad3   :  { %v5984_v28 = vpop.f32.mrb[19].mxu0 }
 0xae6   :  { %v2092_v43 = vpop.f32.mrb[20].mxu0 }
 0xae7   :  { %v6008_v24 = vpop.f32.mrb[21].mxu0 }
 0xaea   :  { %v2097_v38 = vpop.f32.mrb[22].mxu0 }
 0xaeb   :  { %v6640_v29 = vpack.i.bf16 %v2097_v38, %v2092_v43  ;;  %v6011_v48 = vpop.f32.mrb[23].mxu0 }
 0xaed   :  { %6641 = vrot.lane.b32.xlu1 %v6640_v29, %s6987_s16 }
 0xaee   :  { %v2102_v35 = vpop.f32.mrb[24].mxu0 }
 0xaef   :  { %v6014_v41 = vpop.f32.mrb[25].mxu0 }
 0xaf1   :  { %2597 = vrot.lane.b32.xlu1 %v2102_v35, %s6987_s16 }
 0xb17   :  { %v2334_v40 = vpop.f32.mrb[26].mxu0 }
 0xb18   :  { %v6038_v53 = vpop.f32.mrb[27].mxu0 }
 0xb1b   :  { %v2339_v44 = vpop.f32.mrb[28].mxu0 }
 0xb1c   :  { %v6645_v45 = vpack.i.bf16 %v2339_v44, %v2334_v40  ;;  %v6041_v54 = vpop.f32.mrb[29].mxu0 }
 0xb1e   :  { %6646 = vrot.lane.b32.xlu1 %v6645_v45, %s6988_s20 }
 0xb1f   :  { %v2344_v42 = vpop.f32.mrb[30].mxu0 }
 0xb20   :  { %2609 = vrot.lane.b32.xlu0 %v2344_v42, %s6988_s20  ;;  %v6044_v46 = vpop.f32.mrb[31].mxu0 }
 0xb21   :  { %v6719_v46 = vld [vmem:[%s8309_s27] sm:$0xff]  }
 0xb22   :  { %6083 = vmatprep.subr.bf16.mxu0 %v6719_v46 }
 0xb23   :  { %v2576_v58 = vpop.f32.mrb[32].mxu0  ;;  %6084 = vmatpush3.bf16.msra.mxu0 %v6719_v46 }
 0xb24   :  { %v6068_v47 = vpop.f32.mrb[33].mxu0 }
 0xb27   :  { %v2581_v60 = vpop.f32.mrb[34].mxu0 }
 0xb28   :  { %v6650_v31 = vpack.i.bf16 %v2581_v60, %v2576_v58  ;;  %v6071_v52 = vpop.f32.mrb[35].mxu0  ;;  %v6720_v58 = vld [vmem:[%s8309_s27 + $0x8] sm:$0xff]  }
 0xb29   :  { %6085 = vmatprep.subr.bf16.mxu0 %v6720_v58 }
 0xb2a   :  { %6651 = vrot.lane.b32.xlu1 %v6650_v31, %s6989_s22  ;;  %6086 = vmatpush3.bf16.msra.mxu0 %v6720_v58 }
 0xb2b   :  { %v2586_v2 = vpop.f32.mrb[36].mxu0 }
 0xb2c   :  { %v6074_v3 = vpop.f32.mrb[37].mxu0 }
 0xb2e   :  { %2621 = vrot.lane.b32.xlu1 %v2586_v2, %s6989_s22 }
 0xb5f   :  { %v6642_v4 = vpop.permute.xlu1 %6641 }
 0xb60   :  { %v6644_v9 = vunpack.i.h.bf16 %v6642_v4  ;;  %v6643_v12 = vunpack.i.l.bf16 %v6642_v4 }
 0xb62   :  { %v2627_v15 = vsel %vm1631_vm15, %v1855_v39, %v6644_v9  ;;  %v2626_v62 = vsel %vm1631_vm15, %v1850_v20, %v6643_v12  ;;  %v5304_v12 = vld [vmem:[%s8310_s28] ss:$0 sm:$0xff] }
 0xb63   :  { %v2598_v51 = vpop.permute.xlu1 %2597 }
 0xb64   :  { %v2628_v14 = vsel %vm1631_vm15, %v1860_v21, %v2598_v51 }
 0xb90   :  { %v6647_v57 = vpop.permute.xlu1 %6646 }
 0xb91   :  { %v6649_v13 = vunpack.i.h.bf16 %v6647_v57  ;;  %v6648_v0 = vunpack.i.l.bf16 %v6647_v57 }
 0xb92   :  { %v2610_v17 = vpop.permute.xlu0 %2609 }
 0xb93   :  { %v2631_v5 = vsel %vm2629_vm5, %v2627_v15, %v6649_v13  ;;  %v2630_v25 = vsel %vm2629_vm5, %v2626_v62, %v6648_v0  ;;  %v2632_v26 = vsel %vm2629_vm5, %v2628_v14, %v2610_v17  ;;  %v5305_v17 = vld [vmem:[%s8311_s1] ss:$0 sm:$0xff] }
 0xb9c   :  { %v6652_v56 = vpop.permute.xlu1 %6651 }
 0xb9d   :  { %v6654_v18 = vunpack.i.h.bf16 %v6652_v56  ;;  %v6653_v19 = vunpack.i.l.bf16 %v6652_v56 }
 0xb9f   :  { %v2635_v63 = vsel %vm2633_vm6, %v2631_v5, %v6654_v18  ;;  %v2634_v27 = vsel %vm2633_vm6, %v2630_v25, %v6653_v19 }
 0xba0   :  { %v2637_v59 = vpack.c.bf16 %v2635_v63, %v2634_v27  ;;  %v2622_v30 = vpop.permute.xlu1 %2621 }
 0xba1   :  { %v2636_v32 = vsel %vm2633_vm6, %v2632_v26, %v2622_v30  ;;  %v6722_v30 = vld [vmem:[%s8312_s4 + $0x8] sm:$0xff]  }
 0xba2   :  { %v2638_v8 = vpack.c.bf16 %v2636_v32, %v2636_v32  ;;  %6079 = vmatprep.mubr.msk.bf16.mxu1 %vm1483_vm9, %v2637_v59  ;;  %v6721_v59 = vld [vmem:[%s8312_s4] sm:$0xff]   ;;  %v6723_v32 = vld [vmem:[%s8312_s4 + $0x10] sm:$0xff]  }
 0xba3   :  { %6091 = vmatprep.subr.bf16.mxu1 %v6721_v59 }
 0xba4   :  { %6080 = vmatmul.mubr.msk.bf16.vlgmr.msra.gmra.mrb[48].mxu1 %vm1483_vm9, %v2638_v8  ;;  %v6724_v8 = vld [vmem:[%s8312_s4 + $0x18] sm:$0xff]  }
 0xba5   :  { %6092 = vmatpush3.bf16.msra.mxu1 %v6721_v59 }
 0xba6   :  { %6093 = vmatprep.subr.bf16.mxu1 %v6722_v30 }
 0xba9   :  { %6094 = vmatpush3.bf16.msra.mxu1 %v6722_v30 }
 0xbaa   :  { %6095 = vmatprep.subr.bf16.mxu1 %v6723_v32 }
 0xbad   :  { %6096 = vmatpush3.bf16.msra.mxu1 %v6723_v32 }
 0xbae   :  { %6097 = vmatprep.subr.bf16.mxu1 %v6724_v8 }
 0xbb1   :  { %6098 = vmatpush3.bf16.msra.mxu1 %v6724_v8 }
 0xc77   :  { %v6081_v33 = vpop.f32.mrb[48].mxu1 }
 0xc78   :  { %v2695_v23 = vpop.f32.mrb[49].mxu1  ;;  %v2711_v36 = vadd.f32 %v6081_v33, %v7372_v10  ;;  %v6725_v33 = vld [vmem:[%s8312_s4 + $0x20] sm:$0xff]  }
 0xc79   :  { %v2709_v37 = vadd.f32 %v2695_v23, %v7370_v6  ;;  %v6082_v20 = vpop.f32.mrb[50].mxu1  ;;  %6099 = vmatprep.subr.bf16.mxu1 %v6725_v33  ;;  %v6727_v23 = vld [vmem:[%s8312_s4 + $0x30] sm:$0xff]  }
 0xc7a   :  { %v2698_v22 = vpop.f32.mrb[51].mxu1  ;;  %v7759_v21 = vadd.f32 %v5303_v34, %v2711_v36  ;;  %6100 = vmatpush3.bf16.msra.mxu1 %v6725_v33  ;;  %v6728_v36 = vld [vmem:[%s8312_s4 + $0x38] sm:$0xff]  }
 0xc7b   :  { %v7756_v39 = vadd.f32 %v5303_v34, %v2709_v37  ;;  %v2710_v61 = vadd.f32 %v2698_v22, %v7374_v11  ;;  %v5306_v37 = vld [vmem:[%s8313_s21] ss:$0 sm:$0xff] }
 0xc7c   :  { %v2730_v6 = vsel %vm1490_vm10, %v7759_v21, 0.0 }
 0xc7d   :  { %v7761_v28 = vadd.f32 %v5303_v34, %v2710_v61  ;;  %v2724_v43 = vsel %vm1483_vm9, %v7756_v39, 0.0  ;;  %v6726_v34 = vld [vmem:[%s8312_s4 + $0x28] sm:$0xff]  }
 0xc7e   :  { %2725 = vadd.xlane.f32.xlu1 %v2724_v43  ;;  %6101 = vmatprep.subr.bf16.mxu1 %v6726_v34 }
 0xc7f   :  { %v2727_v24 = vsel %vm1483_vm9, %v7761_v28, 0.0  ;;  %6102 = vmatpush3.bf16.msra.mxu1 %v6726_v34 }
 0xc80   :  { %2728 = vadd.xlane.f32.xlu0 %v2727_v24  ;;  %6103 = vmatprep.subr.bf16.mxu1 %v6727_v23 }
 0xc82   :  { %2731 = vadd.xlane.f32.xlu1 %v2730_v6 }
 0xc83   :  { %6104 = vmatpush3.bf16.msra.mxu1 %v6727_v23 }
 0xc84   :  { %6105 = vmatprep.subr.bf16.mxu1 %v6728_v36 }
 0xc87   :  { %6106 = vmatpush3.bf16.msra.mxu1 %v6728_v36 }
 0xc88   :  { %6483 = vmatprep.subr.bf16.mxu1 %v6968_v7 }
 0xd0b   :  { %v2726_v10 = vpop.xlane.xlu1 %2725 }
 0xd0c   :  { %v2733_v38 = vmul.f32 0.03125, %v2726_v10 }
 0xd0d   :  { %v2729_v29 = vpop.xlane.xlu0 %2728 }
 0xd0e   :  { %v2736_v11 = vsub.f32 %v7756_v39, %v2733_v38  ;;  %v2734_v48 = vmul.f32 0.03125, %v2729_v29 }
 0xd0f   :  { %v2732_v35 = vpop.xlane.xlu1 %2731 }
 0xd10   :  { %v2737_v41 = vsub.f32 %v7761_v28, %v2734_v48  ;;  %v2735_v50 = vmul.f32 0.03125, %v2732_v35  ;;  %v2739_v40 = vmul.f32 %v2736_v11, %v2736_v11 }
 0xd12   :  { %v2738_v53 = vsub.f32 %v7759_v21, %v2735_v50  ;;  %v2742_v44 = vsel %vm1483_vm9, %v2739_v40, 0.0  ;;  %v2740_v45 = vmul.f32 %v2737_v41, %v2737_v41 }
 0xd13   :  { %2743 = vadd.xlane.f32.xlu1 %v2742_v44 }
 0xd14   :  { %v2745_v54 = vsel %vm1483_vm9, %v2740_v45, 0.0  ;;  %v2741_v42 = vmul.f32 %v2738_v53, %v2738_v53 }
 0xd15   :  { %2746 = vadd.xlane.f32.xlu0 %v2745_v54 }
 0xd16   :  { %v2748_v55 = vsel %vm1490_vm10, %v2741_v42, 0.0 }
 0xd17   :  { %2749 = vadd.xlane.f32.xlu1 %v2748_v55 }
 0xda0   :  { %v2744_v47 = vpop.xlane.xlu1 %2743 }
 0xda1   :  { %v2751_v60 = vmul.f32 0.03125, %v2744_v47 }
 0xda2   :  { %v2747_v31 = vpop.xlane.xlu0 %2746 }
 0xda3   :  { %v2754_v52 = vadd.f32 1e-05, %v2751_v60  ;;  %v2752_v2 = vmul.f32 0.03125, %v2747_v31 }
 0xda4   :  { %v2750_v3 = vpop.xlane.xlu1 %2749 }
 0xda5   :  { %6805 = vrsqrt.f32 %v2754_v52  ;;  %v2755_v4 = vadd.f32 1e-05, %v2752_v2  ;;  %v2753_v51 = vmul.f32 0.03125, %v2750_v3 }
 0xda7   :  { %6807 = vrsqrt.f32 %v2755_v4  ;;  %v2756_v57 = vadd.f32 1e-05, %v2753_v51 }
 0xda9   :  { %6809 = vrsqrt.f32 %v2756_v57 }
 0xdaf   :  { %v6806_v9 = vpop.eup %6805 }
 0xdb0   :  { %v2760_v13 = vmul.f32 %v6806_v9, %v2736_v11 }
 0xdb1   :  { %v6808_v0 = vpop.eup %6807 }
 0xdb2   :  { %v2761_v56 = vmul.f32 %v6808_v0, %v2737_v41  ;;  %v2769_v15 = vmul.f32 %v5304_v12, %v2760_v13 }
 0xdb3   :  { %v6810_v62 = vpop.eup %6809 }
 0xdb4   :  { %v2762_v18 = vmul.f32 %v6810_v62, %v2738_v53  ;;  %v2770_v19 = vmul.f32 %v5304_v12, %v2761_v56  ;;  %v2778_v25 = vadd.f32 %v5305_v17, %v2769_v15 }
 0xdb6   :  { %v2771_v5 = vmul.f32 %v5304_v12, %v2762_v18  ;;  %v2779_v14 = vadd.f32 %v5305_v17, %v2770_v19 }
 0xdb8   :  { %v2780_v63 = vadd.f32 %v5305_v17, %v2771_v5  ;;  %v2781_v27 = vpack.c.bf16 %v2779_v14, %v2778_v25 }
 0xdba   :  { %v2782_v26 = vpack.c.bf16 %v2780_v63, %v2780_v63  ;;  %6087 = vmatprep.mubr.msk.bf16.mxu0 %vm1483_vm9, %v2781_v27 }
 0xdbc   :  { %6088 = vmatmul.mubr.msk.bf16.vlgmr.msra.gmra.mrb[40].mxu0 %vm1483_vm9, %v2782_v26 }
 0xe8f   :  { %v6089_v20 = vpop.f32.mrb[40].mxu0 }
 0xe90   :  { %v7791_v22 = vadd.f32 %v6089_v20, %v5306_v37  ;;  %v2846_v61 = vpop.f32.mrb[41].mxu0 }
 0xe91   :  { %v7793_v43 = vadd.f32 %v5306_v37, %v2846_v61  ;;  %v6090_v24 = vpop.f32.mrb[42].mxu0 }
 0xe92   :  { %v7796_v6 = vmul.f32 0.70710677, %v7791_v22  ;;  %v2849_v10 = vpop.f32.mrb[43].mxu0 }
 0xe93   :  { %v7799_v38 = vmul.f32 0.70710677, %v7793_v43  ;;  %v7801_v29 = vadd.f32 %v5306_v37, %v2849_v10 }
 0xe94   :  { %v2874_v11 = vand.u32 2147483647, %v7796_v6  ;;  %vm2868_vm7 = vcmp.ge.f32.partialorder %v7796_v6, 0.0 }
 0xe95   :  { %v2872_v48 = vand.u32 2147483647, %v7799_v38  ;;  %v7806_v41 = vmul.f32 0.70710677, %v7801_v29  ;;  %vm2866_vm8 = vcmp.ge.f32.partialorder %v7799_v38, 0.0 }
 0xe96   :  { %v2877_v35 = vmul.f32 0.3275911, %v2874_v11  ;;  %v2916_v42 = vsub.f32 0.0, %v2874_v11 }
 0xe97   :  { %v2875_v50 = vmul.f32 0.3275911, %v2872_v48  ;;  %v2873_v53 = vand.u32 2147483647, %v7806_v41  ;;  %v2914_v55 = vsub.f32 0.0, %v2872_v48  ;;  %vm2867_vm11 = vcmp.ge.f32.partialorder %v7806_v41, 0.0 }
 0xe98   :  { %v2880_v40 = vadd.f32 1.0, %v2877_v35  ;;  %v2919_v58 = vmul.f32 %v2916_v42, %v2874_v11 }
 0xe99   :  { %v2878_v44 = vadd.f32 1.0, %v2875_v50  ;;  %v2876_v45 = vmul.f32 0.3275911, %v2873_v53  ;;  %v2915_v47 = vsub.f32 0.0, %v2873_v53  ;;  %v2917_v52 = vmul.f32 %v2914_v55, %v2872_v48 }
 0xe9a   :  { %6811 = vrcp.f32 %v2880_v40  ;;  %v2924_v51 = vmul.f32 1.442695, %v2919_v58  ;;  %v6990_v50 = vmov -1.0  }
 0xe9b   :  { %6813 = vrcp.f32 %v2878_v44  ;;  %v2879_v54 = vadd.f32 1.0, %v2876_v45  ;;  %v2918_v9 = vmul.f32 %v2915_v47, %v2873_v53  ;;  %v2920_v13 = vmul.f32 1.442695, %v2917_v52 }
 0xe9c   :  { %v2871_v40 = vsel %vm2868_vm7, 1.0, %v6990_v50  ;;  %v2869_v45 = vsel %vm2866_vm8, 1.0, %v6990_v50  ;;  %v2862_v47 = vmul.f32 0.5, %v7791_v22 }
 0xe9d   :  { %6815 = vrcp.f32 %v2879_v54  ;;  %v2922_v18 = vmul.f32 1.442695, %v2918_v9  ;;  %v5319_v9 = vld [vmem:[%s8314_s7] ss:$0 sm:$0xff] }
 0xe9e   :  { %6817 = vpow2.f32 %v2924_v51 }
 0xe9f   :  { %6819 = vpow2.f32 %v2920_v13 }
 0xea0   :  { %6821 = vpow2.f32 %v2922_v18 }
 0xea4   :  { %v6812_v46 = vpop.eup %6811 }
 0xea5   :  { %v6814_v60 = vpop.eup %6813  ;;  %v2889_v31 = vmul.f32 1.0614054, %v6812_v46 }
 0xea6   :  { %v2887_v2 = vmul.f32 1.0614054, %v6814_v60 }
 0xea7   :  { %v2892_v3 = vadd.f32 -1.4531521, %v2889_v31  ;;  %v6816_v4 = vpop.eup %6815  ;;  %v2861_v31 = vmul.f32 0.5, %v7801_v29 }
 0xea8   :  { %v2890_v57 = vadd.f32 -1.4531521, %v2887_v2  ;;  %v2888_v0 = vmul.f32 1.0614054, %v6816_v4  ;;  %v6818_v36 = vpop.eup %6817 }
 0xea9   :  { %v2895_v12 = vmul.f32 %v6812_v46, %v2892_v3  ;;  %v6820_v20 = vpop.eup %6819 }
 0xeaa   :  { %v2893_v56 = vmul.f32 %v6814_v60, %v2890_v57  ;;  %v2891_v62 = vadd.f32 -1.4531521, %v2888_v0  ;;  %v6822_v35 = vpop.eup %6821 }
 0xeab   :  { %v2898_v15 = vadd.f32 1.4214138, %v2895_v12 }
 0xeac   :  { %v2896_v17 = vadd.f32 1.4214138, %v2893_v56  ;;  %v2894_v5 = vmul.f32 %v6816_v4, %v2891_v62 }
 0xead   :  { %v2901_v19 = vmul.f32 %v6812_v46, %v2898_v15 }
 0xeae   :  { %v2899_v25 = vmul.f32 %v6814_v60, %v2896_v17  ;;  %v2897_v63 = vadd.f32 1.4214138, %v2894_v5 }
 0xeaf   :  { %v2904_v14 = vadd.f32 -0.28449672, %v2901_v19 }
 0xeb0   :  { %v2902_v27 = vadd.f32 -0.28449672, %v2899_v25  ;;  %v2900_v59 = vmul.f32 %v6816_v4, %v2897_v63 }
 0xeb1   :  { %v2907_v26 = vmul.f32 %v6812_v46, %v2904_v14 }
 0xeb2   :  { %v2905_v30 = vmul.f32 %v6814_v60, %v2902_v27  ;;  %v2903_v8 = vadd.f32 -0.28449672, %v2900_v59 }
 0xeb3   :  { %v2910_v32 = vadd.f32 0.2548296, %v2907_v26 }
 0xeb4   :  { %v2908_v33 = vadd.f32 0.2548296, %v2905_v30  ;;  %v2906_v23 = vmul.f32 %v6816_v4, %v2903_v8 }
 0xeb5   :  { %v2913_v34 = vmul.f32 %v6812_v46, %v2910_v32  ;;  %v2870_v46 = vsel %vm2867_vm11, 1.0, %v6990_v50 }
 0xeb6   :  { %v2911_v37 = vmul.f32 %v6814_v60, %v2908_v33  ;;  %v2909_v24 = vadd.f32 0.2548296, %v2906_v23  ;;  %v2860_v60 = vmul.f32 0.5, %v7793_v43  ;;  %v6729_v23 = vld [vmem:[%s7078_s26 + $0x10] sm:$0xff]  }
 0xeb7   :  { %v2928_v61 = vmul.f32 %v6818_v36, %v2913_v34  ;;  %6111 = vmatprep.subr.bf16.mxu0 %v6729_v23  ;;  %v6730_v36 = vld [vmem:[%s7078_s26 + $0x18] sm:$0xff]   ;;  %s8317_s26 = sld [smem:[#allocation6_spill]] }
 0xeb8   :  { %v2926_v10 = vmul.f32 %v6820_v20, %v2911_v37  ;;  %v2912_v48 = vmul.f32 %v6816_v4, %v2909_v24  ;;  %6112 = vmatpush3.bf16.msra.mxu0 %v6729_v23 }
 0xeb9   :  { %v2931_v11 = vsub.f32 1.0, %v2928_v61  ;;  %6113 = vmatprep.subr.bf16.mxu0 %v6730_v36 }
 0xeba   :  { %v2929_v53 = vsub.f32 1.0, %v2926_v10  ;;  %v2927_v54 = vmul.f32 %v6822_v35, %v2912_v48 }
 0xebb   :  { %v2934_v44 = vmul.f32 %v2931_v11, %v2871_v40 }
 0xebc   :  { %v2932_v42 = vmul.f32 %v2929_v53, %v2869_v45  ;;  %v2930_v6 = vsub.f32 1.0, %v2927_v54  ;;  %6114 = vmatpush3.bf16.msra.mxu0 %v6730_v36 }
 0xebd   :  { %v2937_v55 = vadd.f32 1.0, %v2934_v44  ;;  %6476 = vmatprep.subr.bf16.mxu0 %v6968_v7  ;;  %v5322_v44 = vld [vmem:[%s7068_s11 + $0x1] ss:$0 sm:$0xff]  ;;  %s8315_s11 = sld [smem:[#allocation21_spill]] }
 0xebe   :  { %v2935_v38 = vadd.f32 1.0, %v2932_v42  ;;  %v2933_v58 = vmul.f32 %v2930_v6, %v2870_v46  ;;  %v5323_v46 = vld [vmem:[%s7073_s18 + $0x1] ss:$0 sm:$0xff]  ;;  %s8316_s18 = sld [smem:[#allocation17_spill]] }
 0xebf   :  { %v2940_v2 = vmul.f32 %v2937_v55, %v2862_v47 }
 0xec0   :  { %v2936_v52 = vadd.f32 1.0, %v2933_v58  ;;  %v2938_v3 = vmul.f32 %v2935_v38, %v2860_v60 }
 0xec1   :  { %v2942_v51 = vpack.c.bf16 %v2940_v2, %v2940_v2 }
 0xec2   :  { %v2939_v4 = vmul.f32 %v2936_v52, %v2861_v31 }
 0xec4   :  { %v2941_v41 = vpack.c.bf16 %v2939_v4, %v2938_v3  ;;  %v5329_v4 = vld [vmem:[%s8303_s0 + $0x1] ss:$0 sm:$0xff]  ;;  %s8318_s0 = sld [smem:[#allocation20_spill]] }
 0xec6   :  { %6107 = vmatprep.mubr.bf16.mxu1 %v2941_v41 }
 0xec7   :  { %6108 = vmatmul.mubr.bf16.vlgmr.msra.gmra.mrb[52].mxu1 %v2942_v51 }
 0xec8   :  { %6155 = vmatprep.mubr.msk.f32.mxu1 %vm6969_vm1, %v6970_v16 }
 0xf9a   :  { %v6109_v57 = vpop.f32.mrb[52].mxu1 }
 0xf9b   :  { %v3041_v12 = vpop.f32.mrb[53].mxu1  ;;  %v3057_v22 = vadd.f32 %v6109_v57, %v7759_v21 }
 0xf9c   :  { %v3055_v43 = vadd.f32 %v3041_v12, %v7756_v39  ;;  %v6110_v13 = vpop.f32.mrb[54].mxu1 }
 0xf9d   :  { %v3044_v29 = vpop.f32.mrb[55].mxu1  ;;  %v7826_v15 = vadd.f32 %v5319_v9, %v3057_v22 }
 0xf9e   :  { %v7823_v0 = vadd.f32 %v5319_v9, %v3055_v43  ;;  %v3056_v56 = vadd.f32 %v3044_v29, %v7761_v28 }
 0xf9f   :  { %v3078_v39 = vsel %vm1490_vm10, %v7826_v15, 0.0 }
 0xfa0   :  { %v7828_v62 = vadd.f32 %v5319_v9, %v3056_v56  ;;  %v3072_v17 = vsel %vm1483_vm9, %v7823_v0, 0.0 }
 0xfa1   :  { %3073 = vadd.xlane.f32.xlu0 %v3072_v17 }
 0xfa2   :  { %v3075_v18 = vsel %vm1483_vm9, %v7828_v62, 0.0 }
 0xfa3   :  { %3076 = vadd.xlane.f32.xlu1 %v3075_v18 }
 0xfa5   :  { %3079 = vadd.xlane.f32.xlu0 %v3078_v39 }
0x102e   :  { %v3074_v21 = vpop.xlane.xlu0 %3073 }
0x102f   :  { %v3081_v19 = vmul.f32 0.03125, %v3074_v21 }
0x1030   :  { %v3077_v5 = vpop.xlane.xlu1 %3076 }
0x1031   :  { %v3084_v28 = vsub.f32 %v7823_v0, %v3081_v19  ;;  %v3082_v25 = vmul.f32 0.03125, %v3077_v5 }
0x1032   :  { %v3080_v14 = vpop.xlane.xlu0 %3079 }
0x1033   :  { %v3085_v63 = vsub.f32 %v7828_v62, %v3082_v25  ;;  %v3083_v27 = vmul.f32 0.03125, %v3080_v14  ;;  %v3087_v26 = vmul.f32 %v3084_v28, %v3084_v28 }
0x1035   :  { %v3086_v59 = vsub.f32 %v7826_v15, %v3083_v27  ;;  %v3090_v30 = vsel %vm1483_vm9, %v3087_v26, 0.0  ;;  %v3088_v32 = vmul.f32 %v3085_v63, %v3085_v63 }
0x1036   :  { %3091 = vadd.xlane.f32.xlu1 %v3090_v30 }
0x1037   :  { %v3093_v8 = vsel %vm1483_vm9, %v3088_v32, 0.0  ;;  %v3089_v33 = vmul.f32 %v3086_v59, %v3086_v59 }
0x1038   :  { %3094 = vadd.xlane.f32.xlu0 %v3093_v8 }
0x1039   :  { %v3096_v34 = vsel %vm1490_vm10, %v3089_v33, 0.0 }
0x103a   :  { %3097 = vadd.xlane.f32.xlu1 %v3096_v34 }
0x10c3   :  { %v3092_v37 = vpop.xlane.xlu1 %3091 }
0x10c4   :  { %v3099_v20 = vmul.f32 0.03125, %v3092_v37 }
0x10c5   :  { %v3095_v61 = vpop.xlane.xlu0 %3094 }
0x10c6   :  { %v3102_v24 = vadd.f32 1e-05, %v3099_v20  ;;  %v3100_v10 = vmul.f32 0.03125, %v3095_v61 }
0x10c7   :  { %v3098_v11 = vpop.xlane.xlu1 %3097 }
0x10c8   :  { %6823 = vrsqrt.f32 %v3102_v24  ;;  %v3103_v48 = vadd.f32 1e-05, %v3100_v10  ;;  %v3101_v35 = vmul.f32 0.03125, %v3098_v11 }
0x10ca   :  { %6825 = vrsqrt.f32 %v3103_v48  ;;  %v3104_v40 = vadd.f32 1e-05, %v3101_v35 }
0x10cc   :  { %6827 = vrsqrt.f32 %v3104_v40 }
0x10d2   :  { %v6824_v53 = vpop.eup %6823 }
0x10d3   :  { %v3108_v45 = vmul.f32 %v6824_v53, %v3084_v28 }
0x10d4   :  { %v6826_v54 = vpop.eup %6825 }
0x10d5   :  { %v3109_v42 = vmul.f32 %v6826_v54, %v3085_v63  ;;  %v3117_v6 = vmul.f32 %v5322_v44, %v3108_v45  ;;  %v6903_v54 = vld [vmem:[%s8306_s14] sm:$0xff] }
0x10d6   :  { %v6828_v55 = vpop.eup %6827 }
0x10d7   :  { %v3110_v38 = vmul.f32 %v6828_v55, %v3086_v59  ;;  %v3118_v58 = vmul.f32 %v5322_v44, %v3109_v42  ;;  %v3126_v47 = vadd.f32 %v5323_v46, %v3117_v6 }
0x10d9   :  { %v3127_v60 = vadd.f32 %v5323_v46, %v3118_v58  ;;  %v3119_v31 = vmul.f32 %v5322_v44, %v3110_v38 }
0x10db   :  { %v3129_v52 = vpack.c.bf16 %v3127_v60, %v3126_v47  ;;  %v3128_v2 = vadd.f32 %v5323_v46, %v3119_v31 }
0x10dd   :  { %6115 = vmatprep.mubr.msk.bf16.mxu0 %vm1483_vm9, %v3129_v52  ;;  %v3130_v3 = vpack.c.bf16 %v3128_v2, %v3128_v2  ;;  %v6904_v52 = vld [vmem:[%s8306_s14 + $0x8] sm:$0xff] }
0x10df   :  { %6116 = vmatmul.mubr.msk.bf16.vlgmr.msra.gmra.mrb[44].mxu0 %vm1483_vm9, %v3130_v3 }
0x10e0   :  { %6125 = vmatprep.mubr.msk.f32.mxu0 %vm6969_vm1, %v6970_v16 }
0x11b2   :  { %v6117_v41 = vpop.f32.mrb[44].mxu0 }
0x11b3   :  { %v7852_v51 = vadd.f32 %v6117_v41, %v5329_v4  ;;  %v3196_v57 = vpop.f32.mrb[45].mxu0 }
0x11b4   :  { %v6118_v9 = vpop.f32.mrb[46].mxu0  ;;  %v3197_v22 = vadd.f32 %v5329_v4, %v3196_v57 }
0x11b5   :  { %3217 = vrot.lane.b32.xlu1 %v7852_v51, %s6977_s9  ;;  %v3199_v12 = vpop.f32.mrb[47].mxu0 }
0x11b6   :  { %v3200_v43 = vadd.f32 %v5329_v4, %v3199_v12 }
0x11b8   :  { %v7856_v13 = vpack.i.bf16 %v3200_v43, %v3197_v22 }
0x11ba   :  { %6661 = vrot.lane.b32.xlu1 %v7856_v13, %s6979_s17  ;;  %6656 = vrot.lane.b32.xlu0 %v7856_v13, %s6977_s9  ;;  %s8320_s9 = sld [smem:[#allocation19_spill]] }
0x11be   :  { %6666 = vrot.lane.b32.xlu1 %v7856_v13, %s6982_s3  ;;  %3459 = vrot.lane.b32.xlu0 %v7852_v51, %s6979_s17  ;;  %s8322_s17 = sld [smem:[#allocation25_spill]] }
0x11c2   :  { %3451 = vrot.lane.b32.xlu1 %v3200_v43, %s6981_s29  ;;  %3449 = vrot.lane.b32.xlu0 %v3197_v22, %s6981_s29 }
0x11c6   :  { %3701 = vrot.lane.b32.xlu1 %v7852_v51, %s6982_s3  ;;  %3453 = vrot.lane.b32.xlu0 %v7852_v51, %s6981_s29  ;;  %s8324_s29 = sld [smem:[#allocation24_spill]] }
0x11ca   :  { %3691 = vrot.lane.b32.xlu1 %v3197_v22, %s6978_s13  ;;  %6671 = vrot.lane.b32.xlu0 %v7856_v13, %s6976_s5 }
0x11ce   :  { %3695 = vrot.lane.b32.xlu1 %v7852_v51, %s6978_s13  ;;  %3693 = vrot.lane.b32.xlu0 %v3200_v43, %s6978_s13  ;;  %s8321_s13 = sld [smem:[#allocation22_spill]] }
0x11d2   :  { %3933 = vrot.lane.b32.xlu1 %v3197_v22, %s6980_s25  ;;  %3943 = vrot.lane.b32.xlu0 %v7852_v51, %s6976_s5  ;;  %s8319_s5 = sld [smem:[#allocation18_spill]] }
0x11d6   :  { %3937 = vrot.lane.b32.xlu1 %v7852_v51, %s6980_s25  ;;  %3935 = vrot.lane.b32.xlu0 %v3200_v43, %s6980_s25  ;;  %s8323_s25 = sld [smem:[#allocation23_spill]] }
0x1227   :  { %v3218_v29 = vpop.permute.xlu1 %3217 }
0x122c   :  { %v6662_v56 = vpop.permute.xlu1 %6661  ;;  %v6657_v17 = vpop.permute.xlu0 %6656 }
0x122d   :  { %v6664_v18 = vunpack.i.h.bf16 %v6662_v56  ;;  %v6663_v39 = vunpack.i.l.bf16 %v6662_v56  ;;  %v6659_v21 = vunpack.i.h.bf16 %v6657_v17  ;;  %v6658_v19 = vunpack.i.l.bf16 %v6657_v17  ;;  %v6905_v56 = vld [vmem:[%s8306_s14 + $0x10] sm:$0x3] }
0x122f   :  { %v6484_v5 = vpack.c.bf16 %v6664_v18, %v6663_v39  ;;  %v6477_v28 = vpack.c.bf16 %v6659_v21, %v6658_v19 }
0x1230   :  { %v3460_v25 = vpop.permute.xlu0 %3459  ;;  %v6667_v14 = vpop.permute.xlu1 %6666 }
0x1231   :  { %6479 = vmatpush3.bf16.xpose.msk.msra.mxu0 %vm7492_vm2, %v6477_v28  ;;  %6486 = vmatpush3.bf16.xpose.msk.msra.mxu1 %vm7492_vm2, %v6484_v5  ;;  %v6669_v27 = vunpack.i.h.bf16 %v6667_v14  ;;  %v6668_v26 = vunpack.i.l.bf16 %v6667_v14 }
0x1232   :  { %6153 = vmatprep.subr.mxu1 %v6970_v16  ;;  %6123 = vmatprep.subr.mxu0 %v6970_v16 }
0x1233   :  { %v6491_v30 = vpack.c.bf16 %v6669_v27, %v6668_v26 }
0x1234   :  { %v3450_v63 = vpop.permute.xlu0 %3449  ;;  %v3452_v32 = vpop.permute.xlu1 %3451 }
0x1238   :  { %v3454_v59 = vpop.permute.xlu0 %3453  ;;  %v3702_v33 = vpop.permute.xlu1 %3701 }
0x1239   :  { %6124 = vmatpush3.xpose.msk.msra.mxu0 %vm1631_vm15, %v3218_v29  ;;  %6154 = vmatpush3.xpose.msk.msra.mxu1 %vm1631_vm15, %v3460_v25 }
0x123a   :  { %6490 = vmatprep.subr.bf16.mxu1 %v6968_v7  ;;  %6480 = vmatprep.subr.bf16.mxu0 %v6968_v7 }
0x123c   :  { %6156 = vmatmul.mubr.msk.f32.vlgmr.msra.gmra.mrb[56].mxu1 %vm1631_vm15, %v3450_v63  ;;  %6126 = vmatmul.mubr.msk.f32.vlgmr.msra.gmra.mrb[38].mxu0 %vm1631_vm15, %v3197_v22  ;;  %v6672_v8 = vpop.permute.xlu0 %6671  ;;  %v3692_v36 = vpop.permute.xlu1 %3691 }
0x123d   :  { %6493 = vmatpush3.bf16.xpose.msk.msra.mxu1 %vm7492_vm2, %v6491_v30  ;;  %6128 = vmatprep.mubr.msk.f32.mxu0 %vm6969_vm1, %v6970_v16  ;;  %v6674_v34 = vunpack.i.h.bf16 %v6672_v8  ;;  %v6673_v23 = vunpack.i.l.bf16 %v6672_v8 }
0x123e   :  { %6158 = vmatprep.mubr.msk.f32.mxu1 %vm6969_vm1, %v6970_v16  ;;  %6183 = vmatprep.subr.mxu1 %v6970_v16 }
0x123f   :  { %v6498_v37 = vpack.c.bf16 %v6674_v34, %v6673_v23 }
0x1240   :  { %6159 = vmatmul.mubr.msk.f32.gmra.mrb[58].mxu1 %vm1631_vm15, %v3452_v32  ;;  %6129 = vmatmul.mubr.msk.f32.gmra.mrb[48].mxu0 %vm1631_vm15, %v3200_v43  ;;  %v3694_v20 = vpop.permute.xlu0 %3693  ;;  %v3696_v61 = vpop.permute.xlu1 %3695 }
0x1241   :  { %6131 = vmatprep.mubr.msk.f32.mxu0 %vm6969_vm1, %v6970_v16  ;;  %6161 = vmatprep.mubr.msk.f32.mxu1 %vm6969_vm1, %v6970_v16 }
0x1244   :  { %6162 = vmatmul.mubr.msk.f32.gmra.mrb[60].mxu1 %vm1631_vm15, %v3454_v59  ;;  %6132 = vmatmul.mubr.msk.f32.gmra.mrb[50].mxu0 %vm1631_vm15, %v7852_v51  ;;  %v3944_v24 = vpop.permute.xlu0 %3943  ;;  %v3934_v49 = vpop.permute.xlu1 %3933 }
0x1245   :  { %6184 = vmatpush3.xpose.msk.msra.mxu1 %vm1631_vm15, %v3702_v33  ;;  %6185 = vmatprep.mubr.msk.f32.mxu1 %vm6969_vm1, %v6970_v16 }
0x1246   :  { %6497 = vmatprep.subr.bf16.mxu1 %v6968_v7  ;;  %6140 = vmatprep.mubr.msk.f32.mxu0 %vm6969_vm1, %v6970_v16 }
0x1248   :  { %6186 = vmatmul.mubr.msk.f32.vlgmr.msra.gmra.mrb[62].mxu1 %vm1631_vm15, %v3692_v36  ;;  %v3936_v10 = vpop.permute.xlu0 %3935  ;;  %v3938_v11 = vpop.permute.xlu1 %3937 }
0x1249   :  { %6500 = vmatpush3.bf16.xpose.msk.msra.mxu1 %vm7492_vm2, %v6498_v37  ;;  %6188 = vmatprep.mubr.msk.f32.mxu1 %vm6969_vm1, %v6970_v16 }
0x124a   :  { %6213 = vmatprep.subr.mxu1 %v6970_v16 }
0x124c   :  { %6189 = vmatmul.mubr.msk.f32.gmra.mrb[64].mxu1 %vm1631_vm15, %v3694_v20 }
0x124d   :  { %6191 = vmatprep.mubr.msk.f32.mxu1 %vm6969_vm1, %v6970_v16 }
0x1250   :  { %6192 = vmatmul.mubr.msk.f32.gmra.mrb[66].mxu1 %vm1631_vm15, %v3696_v61 }
0x1251   :  { %6214 = vmatpush3.xpose.msk.msra.mxu1 %vm1631_vm15, %v3944_v24  ;;  %6215 = vmatprep.mubr.msk.f32.mxu1 %vm6969_vm1, %v6970_v16 }
0x1254   :  { %6216 = vmatmul.mubr.msk.f32.vlgmr.msra.gmra.mrb[68].mxu1 %vm1631_vm15, %v3934_v49 }
0x1255   :  { %6218 = vmatprep.mubr.msk.f32.mxu1 %vm6969_vm1, %v6970_v16 }
0x1258   :  { %6219 = vmatmul.mubr.msk.f32.gmra.mrb[70].mxu1 %vm1631_vm15, %v3936_v10 }
0x1259   :  { %6221 = vmatprep.mubr.msk.f32.mxu1 %vm6969_vm1, %v6970_v16 }
0x125c   :  { %6222 = vmatmul.mubr.msk.f32.gmra.mrb[72].mxu1 %vm1631_vm15, %v3938_v11 }
0x130f   :  { %v3297_v48 = vpop.f32.mrb[38].mxu0  ;;  %v3539_v35 = vpop.f32.mrb[56].mxu1 }
0x1310   :  { %v3311_v40 = vmul.f32 0.35355338, %v3297_v48  ;;  %v6127_v53 = vpop.f32.mrb[39].mxu0  ;;  %v6157_v44 = vpop.f32.mrb[57].mxu1  ;;  %v3553_v45 = vmul.f32 0.35355338, %v3539_v35 }
0x1312   :  { %v7939_v42 = vadd.f32 %v6903_v54, %v3311_v40  ;;  %v7943_v31 = vadd.f32 %v6903_v54, %v3553_v45 }
0x1313   :  { %v3302_v6 = vpop.f32.mrb[48].mxu0  ;;  %v3544_v55 = vpop.f32.mrb[58].mxu1 }
0x1314   :  { %v3312_v46 = vmul.f32 0.35355338, %v3302_v6  ;;  %v6130_v38 = vpop.f32.mrb[49].mxu0  ;;  %v6160_v58 = vpop.f32.mrb[59].mxu1  ;;  %v3554_v47 = vmul.f32 0.35355338, %v3544_v55 }
0x1315   :  { %v3317_v60 = vsel %vm1730_vm3, %v7939_v42, -inf  ;;  %v3559_v43 = vsel %vm1730_vm3, %v7943_v31, -inf }
0x1316   :  { %v7946_v2 = vadd.f32 %v6904_v52, %v3312_v46  ;;  %3318 = vmax.xlane.f32.xlu0 %v3317_v60  ;;  %v7948_v12 = vadd.f32 %v6904_v52, %v3554_v47 }
0x1317   :  { %v3307_v3 = vpop.f32.mrb[50].mxu0  ;;  %v3549_v4 = vpop.f32.mrb[60].mxu1 }
0x1318   :  { %v3313_v41 = vmul.f32 0.35355338, %v3307_v3  ;;  %v6133_v57 = vpop.f32.mrb[51].mxu0  ;;  %v6163_v9 = vpop.f32.mrb[61].mxu1  ;;  %v3555_v22 = vmul.f32 0.35355338, %v3549_v4 }
0x1319   :  { %v3320_v29 = vsel %vm1730_vm3, %v7946_v2, -inf  ;;  %v3562_v5 = vsel %vm1730_vm3, %v7948_v12, -inf }
0x131a   :  { %3560 = vmax.xlane.f32.xlu0 %v3559_v43  ;;  %3321 = vmax.xlane.f32.xlu1 %v3320_v29  ;;  %v7955_v17 = vadd.f32 %v6905_v56, %v3313_v41  ;;  %v7961_v28 = vadd.f32 %v6905_v56, %v3555_v22 }
0x131b   :  { %v3781_v18 = vpop.f32.mrb[62].mxu1 }
0x131c   :  { %v3795_v39 = vmul.f32 0.35355338, %v3781_v18  ;;  %v6187_v21 = vpop.f32.mrb[63].mxu1  ;;  %v3323_v19 = vsel %vm1737_vm4, %v7955_v17, -inf  ;;  %v3565_v59 = vsel %vm1737_vm4, %v7961_v28, -inf }
0x131e   :  { %v7963_v25 = vadd.f32 %v6903_v54, %v3795_v39  ;;  %3563 = vmax.xlane.f32.xlu1 %v3562_v5  ;;  %3324 = vmax.xlane.f32.xlu0 %v3323_v19 }
0x131f   :  { %v3786_v14 = vpop.f32.mrb[64].mxu1 }
0x1320   :  { %v3796_v63 = vmul.f32 0.35355338, %v3786_v14  ;;  %v6190_v27 = vpop.f32.mrb[65].mxu1  ;;  %v3801_v26 = vsel %vm1730_vm3, %v7963_v25, -inf }
0x1322   :  { %3802 = vmax.xlane.f32.xlu1 %v3801_v26  ;;  %3566 = vmax.xlane.f32.xlu0 %v3565_v59  ;;  %v7969_v30 = vadd.f32 %v6904_v52, %v3796_v63 }
0x1323   :  { %v3791_v32 = vpop.f32.mrb[66].mxu1 }
0x1324   :  { %v3797_v8 = vmul.f32 0.35355338, %v3791_v32  ;;  %v6193_v33 = vpop.f32.mrb[67].mxu1  ;;  %v3804_v34 = vsel %vm1730_vm3, %v7969_v30, -inf }
0x1326   :  { %v7973_v23 = vadd.f32 %v6905_v56, %v3797_v8  ;;  %3805 = vmax.xlane.f32.xlu0 %v3804_v34 }
0x1327   :  { %v4023_v36 = vpop.f32.mrb[68].mxu1 }
0x1328   :  { %v4037_v37 = vmul.f32 0.35355338, %v4023_v36  ;;  %v6217_v20 = vpop.f32.mrb[69].mxu1  ;;  %v3807_v61 = vsel %vm1737_vm4, %v7973_v23, -inf }
0x1329   :  { %3808 = vmax.xlane.f32.xlu1 %v3807_v61 }
0x132a   :  { %v7977_v24 = vadd.f32 %v6903_v54, %v4037_v37 }
0x132b   :  { %v4028_v49 = vpop.f32.mrb[70].mxu1 }
0x132c   :  { %v4038_v10 = vmul.f32 0.35355338, %v4028_v49  ;;  %v6220_v11 = vpop.f32.mrb[71].mxu1  ;;  %v4043_v48 = vsel %vm1730_vm3, %v7977_v24, -inf }
0x132d   :  { %4044 = vmax.xlane.f32.xlu0 %v4043_v48 }
0x132e   :  { %v7981_v35 = vadd.f32 %v6904_v52, %v4038_v10 }
0x132f   :  { %v4033_v40 = vpop.f32.mrb[72].mxu1 }
0x1330   :  { %v4039_v53 = vmul.f32 0.35355338, %v4033_v40  ;;  %v6223_v44 = vpop.f32.mrb[73].mxu1  ;;  %v4046_v45 = vsel %vm1730_vm3, %v7981_v35, -inf }
0x1331   :  { %4047 = vmax.xlane.f32.xlu1 %v4046_v45 }
0x1332   :  { %v7985_v6 = vadd.f32 %v6905_v56, %v4039_v53 }
0x1334   :  { %v4049_v54 = vsel %vm1737_vm4, %v7985_v6, -inf }
0x1335   :  { %4050 = vmax.xlane.f32.xlu0 %v4049_v54 }
0x1342   :  { %3354 = vrot.lane.b32.xlu1 %v7852_v51, %s6983_s19 }
0x1346   :  { %6681 = vrot.lane.b32.xlu1 %v7856_v13, %s6984_s24 }
0x134b   :  { %6676 = vrot.lane.b32.xlu0 %v7856_v13, %s6983_s19 }
0x13a3   :  { %v3319_v55 = vpop.xlane.xlu0 %3318 }
0x13a4   :  { %v3326_v46 = vsub.f32 %v7939_v42, %v3319_v55 }
0x13a6   :  { %v3329_v38 = vmul.f32 1.442695, %v3326_v46 }
0x13a7   :  { %v3561_v58 = vpop.xlane.xlu0 %3560  ;;  %v3322_v47 = vpop.xlane.xlu1 %3321 }
0x13a8   :  { %6829 = vpow2.f32 %v3329_v38  ;;  %v3568_v60 = vsub.f32 %v7943_v31, %v3561_v58  ;;  %v3327_v52 = vsub.f32 %v7946_v2, %v3322_v47 }
0x13aa   :  { %v3571_v3 = vmul.f32 1.442695, %v3568_v60  ;;  %v3331_v4 = vmul.f32 1.442695, %v3327_v52 }
0x13ab   :  { %v3564_v41 = vpop.xlane.xlu1 %3563  ;;  %v3325_v57 = vpop.xlane.xlu0 %3324 }
0x13ac   :  { %6831 = vpow2.f32 %v3571_v3  ;;  %v3569_v9 = vsub.f32 %v7948_v12, %v3564_v41  ;;  %v3328_v22 = vsub.f32 %v7955_v17, %v3325_v57 }
0x13ad   :  { %6833 = vpow2.f32 %v3331_v4 }
0x13ae   :  { %v3573_v43 = vmul.f32 1.442695, %v3569_v9  ;;  %v3333_v42 = vmul.f32 1.442695, %v3328_v22 }
0x13af   :  { %v3803_v29 = vpop.xlane.xlu1 %3802  ;;  %v3567_v56 = vpop.xlane.xlu0 %3566 }
0x13b0   :  { %6835 = vpow2.f32 %v3573_v43  ;;  %v3570_v18 = vsub.f32 %v7961_v28, %v3567_v56  ;;  %v3810_v2 = vsub.f32 %v7963_v25, %v3803_v29 }
0x13b1   :  { %6837 = vpow2.f32 %v3333_v42 }
0x13b2   :  { %v8001_v31 = vpop.eup %6829  ;;  %v3575_v39 = vmul.f32 1.442695, %v3570_v18  ;;  %v3813_v5 = vmul.f32 1.442695, %v3810_v2 }
0x13b3   :  { %v3806_v21 = vpop.xlane.xlu0 %3805  ;;  %v3335_v12 = vsel %vm1730_vm3, %v8001_v31, 0.0 }
0x13b4   :  { %v3811_v17 = vsub.f32 %v7969_v30, %v3806_v21  ;;  %3336 = vadd.xlane.f32.xlu1 %v3335_v12  ;;  %6839 = vpow2.f32 %v3575_v39 }
0x13b6   :  { %v8007_v19 = vpop.eup %6831  ;;  %v3815_v14 = vmul.f32 1.442695, %v3811_v17  ;;  %v3809_v63 = vpop.xlane.xlu1 %3808 }
0x13b7   :  { %v3812_v28 = vsub.f32 %v7973_v23, %v3809_v63  ;;  %v3577_v27 = vsel %vm1730_vm3, %v8007_v19, 0.0  ;;  %v8012_v25 = vpop.eup %6833 }
0x13b8   :  { %6841 = vpow2.f32 %v3815_v14  ;;  %3578 = vadd.xlane.f32.xlu0 %v3577_v27  ;;  %v3338_v33 = vsel %vm1730_vm3, %v8012_v25, 0.0 }
0x13b9   :  { %6843 = vpow2.f32 %v3813_v5  ;;  %v3817_v59 = vmul.f32 1.442695, %v3812_v28 }
0x13ba   :  { %v8014_v26 = vpop.eup %6835  ;;  %v4045_v30 = vpop.xlane.xlu0 %4044 }
0x13bb   :  { %v4052_v32 = vsub.f32 %v7977_v24, %v4045_v30  ;;  %v3580_v8 = vsel %vm1730_vm3, %v8014_v26, 0.0  ;;  %v8021_v34 = vpop.eup %6837  ;;  %6845 = vpow2.f32 %v3817_v59 }
0x13bc   :  { %3581 = vadd.xlane.f32.xlu1 %v3580_v8  ;;  %3339 = vadd.xlane.f32.xlu0 %v3338_v33  ;;  %v3341_v36 = vsel %vm1737_vm4, %v8021_v34, 0.0 }
0x13bd   :  { %v4055_v23 = vmul.f32 1.442695, %v4052_v32 }
0x13be   :  { %v8025_v37 = vpop.eup %6839  ;;  %v4048_v54 = vpop.xlane.xlu1 %4047 }
0x13bf   :  { %6847 = vpow2.f32 %v4055_v23  ;;  %v3583_v24 = vsel %vm1737_vm4, %v8025_v37, 0.0  ;;  %v4053_v60 = vsub.f32 %v7981_v35, %v4048_v54 }
0x13c0   :  { %3342 = vadd.xlane.f32.xlu1 %v3341_v36 }
0x13c1   :  { %v4057_v3 = vmul.f32 1.442695, %v4053_v60 }
0x13c2   :  { %v8027_v20 = vpop.eup %6841  ;;  %v4051_v61 = vpop.xlane.xlu0 %4050 }
0x13c3   :  { %v3822_v49 = vsel %vm1730_vm3, %v8027_v20, 0.0  ;;  %v8033_v10 = vpop.eup %6843  ;;  %v3355_v58 = vpop.permute.xlu1 %3354  ;;  %v4054_v47 = vsub.f32 %v7985_v6, %v4051_v61 }
0x13c4   :  { %3584 = vadd.xlane.f32.xlu1 %v3583_v24  ;;  %3823 = vadd.xlane.f32.xlu0 %v3822_v49  ;;  %v3819_v40 = vsel %vm1730_vm3, %v8033_v10, 0.0 }
0x13c5   :  { %v8037_v53 = vpop.eup %6845  ;;  %v4059_v52 = vmul.f32 1.442695, %v4054_v47 }
0x13c6   :  { %v6677_v11 = vpop.permute.xlu0 %6676  ;;  %v3825_v38 = vsel %vm1737_vm4, %v8037_v53, 0.0 }
0x13c7   :  { %v6679_v48 = vunpack.i.h.bf16 %v6677_v11  ;;  %v6678_v44 = vunpack.i.l.bf16 %v6677_v11  ;;  %6849 = vpow2.f32 %v4059_v52  ;;  %v6682_v35 = vpop.permute.xlu1 %6681 }
0x13c8   :  { %3820 = vadd.xlane.f32.xlu1 %v3819_v40  ;;  %6851 = vpow2.f32 %v4057_v3  ;;  %v6684_v29 = vunpack.i.h.bf16 %v6682_v35  ;;  %v6683_v56 = vunpack.i.l.bf16 %v6682_v35 }
0x13c9   :  { %v8039_v45 = vpop.eup %6847  ;;  %v6481_v55 = vpack.c.bf16 %v6679_v48, %v6678_v44 }
0x13ca   :  { %v4061_v46 = vsel %vm1730_vm3, %v8039_v45, 0.0  ;;  %v6488_v21 = vpack.c.bf16 %v6684_v29, %v6683_v56 }
0x13cb   :  { %4062 = vadd.xlane.f32.xlu0 %v4061_v46  ;;  %6482 = vmatpush3.bf16.msra.mxu0 %v6481_v55 }
0x13cc   :  { %3826 = vadd.xlane.f32.xlu1 %v3825_v38  ;;  %6138 = vmatprep.subr.mxu0 %v6970_v16 }
0x13cf   :  { %6139 = vmatpush3.msk.msra.mxu0 %vm179_vm0, %v3355_v58 }
0x13d0   :  { %6487 = vmatprep.subr.bf16.mxu0 %v6968_v7 }
0x13d1   :  { %v8054_v4 = vpop.eup %6849 }
0x13d2   :  { %v8056_v41 = vpop.eup %6851  ;;  %v4067_v57 = vsel %vm1737_vm4, %v8054_v4, 0.0 }
0x13d3   :  { %v4064_v9 = vsel %vm1730_vm3, %v8056_v41, 0.0 }
0x13dd   :  { %6686 = vrot.lane.b32.xlu1 %v7856_v13, %s6985_s30 }
0x13e1   :  { %3596 = vrot.lane.b32.xlu0 %v7852_v51, %s6984_s24 }
0x1400   :  { %4068 = vadd.xlane.f32.xlu0 %v4067_v57 }
0x1401   :  { %4065 = vadd.xlane.f32.xlu1 %v4064_v9 }
0x1412   :  { %3838 = vrot.lane.b32.xlu1 %v7852_v51, %s6985_s30 }
0x1416   :  { %6691 = vrot.lane.b32.xlu1 %v7856_v13, %s6986_s12 }
0x141a   :  { %4080 = vrot.lane.b32.xlu1 %v7852_v51, %s6986_s12 }
0x1441   :  { %v3337_v6 = vpop.xlane.xlu1 %3336 }
0x1442   :  { %6853 = vrcp.f32 %v3337_v6 }
0x1445   :  { %v3579_v22 = vpop.xlane.xlu0 %3578 }
0x1449   :  { %v3582_v43 = vpop.xlane.xlu1 %3581  ;;  %v3340_v42 = vpop.xlane.xlu0 %3339 }
0x144a   :  { %6855 = vrcp.f32 %v3340_v42 }
0x144c   :  { %v6854_v18 = vpop.eup %6853 }
0x144d   :  { %v3347_v2 = vmul.f32 %v6854_v18, %v8001_v31  ;;  %v3343_v39 = vpop.xlane.xlu1 %3342 }
0x144e   :  { %6857 = vrcp.f32 %v3343_v39 }
0x144f   :  { %6141 = vmatmul.mubr.msk.f32.vlgmr.msra.gmra.mrb[52].mxu0 %vm1730_vm3, %v3347_v2  ;;  %6859 = vrcp.f32 %v3579_v22 }
0x1450   :  { %6489 = vmatpush3.bf16.msra.mxu0 %v6488_v21  ;;  %6143 = vmatprep.mubr.msk.f32.mxu0 %vm6969_vm1, %v6970_v16  ;;  %6861 = vrcp.f32 %v3582_v43 }
0x1451   :  { %v3585_v51 = vpop.xlane.xlu1 %3584  ;;  %6168 = vmatprep.subr.mxu0 %v6970_v16  ;;  %v3824_v13 = vpop.xlane.xlu0 %3823 }
0x1452   :  { %6863 = vrcp.f32 %v3585_v51 }
0x1454   :  { %v6856_v12 = vpop.eup %6855 }
0x1455   :  { %v3821_v17 = vpop.xlane.xlu1 %3820  ;;  %v3348_v5 = vmul.f32 %v6856_v12, %v8012_v25 }
0x1456   :  { %6865 = vrcp.f32 %v3821_v17  ;;  %v6732_v17 = vld [vmem:[%s8307_s15 + $0x18] sm:$0xff]  }
0x1457   :  { %6144 = vmatmul.mubr.msk.f32.gmra.mrb[54].mxu0 %vm1730_vm3, %v3348_v5  ;;  %6867 = vrcp.f32 %v3824_v13 }
0x1458   :  { %v6858_v31 = vpop.eup %6857  ;;  %v4063_v14 = vpop.xlane.xlu0 %4062  ;;  %6146 = vmatprep.mubr.msk.f32.mxu0 %vm6969_vm1, %v6970_v16 }
0x1459   :  { %v3827_v63 = vpop.xlane.xlu1 %3826  ;;  %v3349_v28 = vmul.f32 %v6858_v31, %v8021_v34  ;;  %v6860_v27 = vpop.eup %6859 }
0x145a   :  { %v3589_v25 = vmul.f32 %v6860_v27, %v8007_v19  ;;  %v6862_v33 = vpop.eup %6861  ;;  %6869 = vrcp.f32 %v3827_v63 }
0x145b   :  { %6147 = vmatmul.mubr.msk.f32.gmra.mrb[56].mxu0 %vm1730_vm3, %v3349_v28  ;;  %v3590_v34 = vmul.f32 %v6862_v33, %v8014_v26  ;;  %6871 = vrcp.f32 %v4063_v14 }
0x145c   :  { %v3597_v59 = vpop.permute.xlu0 %3596  ;;  %6170 = vmatprep.mubr.msk.f32.mxu0 %vm6969_vm1, %v6970_v16  ;;  %v6864_v36 = vpop.eup %6863 }
0x145d   :  { %v6687_v30 = vpop.permute.xlu1 %6686  ;;  %6169 = vmatpush3.msk.msra.mxu0 %vm179_vm0, %v3597_v59  ;;  %v3591_v19 = vmul.f32 %v6864_v36, %v8025_v37 }
0x145e   :  { %v6689_v32 = vunpack.i.h.bf16 %v6687_v30  ;;  %v6688_v8 = vunpack.i.l.bf16 %v6687_v30  ;;  %6494 = vmatprep.subr.bf16.mxu0 %v6968_v7 }
0x145f   :  { %6171 = vmatmul.mubr.msk.f32.vlgmr.msra.gmra.mrb[58].mxu0 %vm1730_vm3, %v3589_v25 }
0x1460   :  { %v6495_v23 = vpack.c.bf16 %v6689_v32, %v6688_v8  ;;  %6173 = vmatprep.mubr.msk.f32.mxu0 %vm6969_vm1, %v6970_v16  ;;  %v6866_v26 = vpop.eup %6865 }
0x1461   :  { %v3831_v24 = vmul.f32 %v6866_v26, %v8033_v10  ;;  %v6868_v11 = vpop.eup %6867 }
0x1462   :  { %6496 = vmatpush3.bf16.msra.mxu0 %v6495_v23  ;;  %v3832_v40 = vmul.f32 %v6868_v11, %v8027_v20 }
0x1463   :  { %6198 = vmatprep.subr.mxu0 %v6970_v16  ;;  %6174 = vmatmul.mubr.msk.f32.gmra.mrb[60].mxu0 %vm1730_vm3, %v3590_v34 }
0x1464   :  { %6176 = vmatprep.mubr.msk.f32.mxu0 %vm6969_vm1, %v6970_v16  ;;  %v6870_v44 = vpop.eup %6869 }
0x1465   :  { %v3833_v46 = vmul.f32 %v6870_v44, %v8037_v53  ;;  %v6872_v38 = vpop.eup %6871 }
0x1466   :  { %v4073_v20 = vmul.f32 %v6872_v38, %v8039_v45 }
0x1467   :  { %6177 = vmatmul.mubr.msk.f32.gmra.mrb[62].mxu0 %vm1730_vm3, %v3591_v19 }
0x1468   :  { %6200 = vmatprep.mubr.msk.f32.mxu0 %vm6969_vm1, %v6970_v16 }
0x148d   :  { %v4069_v37 = vpop.xlane.xlu0 %4068 }
0x148e   :  { %v4066_v61 = vpop.xlane.xlu1 %4065 }
0x148f   :  { %6873 = vrcp.f32 %v4066_v61 }
0x1490   :  { %6875 = vrcp.f32 %v4069_v37 }
0x1492   :  { %v3839_v49 = vpop.permute.xlu1 %3838 }
0x1493   :  { %6199 = vmatpush3.msk.msra.mxu0 %vm179_vm0, %v3839_v49 }
0x1494   :  { %6201 = vmatmul.mubr.msk.f32.vlgmr.msra.gmra.mrb[64].mxu0 %vm1730_vm3, %v3831_v24  ;;  %6501 = vmatprep.subr.bf16.mxu0 %v6968_v7 }
0x1495   :  { %6203 = vmatprep.mubr.msk.f32.mxu0 %vm6969_vm1, %v6970_v16 }
0x1496   :  { %v6692_v48 = vpop.permute.xlu1 %6691 }
0x1497   :  { %v6694_v54 = vunpack.i.h.bf16 %v6692_v48  ;;  %v6693_v55 = vunpack.i.l.bf16 %v6692_v48 }
0x1498   :  { %6204 = vmatmul.mubr.msk.f32.gmra.mrb[66].mxu0 %vm1730_vm3, %v3832_v40 }
0x1499   :  { %v6502_v10 = vpack.c.bf16 %v6694_v54, %v6693_v55  ;;  %6206 = vmatprep.mubr.msk.f32.mxu0 %vm6969_vm1, %v6970_v16  ;;  %v6874_v47 = vpop.eup %6873 }
0x149a   :  { %v4081_v58 = vpop.permute.xlu1 %4080  ;;  %v4074_v53 = vmul.f32 %v6874_v47, %v8056_v41  ;;  %v6876_v60 = vpop.eup %6875  ;;  %v5383_v47 = vld [vmem:[%s8308_s23 + $0x1] ss:$0 sm:$0xff] }
0x149b   :  { %6503 = vmatpush3.bf16.msra.mxu0 %v6502_v10  ;;  %v4075_v52 = vmul.f32 %v6876_v60, %v8054_v4  ;;  %v6731_v4 = vld [vmem:[%s8307_s15 + $0x10] sm:$0xff]  }
0x149c   :  { %6207 = vmatmul.mubr.msk.f32.gmra.mrb[68].mxu0 %vm1730_vm3, %v3833_v46  ;;  %6228 = vmatprep.subr.mxu0 %v6970_v16 }
0x149d   :  { %6230 = vmatprep.mubr.msk.f32.mxu0 %vm6969_vm1, %v6970_v16  ;;  %6239 = vmatprep.subr.bf16.mxu1 %v6731_v4 }
0x149e   :  { %6240 = vmatpush3.bf16.msra.mxu1 %v6731_v4 }
0x149f   :  { %6229 = vmatpush3.msk.msra.mxu0 %vm179_vm0, %v4081_v58  ;;  %6241 = vmatprep.subr.bf16.mxu1 %v6732_v17 }
0x14a0   :  { %6231 = vmatmul.mubr.msk.f32.vlgmr.msra.gmra.mrb[70].mxu0 %vm1730_vm3, %v4073_v20 }
0x14a1   :  { %6233 = vmatprep.mubr.msk.f32.mxu0 %vm6969_vm1, %v6970_v16 }
0x14a2   :  { %6242 = vmatpush3.bf16.msra.mxu1 %v6732_v17 }
0x14a4   :  { %6234 = vmatmul.mubr.msk.f32.gmra.mrb[72].mxu0 %vm1730_vm3, %v4074_v53 }
0x14a5   :  { %6236 = vmatprep.mubr.msk.f32.mxu0 %vm6969_vm1, %v6970_v16 }
0x14a8   :  { %6237 = vmatmul.mubr.msk.f32.gmra.mrb[74].mxu0 %vm1730_vm3, %v4075_v52 }
0x1522   :  { %v3435_v45 = vpop.f32.mrb[52].mxu0 }
0x1523   :  { %v6142_v3 = vpop.f32.mrb[53].mxu0 }
0x152a   :  { %v3440_v57 = vpop.f32.mrb[54].mxu0 }
0x152b   :  { %v6145_v9 = vpop.f32.mrb[55].mxu0 }
0x152e   :  { %v3445_v35 = vpop.f32.mrb[56].mxu0 }
0x152f   :  { %v6148_v6 = vpop.f32.mrb[57].mxu0 }
0x1532   :  { %v3677_v22 = vpop.f32.mrb[58].mxu0 }
0x1533   :  { %v6172_v43 = vpop.f32.mrb[59].mxu0 }
0x1536   :  { %v3682_v41 = vpop.f32.mrb[60].mxu0 }
0x1537   :  { %v6695_v42 = vpack.i.bf16 %v3682_v41, %v3677_v22  ;;  %v6175_v29 = vpop.f32.mrb[61].mxu0 }
0x1539   :  { %6696 = vrot.lane.b32.xlu1 %v6695_v42, %s6987_s16 }
0x153a   :  { %v3687_v56 = vpop.f32.mrb[62].mxu0 }
0x153b   :  { %v6178_v18 = vpop.f32.mrb[63].mxu0 }
0x153d   :  { %4182 = vrot.lane.b32.xlu1 %v3687_v56, %s6987_s16 }
0x1567   :  { %v3919_v2 = vpop.f32.mrb[64].mxu0 }
0x1568   :  { %v6202_v39 = vpop.f32.mrb[65].mxu0 }
0x156b   :  { %v3924_v21 = vpop.f32.mrb[66].mxu0 }
0x156c   :  { %v6700_v51 = vpack.i.bf16 %v3924_v21, %v3919_v2  ;;  %v6205_v13 = vpop.f32.mrb[67].mxu0 }
0x156e   :  { %6701 = vrot.lane.b32.xlu1 %v6700_v51, %s6988_s20 }
0x156f   :  { %v3929_v12 = vpop.f32.mrb[68].mxu0 }
0x1570   :  { %4194 = vrot.lane.b32.xlu0 %v3929_v12, %s6988_s20  ;;  %v6208_v5 = vpop.f32.mrb[69].mxu0 }
0x1571   :  { %v6733_v5 = vld [vmem:[%s8309_s27 + $0x10] sm:$0xff]  }
0x1572   :  { %6247 = vmatprep.subr.bf16.mxu0 %v6733_v5 }
0x1573   :  { %v4161_v31 = vpop.f32.mrb[70].mxu0  ;;  %6248 = vmatpush3.bf16.msra.mxu0 %v6733_v5 }
0x1574   :  { %v6232_v14 = vpop.f32.mrb[71].mxu0 }
0x1577   :  { %v4166_v63 = vpop.f32.mrb[72].mxu0 }
0x1578   :  { %v6705_v28 = vpack.i.bf16 %v4166_v63, %v4161_v31  ;;  %v6235_v27 = vpop.f32.mrb[73].mxu0  ;;  %v6734_v31 = vld [vmem:[%s8309_s27 + $0x18] sm:$0xff]  }
0x1579   :  { %6249 = vmatprep.subr.bf16.mxu0 %v6734_v31 }
0x157a   :  { %6706 = vrot.lane.b32.xlu1 %v6705_v28, %s6989_s22  ;;  %6250 = vmatpush3.bf16.msra.mxu0 %v6734_v31 }
0x157b   :  { %v4171_v59 = vpop.f32.mrb[74].mxu0  ;;  %6504 = vmatprep.subr.bf16.mxu0 %v6968_v7 }
0x157c   :  { %v6238_v30 = vpop.f32.mrb[75].mxu0 }
0x157e   :  { %4206 = vrot.lane.b32.xlu1 %v4171_v59, %s6989_s22 }
0x15ab   :  { %v6697_v25 = vpop.permute.xlu1 %6696 }
0x15ac   :  { %v6699_v33 = vunpack.i.h.bf16 %v6697_v25  ;;  %v6698_v23 = vunpack.i.l.bf16 %v6697_v25 }
0x15ae   :  { %v4212_v61 = vsel %vm1631_vm15, %v3440_v57, %v6699_v33  ;;  %v4211_v26 = vsel %vm1631_vm15, %v3435_v45, %v6698_v23  ;;  %v5386_v23 = vld [vmem:[%s8310_s28 + $0x1] ss:$0 sm:$0xff] }
0x15af   :  { %v4183_v32 = vpop.permute.xlu1 %4182 }
0x15b0   :  { %v4213_v40 = vsel %vm1631_vm15, %v3445_v35, %v4183_v32 }
0x15e0   :  { %v6702_v8 = vpop.permute.xlu1 %6701 }
0x15e1   :  { %v6704_v34 = vunpack.i.h.bf16 %v6702_v8  ;;  %v6703_v36 = vunpack.i.l.bf16 %v6702_v8 }
0x15e2   :  { %v4195_v24 = vpop.permute.xlu0 %4194 }
0x15e3   :  { %v4215_v37 = vsel %vm2629_vm5, %v4212_v61, %v6704_v34  ;;  %v4214_v48 = vsel %vm2629_vm5, %v4211_v26, %v6703_v36  ;;  %v4216_v55 = vsel %vm2629_vm5, %v4213_v40, %v4195_v24  ;;  %v5387_v24 = vld [vmem:[%s8311_s1 + $0x1] ss:$0 sm:$0xff] }
0x15ec   :  { %v6707_v19 = vpop.permute.xlu1 %6706 }
0x15ed   :  { %v6709_v49 = vunpack.i.h.bf16 %v6707_v19  ;;  %v6708_v11 = vunpack.i.l.bf16 %v6707_v19 }
0x15ef   :  { %v4218_v44 = vsel %vm2633_vm6, %v4215_v37, %v6709_v49  ;;  %v4217_v54 = vsel %vm2633_vm6, %v4214_v48, %v6708_v11 }
0x15f0   :  { %v4220_v10 = vpack.c.bf16 %v4218_v44, %v4217_v54  ;;  %v4207_v46 = vpop.permute.xlu1 %4206 }
0x15f1   :  { %v4219_v38 = vsel %vm2633_vm6, %v4216_v55, %v4207_v46  ;;  %v6736_v46 = vld [vmem:[%s8312_s4 + $0x48] sm:$0xff]  }
0x15f2   :  { %v4221_v20 = vpack.c.bf16 %v4219_v38, %v4219_v38  ;;  %6243 = vmatprep.mubr.msk.bf16.mxu1 %vm1483_vm9, %v4220_v10  ;;  %v6735_v10 = vld [vmem:[%s8312_s4 + $0x40] sm:$0xff]   ;;  %v6737_v38 = vld [vmem:[%s8312_s4 + $0x50] sm:$0xff]  }
0x15f3   :  { %6255 = vmatprep.subr.bf16.mxu1 %v6735_v10 }
0x15f4   :  { %6244 = vmatmul.mubr.msk.bf16.vlgmr.msra.gmra.mrb[76].mxu1 %vm1483_vm9, %v4221_v20  ;;  %v6738_v20 = vld [vmem:[%s8312_s4 + $0x58] sm:$0xff]  }
0x15f5   :  { %6256 = vmatpush3.bf16.msra.mxu1 %v6735_v10 }
0x15f6   :  { %6257 = vmatprep.subr.bf16.mxu1 %v6736_v46 }
0x15f9   :  { %6258 = vmatpush3.bf16.msra.mxu1 %v6736_v46 }
0x15fa   :  { %6259 = vmatprep.subr.bf16.mxu1 %v6737_v38 }
0x15fd   :  { %6260 = vmatpush3.bf16.msra.mxu1 %v6737_v38 }
0x15fe   :  { %6261 = vmatprep.subr.bf16.mxu1 %v6738_v20 }
0x1601   :  { %6262 = vmatpush3.bf16.msra.mxu1 %v6738_v20 }
0x16c7   :  { %v6245_v58 = vpop.f32.mrb[76].mxu1 }
0x16c8   :  { %v4279_v53 = vpop.f32.mrb[77].mxu1  ;;  %v4295_v60 = vadd.f32 %v6245_v58, %v7826_v15  ;;  %v6739_v58 = vld [vmem:[%s8312_s4 + $0x60] sm:$0xff]  }
0x16c9   :  { %v4293_v52 = vadd.f32 %v4279_v53, %v7823_v0  ;;  %v6246_v45 = vpop.f32.mrb[78].mxu1  ;;  %6263 = vmatprep.subr.bf16.mxu1 %v6739_v58  ;;  %v6741_v53 = vld [vmem:[%s8312_s4 + $0x70] sm:$0xff]  }
0x16ca   :  { %v4282_v3 = vpop.f32.mrb[79].mxu1  ;;  %v8147_v35 = vadd.f32 %v5383_v47, %v4295_v60  ;;  %6264 = vmatpush3.bf16.msra.mxu1 %v6739_v58  ;;  %v6742_v60 = vld [vmem:[%s8312_s4 + $0x78] sm:$0xff]  }
0x16cb   :  { %v8144_v57 = vadd.f32 %v5383_v47, %v4293_v52  ;;  %v4294_v9 = vadd.f32 %v4282_v3, %v7828_v62  ;;  %v5393_v52 = vld [vmem:[%s8313_s21 + $0x1] ss:$0 sm:$0xff] }
0x16cc   :  { %v4317_v0 = vsel %vm1490_vm10, %v8147_v35, 0.0 }
0x16cd   :  { %v8149_v6 = vadd.f32 %v5383_v47, %v4294_v9  ;;  %v4311_v22 = vsel %vm1483_vm9, %v8144_v57, 0.0  ;;  %v6740_v47 = vld [vmem:[%s8312_s4 + $0x68] sm:$0xff]  }
0x16ce   :  { %4312 = vadd.xlane.f32.xlu1 %v4311_v22  ;;  %6265 = vmatprep.subr.bf16.mxu1 %v6740_v47 }
0x16cf   :  { %v4314_v43 = vsel %vm1483_vm9, %v8149_v6, 0.0  ;;  %6266 = vmatpush3.bf16.msra.mxu1 %v6740_v47 }
0x16d0   :  { %4315 = vadd.xlane.f32.xlu0 %v4314_v43  ;;  %6267 = vmatprep.subr.bf16.mxu1 %v6741_v53 }
0x16d2   :  { %4318 = vadd.xlane.f32.xlu1 %v4317_v0 }
0x16d3   :  { %6268 = vmatpush3.bf16.msra.mxu1 %v6741_v53 }
0x16d4   :  { %6269 = vmatprep.subr.bf16.mxu1 %v6742_v60 }
0x16d7   :  { %6270 = vmatpush3.bf16.msra.mxu1 %v6742_v60 }
0x175b   :  { %v4313_v15 = vpop.xlane.xlu1 %4312 }
0x175c   :  { %v4320_v41 = vmul.f32 0.03125, %v4313_v15 }
0x175d   :  { %v4316_v42 = vpop.xlane.xlu0 %4315 }
0x175e   :  { %v4323_v62 = vsub.f32 %v8144_v57, %v4320_v41  ;;  %v4321_v29 = vmul.f32 0.03125, %v4316_v42 }
0x175f   :  { %v4319_v56 = vpop.xlane.xlu1 %4318 }
0x1760   :  { %v4324_v18 = vsub.f32 %v8149_v6, %v4321_v29  ;;  %v4322_v4 = vmul.f32 0.03125, %v4319_v56  ;;  %v4326_v2 = vmul.f32 %v4323_v62, %v4323_v62 }
0x1762   :  { %v4325_v39 = vsub.f32 %v8147_v35, %v4322_v4  ;;  %v4329_v21 = vsel %vm1483_vm9, %v4326_v2, 0.0  ;;  %v4327_v51 = vmul.f32 %v4324_v18, %v4324_v18 }
0x1763   :  { %4330 = vadd.xlane.f32.xlu1 %v4329_v21 }
0x1764   :  { %v4332_v13 = vsel %vm1483_vm9, %v4327_v51, 0.0  ;;  %v4328_v12 = vmul.f32 %v4325_v39, %v4325_v39 }
0x1765   :  { %4333 = vadd.xlane.f32.xlu0 %v4332_v13 }
0x1766   :  { %v4335_v17 = vsel %vm1490_vm10, %v4328_v12, 0.0 }
0x1767   :  { %4336 = vadd.xlane.f32.xlu1 %v4335_v17 }
0x17f0   :  { %v4331_v14 = vpop.xlane.xlu1 %4330 }
0x17f1   :  { %v4338_v63 = vmul.f32 0.03125, %v4331_v14 }
0x17f2   :  { %v4334_v28 = vpop.xlane.xlu0 %4333 }
0x17f3   :  { %v4341_v27 = vadd.f32 1e-05, %v4338_v63  ;;  %v4339_v59 = vmul.f32 0.03125, %v4334_v28 }
0x17f4   :  { %v4337_v30 = vpop.xlane.xlu1 %4336 }
0x17f5   :  { %6877 = vrsqrt.f32 %v4341_v27  ;;  %v4342_v25 = vadd.f32 1e-05, %v4339_v59  ;;  %v4340_v32 = vmul.f32 0.03125, %v4337_v30 }
0x17f7   :  { %6879 = vrsqrt.f32 %v4342_v25  ;;  %v4343_v8 = vadd.f32 1e-05, %v4340_v32 }
0x17f9   :  { %6881 = vrsqrt.f32 %v4343_v8 }
0x17ff   :  { %v6878_v33 = vpop.eup %6877 }
0x1800   :  { %v4347_v34 = vmul.f32 %v6878_v33, %v4323_v62 }
0x1801   :  { %v6880_v36 = vpop.eup %6879 }
0x1802   :  { %v4348_v19 = vmul.f32 %v6880_v36, %v4324_v18  ;;  %v4356_v61 = vmul.f32 %v5386_v23, %v4347_v34 }
0x1803   :  { %v6882_v26 = vpop.eup %6881 }
0x1804   :  { %v4349_v49 = vmul.f32 %v6882_v26, %v4325_v39  ;;  %v4357_v11 = vmul.f32 %v5386_v23, %v4348_v19  ;;  %v4365_v48 = vadd.f32 %v5387_v24, %v4356_v61 }
0x1806   :  { %v4358_v37 = vmul.f32 %v5386_v23, %v4349_v49  ;;  %v4366_v40 = vadd.f32 %v5387_v24, %v4357_v11 }
0x1808   :  { %v4367_v44 = vadd.f32 %v5387_v24, %v4358_v37  ;;  %v4368_v54 = vpack.c.bf16 %v4366_v40, %v4365_v48 }
0x180a   :  { %v4369_v55 = vpack.c.bf16 %v4367_v44, %v4367_v44  ;;  %6251 = vmatprep.mubr.msk.bf16.mxu0 %vm1483_vm9, %v4368_v54 }
0x180c   :  { %6252 = vmatmul.mubr.msk.bf16.vlgmr.msra.gmra.mrb[76].mxu0 %vm1483_vm9, %v4369_v55 }
0x180d   :  { %6281 = vmatprep.mubr.msk.f32.mxu0 %vm6969_vm1, %v6970_v16 }
0x18df   :  { %v6253_v45 = vpop.f32.mrb[76].mxu0 }
0x18e0   :  { %v8181_v3 = vadd.f32 %v6253_v45, %v5393_v52  ;;  %v4435_v9 = vpop.f32.mrb[77].mxu0 }
0x18e1   :  { %v8183_v22 = vadd.f32 %v5393_v52, %v4435_v9  ;;  %v6254_v43 = vpop.f32.mrb[78].mxu0 }
0x18e2   :  { %v8186_v0 = vmul.f32 0.70710677, %v8181_v3  ;;  %v4438_v15 = vpop.f32.mrb[79].mxu0 }
0x18e3   :  { %v8189_v41 = vmul.f32 0.70710677, %v8183_v22  ;;  %v8191_v42 = vadd.f32 %v5393_v52, %v4438_v15 }
0x18e4   :  { %v4463_v62 = vand.u32 2147483647, %v8186_v0  ;;  %vm4457_vm12 = vcmp.ge.f32.partialorder %v8186_v0, 0.0 }
0x18e5   :  { %v4461_v29 = vand.u32 2147483647, %v8189_v41  ;;  %v8196_v18 = vmul.f32 0.70710677, %v8191_v42  ;;  %vm4455_vm13 = vcmp.ge.f32.partialorder %v8189_v41, 0.0 }
0x18e6   :  { %v4466_v56 = vmul.f32 0.3275911, %v4463_v62  ;;  %v4505_v12 = vsub.f32 0.0, %v4463_v62 }
0x18e7   :  { %v4464_v4 = vmul.f32 0.3275911, %v4461_v29  ;;  %v4462_v39 = vand.u32 2147483647, %v8196_v18  ;;  %v4503_v17 = vsub.f32 0.0, %v4461_v29  ;;  %vm4456_vm14 = vcmp.ge.f32.partialorder %v8196_v18, 0.0 }
0x18e8   :  { %v4469_v2 = vadd.f32 1.0, %v4466_v56  ;;  %v4508_v31 = vmul.f32 %v4505_v12, %v4463_v62 }
0x18e9   :  { %v4467_v21 = vadd.f32 1.0, %v4464_v4  ;;  %v4465_v51 = vmul.f32 0.3275911, %v4462_v39  ;;  %v4504_v14 = vsub.f32 0.0, %v4462_v39  ;;  %v4506_v27 = vmul.f32 %v4503_v17, %v4461_v29 }
0x18ea   :  { %6883 = vrcp.f32 %v4469_v2  ;;  %v4513_v32 = vmul.f32 1.442695, %v4508_v31  ;;  %v4460_v4 = vsel %vm4457_vm12, 1.0, %v6990_v50  ;;  %v4459_v17 = vsel %vm4456_vm14, 1.0, %v6990_v50 }
0x18eb   :  { %6885 = vrcp.f32 %v4467_v21  ;;  %v4468_v13 = vadd.f32 1.0, %v4465_v51  ;;  %v4507_v33 = vmul.f32 %v4504_v14, %v4462_v39  ;;  %v4509_v34 = vmul.f32 1.442695, %v4506_v27 }
0x18ec   :  { %v4458_v21 = vsel %vm4455_vm13, 1.0, %v6990_v50  ;;  %v4451_v31 = vmul.f32 0.5, %v8181_v3  ;;  %v4449_v14 = vmul.f32 0.5, %v8183_v22  ;;  %v5423_v22 = vld [vmem:[%s8314_s7 + $0x1] ss:$0 sm:$0xff] }
0x18ed   :  { %6887 = vrcp.f32 %v4468_v13  ;;  %v4511_v49 = vmul.f32 1.442695, %v4507_v33 }
0x18ee   :  { %6889 = vpow2.f32 %v4513_v32 }
0x18ef   :  { %6891 = vpow2.f32 %v4509_v34 }
0x18f0   :  { %6893 = vpow2.f32 %v4511_v49 }
0x18f4   :  { %v6884_v5 = vpop.eup %6883 }
0x18f5   :  { %v6886_v63 = vpop.eup %6885  ;;  %v4478_v28 = vmul.f32 1.0614054, %v6884_v5 }
0x18f6   :  { %v4476_v59 = vmul.f32 1.0614054, %v6886_v63 }
0x18f7   :  { %v4481_v30 = vadd.f32 -1.4531521, %v4478_v28  ;;  %v6888_v25 = vpop.eup %6887 }
0x18f8   :  { %v4479_v8 = vadd.f32 -1.4531521, %v4476_v59  ;;  %v4477_v36 = vmul.f32 1.0614054, %v6888_v25  ;;  %v6890_v60 = vpop.eup %6889 }
0x18f9   :  { %v4484_v23 = vmul.f32 %v6884_v5, %v4481_v30  ;;  %v6892_v45 = vpop.eup %6891 }
0x18fa   :  { %v4482_v19 = vmul.f32 %v6886_v63, %v4479_v8  ;;  %v4480_v26 = vadd.f32 -1.4531521, %v4477_v36  ;;  %v6894_v56 = vpop.eup %6893 }
0x18fb   :  { %v4487_v61 = vadd.f32 1.4214138, %v4484_v23 }
0x18fc   :  { %v4485_v24 = vadd.f32 1.4214138, %v4482_v19  ;;  %v4483_v37 = vmul.f32 %v6888_v25, %v4480_v26  ;;  %v4769_v26 = vld [vmem:[%s8315_s11] sm:$0xff] }
0x18fd   :  { %v4490_v11 = vmul.f32 %v6884_v5, %v4487_v61 }
0x18fe   :  { %v4488_v48 = vmul.f32 %v6886_v63, %v4485_v24  ;;  %v4486_v44 = vadd.f32 1.4214138, %v4483_v37  ;;  %v4770_v24 = vld [vmem:[%s8315_s11 + $0x8] sm:$0xff]  ;;  %v4771_v37 = vld [vmem:[%s8315_s11 + $0x10] sm:$0xff] }
0x18ff   :  { %v4493_v40 = vadd.f32 -0.28449672, %v4490_v11  ;;  %v6508_v11 = vpack.c.bf16 %v4770_v24, %v4769_v26 }
0x1900   :  { %v4491_v54 = vadd.f32 -0.28449672, %v4488_v48  ;;  %v4489_v10 = vmul.f32 %v6888_v25, %v4486_v44  ;;  %v4772_v48 = vld [vmem:[%s8315_s11 + $0x18] sm:$0xff] }
0x1901   :  { %v4496_v55 = vmul.f32 %v6884_v5, %v4493_v40  ;;  %v5237_v40 = vld [vmem:[%s8317_s26] ss:$0 sm:$0xff] }
0x1902   :  { %v4494_v46 = vmul.f32 %v6886_v63, %v4491_v54  ;;  %v4492_v20 = vadd.f32 -0.28449672, %v4489_v10 }
0x1903   :  { %v4499_v38 = vadd.f32 0.2548296, %v4496_v55 }
0x1904   :  { %v4497_v58 = vadd.f32 0.2548296, %v4494_v46  ;;  %v4495_v53 = vmul.f32 %v6888_v25, %v4492_v20 }
0x1905   :  { %v4502_v47 = vmul.f32 %v6884_v5, %v4499_v38 }
0x1906   :  { %v4500_v52 = vmul.f32 %v6886_v63, %v4497_v58  ;;  %v4498_v43 = vadd.f32 0.2548296, %v4495_v53  ;;  %v4450_v63 = vmul.f32 0.5, %v8191_v42 }
0x1907   :  { %v4517_v9 = vmul.f32 %v6890_v60, %v4502_v47  ;;  %v4765_v60 = vld [vmem:[%s8318_s0] sm:$0xff] }
0x1908   :  { %v4515_v15 = vmul.f32 %v6892_v45, %v4500_v52  ;;  %v4501_v29 = vmul.f32 %v6888_v25, %v4498_v43  ;;  %v4766_v52 = vld [vmem:[%s8318_s0 + $0x8] sm:$0xff]  ;;  %v4768_v43 = vld [vmem:[%s8318_s0 + $0x18] sm:$0xff] }
0x1909   :  { %v4520_v62 = vsub.f32 1.0, %v4517_v9  ;;  %v6514_v45 = vpack.c.bf16 %v4766_v52, %v4765_v60  ;;  %v4767_v9 = vld [vmem:[%s8318_s0 + $0x10] sm:$0xff] }
0x190a   :  { %v4518_v2 = vsub.f32 1.0, %v4515_v15  ;;  %v4516_v51 = vmul.f32 %v6894_v56, %v4501_v29  ;;  %v6517_v15 = vpack.c.bf16 %v4768_v43, %v4767_v9 }
0x190b   :  { %v4523_v39 = vmul.f32 %v4520_v62, %v4460_v4 }
0x190c   :  { %v4521_v13 = vmul.f32 %v4518_v2, %v4458_v21  ;;  %v4519_v12 = vsub.f32 1.0, %v4516_v51  ;;  %v5426_v2 = vld [vmem:[%s8319_s5] ss:$0 sm:$0xff] }
0x190d   :  { %v4526_v0 = vadd.f32 1.0, %v4523_v39  ;;  %v5427_v21 = vld [vmem:[%s8320_s9] ss:$0 sm:$0xff] }
0x190e   :  { %v4524_v5 = vadd.f32 1.0, %v4521_v13  ;;  %v4522_v41 = vmul.f32 %v4519_v12, %v4459_v17 }
0x190f   :  { %v4529_v27 = vmul.f32 %v4526_v0, %v4451_v31  ;;  %v5430_v0 = vld [vmem:[%s8321_s13] ss:$0 sm:$0xff] }
0x1910   :  { %v4525_v28 = vadd.f32 1.0, %v4522_v41  ;;  %v4527_v59 = vmul.f32 %v4524_v5, %v4449_v14 }
0x1911   :  { %v4531_v25 = vpack.c.bf16 %v4529_v27, %v4529_v27 }
0x1912   :  { %v4528_v30 = vmul.f32 %v4525_v28, %v4450_v63 }
0x1914   :  { %v4530_v18 = vpack.c.bf16 %v4528_v30, %v4527_v59 }
0x1916   :  { %6271 = vmatprep.mubr.bf16.mxu1 %v4530_v18  ;;  %v4957_v18 = vld [vmem:[%s8322_s17] sm:$0xff] }
0x1917   :  { %6272 = vmatmul.mubr.bf16.vlgmr.msra.gmra.mrb[80].mxu1 %v4531_v25  ;;  %v4958_v25 = vld [vmem:[%s8322_s17 + $0x8] sm:$0xff] }
0x19ea   :  { %v6273_v32 = vpop.f32.mrb[80].mxu1 }
0x19eb   :  { %v4631_v8 = vpop.f32.mrb[81].mxu1  ;;  %v4647_v19 = vadd.f32 %v6273_v32, %v8147_v35  ;;  %v6511_v35 = vpack.c.bf16 %v4772_v48, %v4771_v37  ;;  %v6520_v32 = vpack.c.bf16 %v4958_v25, %v4957_v18 }
0x19ec   :  { %v4645_v33 = vadd.f32 %v4631_v8, %v8144_v57  ;;  %v6274_v3 = vpop.f32.mrb[82].mxu1  ;;  %v4659_v57 = vld [vmem:[%s8316_s18] sm:$0x3]  ;;  %v4959_v8 = vld [vmem:[%s8322_s17 + $0x10] sm:$0xff] }
0x19ed   :  { %v4634_v42 = vpop.f32.mrb[83].mxu1  ;;  %v4658_v49 = vadd.f32 %v5423_v22, %v4647_v19 }
0x19ee   :  { %v4646_v23 = vadd.f32 %v4634_v42, %v8149_v6  ;;  %v4656_v34 = vadd.f32 %v5423_v22, %v4645_v33  ;;  %v1184_v6 = vmul.f32 0.0078125, %v7455_v1  ;;  %v4960_v33 = vld [vmem:[%s8322_s17 + $0x18] sm:$0xff] }
0x19ef   :  { %v6523_v3 = vpack.c.bf16 %v4960_v33, %v4959_v8 }
0x19f0   :  { %v4657_v36 = vadd.f32 %v5423_v22, %v4646_v23  ;;  %v1192_v44 = vadd.f32 %v5237_v40, %v1184_v6 }
0x19f2   :  { %v6505_v61 = vpack.c.bf16 %v4657_v36, %v4656_v34  ;;  %v5431_v36 = vld [vmem:[%s8323_s25] ss:$0 sm:$0xff] }
0x19f4   :  { %6506 = vmatpush3.bf16.msra.mxu0 %v6505_v61  ;;  %v5432_v61 = vld [vmem:[%s8324_s29] ss:$0 sm:$0xff] }
0x19f5   :  { %6279 = vmatprep.subr.mxu0 %v6970_v16 }
0x19f8   :  { %6280 = vmatpush3.msk.msra.mxu0 %vm179_vm0, %v4658_v49  ;;  %v5068_v49 = vld [vmem:[%s7178_s6] sm:$0xff] }
0x19f9   :  { %6282 = vmatmul.mubr.msk.f32.vlgmr.msra.gmra.mrb[80].mxu0 %vm1730_vm3, %v4659_v57  ;;  %6507 = vmatprep.subr.bf16.mxu0 %v6968_v7  ;;  %v5069_v57 = vld [vmem:[%s7178_s6 + $0x8] sm:$0xff] }
0x19fa   :  { %6509 = vmatpush3.bf16.msra.mxu0 %v6508_v11  ;;  %6292 = vmatprep.mubr.msk.f32.mxu0 %vm6969_vm1, %v6970_v16  ;;  %v6526_v11 = vpack.c.bf16 %v5069_v57, %v5068_v49 }
0x19fb   :  { %6510 = vmatprep.subr.bf16.mxu0 %v6968_v7 }
0x19fe   :  { %6512 = vmatpush3.bf16.msra.mxu0 %v6511_v35 }
0x19ff   :  { %6513 = vmatprep.subr.bf16.mxu0 %v6968_v7 }
0x1a01   :  { %6293 = vmatmul.mubr.msk.f32.vlgmr.msra.gmra.mrb[82].mxu0 %vm1483_vm9, %v1192_v44 }
0x1a02   :  { %6303 = vmatprep.mubr.msk.f32.mxu0 %vm6969_vm1, %v6970_v16  ;;  %6515 = vmatpush3.bf16.msra.mxu0 %v6514_v45 }
0x1a03   :  { %6516 = vmatprep.subr.bf16.mxu0 %v6968_v7 }
0x1a06   :  { %6518 = vmatpush3.bf16.msra.mxu0 %v6517_v15 }
0x1a07   :  { %6519 = vmatprep.subr.bf16.mxu0 %v6968_v7 }
0x1acc   :  { %v4732_v54 = vpop.f32.mrb[80].mxu0 }
0x1acd   :  { %v4738_v55 = vsel %vm1490_vm10, %v4732_v54, 0.0  ;;  %v6283_v10 = vpop.f32.mrb[81].mxu0 }
0x1ace   :  { %4739 = vadd.xlane.f32.xlu0 %v4738_v55 }
0x1ad4   :  { %v4842_v1 = vpop.f32.mrb[82].mxu0 }
0x1ad5   :  { %v6294_v46 = vpop.f32.mrb[83].mxu0 }
0x1b5b   :  { %v4740_v38 = vpop.xlane.xlu0 %4739 }
0x1b5c   :  { %v4741_v20 = vmul.f32 0.03125, %v4740_v38 }
0x1b5e   :  { %v4742_v58 = vsub.f32 %v4732_v54, %v4741_v20 }
0x1b60   :  { %v4743_v47 = vmul.f32 %v4742_v58, %v4742_v58 }
0x1b62   :  { %v4744_v53 = vsel %vm1490_vm10, %v4743_v47, 0.0 }
0x1b63   :  { %4745 = vadd.xlane.f32.xlu1 %v4744_v53 }
0x1bf0   :  { %v4746_v62 = vpop.xlane.xlu1 %4745 }
0x1bf1   :  { %v4747_v29 = vmul.f32 0.03125, %v4746_v62 }
0x1bf3   :  { %v4748_v56 = vadd.f32 1e-05, %v4747_v29 }
0x1bf5   :  { %6895 = vrsqrt.f32 %v4748_v56 }
0x1bff   :  { %v6896_v4 = vpop.eup %6895 }
0x1c00   :  { %v4750_v39 = vmul.f32 %v6896_v4, %v4742_v58 }
0x1c02   :  { %v4757_v51 = vmul.f32 %v5426_v2, %v4750_v39  ;;  %v5435_v39 = vld [vmem:[%s7183_s2] ss:$0 sm:$0xff] }
0x1c04   :  { %v4764_v13 = vadd.f32 %v5427_v21, %v4757_v51 }
0x1c06   :  { %6304 = vmatmul.mubr.msk.f32.vlgmr.msra.gmra.mrb[84].mxu0 %vm1483_vm9, %v4764_v13 }
0x1c07   :  { %6314 = vmatprep.mubr.msk.f32.mxu0 %vm6969_vm1, %v6970_v16  ;;  %6521 = vmatpush3.bf16.msra.mxu0 %v6520_v32 }
0x1c08   :  { %6522 = vmatprep.subr.bf16.mxu0 %v6968_v7 }
0x1c0b   :  { %6524 = vmatpush3.bf16.msra.mxu0 %v6523_v3 }
0x1c0c   :  { %6525 = vmatprep.subr.bf16.mxu0 %v6968_v7  ;;  %v5433_v7 = vld [vmem:[%s7173_s8] ss:$0 sm:$0xff]  ;;  %s6991_s8 = smov [#allocation3]  }
0x1c0d   :  { %s5158_s6 = sshll.u32 %s6991_s8, 4  ;;  %s5159_s6 = int_to_ptr.vmem [resolvable:$true] %s5158_s6 }
0x1c0e   :  { %s6906_s3 = scalar_lea.vmem %s5159_s6, 32  ;;  %p6911_p1 = scmp.lt.s32.totalorder %s5159_s6, %s5159_s6 }
0x1c0f   :  { %p6907_p0 = scmp.ne.s32.totalorder %s5159_s6, %s6906_s3  ;;  %p6912_p2 = scmp.lt.s32.totalorder %s6906_s3, %s6906_s3 }
0x1c11   :  { %p6913_p3 = por %p6912_p2, %p6911_p1 }
0x1c13   :  { %p6914_p4 = pnand %p6913_p3, %p6907_p0 }
0x1cd9   :  { %v4915_v12 = vpop.f32.mrb[84].mxu0 }
0x1cda   :  { %v4916_v17 = vadd.f32 %v4915_v12, %v4842_v1  ;;  %v6305_v5 = vpop.f32.mrb[85].mxu0 }
0x1cdc   :  { %v4926_v41 = vadd.f32 %v5430_v0, %v4916_v17 }
0x1cde   :  { %v4927_v31 = vadd.f32 %v4926_v41, %v1192_v44 }
0x1ce0   :  { %v4930_v14 = vsel %vm1490_vm10, %v4927_v31, 0.0 }
0x1ce1   :  { %4931 = vadd.xlane.f32.xlu0 %v4930_v14 }
0x1d6e   :  { %v4932_v63 = vpop.xlane.xlu0 %4931 }
0x1d6f   :  { %v4933_v28 = vmul.f32 0.03125, %v4932_v63 }
0x1d71   :  { %v4934_v27 = vsub.f32 %v4927_v31, %v4933_v28 }
0x1d73   :  { %v4935_v59 = vmul.f32 %v4934_v27, %v4934_v27 }
0x1d75   :  { %v4936_v30 = vsel %vm1490_vm10, %v4935_v59, 0.0 }
0x1d76   :  { %4937 = vadd.xlane.f32.xlu1 %v4936_v30 }
0x1e03   :  { %v4938_v22 = vpop.xlane.xlu1 %4937 }
0x1e04   :  { %v4939_v42 = vmul.f32 0.03125, %v4938_v22 }
0x1e06   :  { %v4940_v23 = vadd.f32 1e-05, %v4939_v42 }
0x1e08   :  { %6897 = vrsqrt.f32 %v4940_v23 }
0x1e12   :  { %v6898_v34 = vpop.eup %6897 }
0x1e13   :  { %v4942_v19 = vmul.f32 %v6898_v34, %v4934_v27 }
0x1e15   :  { %v4949_v26 = vmul.f32 %v5431_v36, %v4942_v19 }
0x1e17   :  { %v4956_v24 = vadd.f32 %v5432_v61, %v4949_v26 }
0x1e19   :  { %6315 = vmatmul.mubr.msk.f32.vlgmr.msra.gmra.mrb[86].mxu0 %vm1483_vm9, %v4956_v24 }
0x1e1a   :  { %6321 = vmatprep.mubr.msk.f32.mxu0 %vm6969_vm1, %v6970_v16  ;;  %6527 = vmatpush3.bf16.msra.mxu0 %v6526_v11  ;;  %vm5150_vm1 = vcmask 9216  }
0x1eec   :  { %v5037_v37 = vpop.f32.mrb[86].mxu0 }
0x1eed   :  { %v5038_v48 = vadd.f32 %v5433_v7, %v5037_v37  ;;  %v6316_v35 = vpop.f32.mrb[87].mxu0 }
0x1eef   :  { %v5042_v6 = vmul.f32 0.70710677, %v5038_v48  ;;  %v5041_v56 = vmul.f32 0.5, %v5038_v48 }
0x1ef1   :  { %v5045_v40 = vand.u32 2147483647, %v5042_v6  ;;  %vm5043_vm0 = vcmp.ge.f32.partialorder %v5042_v6, 0.0 }
0x1ef2   :  { %v5044_v62 = vsel %vm5043_vm0, 1.0, %v6990_v50 }
0x1ef3   :  { %v5046_v44 = vmul.f32 0.3275911, %v5045_v40  ;;  %v5059_v55 = vsub.f32 0.0, %v5045_v40 }
0x1ef5   :  { %v5047_v54 = vadd.f32 1.0, %v5046_v44  ;;  %v5060_v1 = vmul.f32 %v5059_v55, %v5045_v40 }
0x1ef7   :  { %6899 = vrcp.f32 %v5047_v54  ;;  %v5061_v20 = vmul.f32 1.442695, %v5060_v1 }
0x1ef9   :  { %6901 = vpow2.f32 %v5061_v20 }
0x1f01   :  { %v6900_v10 = vpop.eup %6899 }
0x1f02   :  { %v5050_v46 = vmul.f32 1.0614054, %v6900_v10 }
0x1f03   :  { %v6902_v9 = vpop.eup %6901 }
0x1f04   :  { %v5051_v38 = vadd.f32 -1.4531521, %v5050_v46 }
0x1f06   :  { %v5052_v16 = vmul.f32 %v6900_v10, %v5051_v38 }
0x1f08   :  { %v5053_v58 = vadd.f32 1.4214138, %v5052_v16 }
0x1f0a   :  { %v5054_v47 = vmul.f32 %v6900_v10, %v5053_v58 }
0x1f0c   :  { %v5055_v53 = vadd.f32 -0.28449672, %v5054_v47 }
0x1f0e   :  { %v5056_v60 = vmul.f32 %v6900_v10, %v5055_v53 }
0x1f10   :  { %v5057_v52 = vadd.f32 0.2548296, %v5056_v60 }
0x1f12   :  { %v5058_v45 = vmul.f32 %v6900_v10, %v5057_v52 }
0x1f14   :  { %v5063_v43 = vmul.f32 %v6902_v9, %v5058_v45 }
0x1f16   :  { %v5064_v15 = vsub.f32 1.0, %v5063_v43 }
0x1f18   :  { %v5065_v29 = vmul.f32 %v5064_v15, %v5044_v62 }
0x1f1a   :  { %v5066_v4 = vadd.f32 1.0, %v5065_v29 }
0x1f1c   :  { %v5067_v2 = vmul.f32 %v5066_v4, %v5041_v56 }
0x1f1e   :  { %6322 = vmatmul.mubr.msk.f32.vlgmr.msra.gmra.mrb[88].mxu0 %vm2629_vm5, %v5067_v2 }
0x1ff1   :  { %v5146_v21 = vpop.f32.mrb[88].mxu0 }
0x1ff2   :  { %v5147_v51 = vadd.f32 %v5435_v39, %v5146_v21  ;;  %v6323_v13 = vpop.f32.mrb[89].mxu0 }
0x1ff4   :  { %5151 = vst.msk [vmem:[#allocation3] sm:$0x3] %vm5150_vm1, %v5147_v51 }
0x1ff5   :  { %6917 = shalt.err (!%p6914_p4)
}
0x1ff6   :  { %s6918_s14 = scalar_lea.hbm %s7188_s10, 32 }
0x1ff7   :  { %p6919_p5 = scmp.ne.s32.totalorder %s7188_s10, %s6918_s14  ;;  %p6922_p6 = scmp.lt.u32.totalorder %s6918_s14, %s7188_s10 }
0x1ff9   :  { %p6924_p7 = pnand %p6922_p6, %p6919_p5 }
0x1ffb   :  { %6927 = shalt.err (!%p6924_p7)
}
0x1ffc   :  { %5161 = dma.vmem_to_hbm [thread:$0]  %s5159_s6, 32, %s7188_s10, [#allocation4]  }
0x1ffd   :  { %6928 = dma.done.wait [#allocation4], 32  }
0x1ffe   :  { %6929 = vsyncadd [#allocation4], 4294967264 }
0x1fff   :  { %5165 = vsyncpa [#allocation4], 1 }

</bundles_post_ra>
